<compile_context>
chip_gen: v6e
topology: v6e:2x2x1
jax: 0.10.0
libtpu: 0.0.40
codegen_flags: <defaults>
</compile_context>

<pallas_src>
import math
import functools

import numpy as np
import jax
import jax.numpy as jnp
from jax.experimental import pallas as pl
from jax.experimental.pallas import tpu as pltpu  # noqa: F401  (TPU backend import)

# ----- module-level constants referenced by the PyTorch code -----
NUM_WORDS = 100
EMBEDDING_SIZE = 32          # d_model (must be divisible by nhead)
ABLATION1 = False
ABLATION3 = False

# ----- small, self-consistent hyper-parameters -----
NHEAD = 4
DIM_FFN = 64
NUM_LAYERS = 1
NUM_CLASS = 2
SEQ_TEXT = 8
TAB_LEN = 4                  # [id, department, title, numeric] tokens
BATCH = 2
NUM_FEATS = 110
VOCAB_SIZE = NUM_WORDS + 2
LN_EPS = 1e-5
CLS_PAD = 128                # classifier output padded to a full lane width (lane-dense store)
WIDE = 128                   # lane width of the "wide" parameter pack / padded numeric feats


def _matmul_nt(a, b):
    """a:(M,K), b:(N,K) -> (M,N)   (i.e. a @ b.T) on the MXU, f32 accumulation."""
    return jax.lax.dot_general(a, b, (((1,), (1,)), ((), ())),
                               preferred_element_type=jnp.float32)


def _round8(n):
    return -(-n // 8) * 8


# ============================================================================
# Packed-parameter layouts (every section starts at an 8-aligned sublane offset)
# ============================================================================
def _pd_layout(B, S, T, D, H, F, L):
    """Layout of the (rows, D) parameter/mask pack."""
    off, cur = {}, 0

    def add(name, rows):
        nonlocal cur
        off[name] = cur
        cur += _round8(rows)

    add("num_b", 1)
    add("cls_w", CLS_PAD)
    add("mstk_text", H * B * S)      # head-lane 0/1 mask for text-query attention
    add("mstk_tab", H * B * T)       # head-lane 0/1 mask for tab-query attention
    add("bm_ss", H * B * S)          # same-batch 0/1 masks (cols padded to D)
    add("bm_tt", H * B * T)
    add("bm_st", H * B * S)
    add("bm_ts", H * B * T)
    add("sel_num", B * T)            # scatter numeric token into each batch's last tab row
    add("sel_t", B)                  # pooling row-sum selector (text)
    add("sel_b", B)                  # pooling row-sum selector (tab)
    for li in range(L):
        for a in range(4):
            add(f"attw_{li}_{a}", 4 * D)   # rows [Wq; Wk; Wv; Wo]
            add(f"attb_{li}_{a}", 4)       # rows [bq; bk; bv; bo]
        for t in range(2):
            add(f"ffnw_{li}_{t}", 2 * F)   # rows [W1; W2^T]
            add(f"f2b_{li}_{t}", 1)
        for j in range(6):
            add(f"ln_{li}_{j}", 2)         # rows [gamma; beta]
    return off, cur


def _pw_layout(D, F, L):
    """Layout of the (rows, 128) wide parameter pack."""
    off, cur = {}, 0

    def add(name, rows):
        nonlocal cur
        off[name] = cur
        cur += _round8(rows)

    add("cls_b", 1)                  # 128 lanes (NUM_CLASS valid)
    add("num_w", D)                  # (D, NUM_FEATS) zero-padded to 128 lanes
    for li in range(L):
        for t in range(2):
            add(f"f1b_{li}_{t}", 1)  # F valid lanes
    return off, cur


_PD_OFF, _PD_ROWS = _pd_layout(BATCH, SEQ_TEXT, TAB_LEN, EMBEDDING_SIZE, NHEAD, DIM_FFN, NUM_LAYERS)
_PW_OFF, _PW_ROWS = _pw_layout(EMBEDDING_SIZE, DIM_FFN, NUM_LAYERS)


# ============================================================================
# Fused forward kernel: tab assembly + all layers + pooling + classifier
# ============================================================================
def _fwd_kernel(act_ref, xnum_ref, pd_ref, pw_ref, out_ref,
                *, B, S, T, D, H, F, L, ablation3, pd_off, pw_off):
    HD = D // H
    scale = 1.0 / math.sqrt(HD)
    NT, NB = B * S, B * T

    def pd_rows(name, n, row0=0):
        o = pd_off[name] + row0
        return pd_ref[o:o + n, :]

    def pw_rows(name, n):
        o = pw_off[name]
        return pw_ref[o:o + n, :]

    # [R3] single-pass layernorm: two independent lane reductions, var = E[x^2] - mean^2.
    # Safe at these activation magnitudes (O(1)) for the 2e-3 tolerance.
    def layernorm(x, li, j):
        gb = pd_rows(f"ln_{li}_{j}", 2)                       # (2, D): [gamma; beta]
        inv_d = 1.0 / D
        mu = jnp.sum(x, axis=-1, keepdims=True) * inv_d
        ex2 = jnp.sum(x * x, axis=-1, keepdims=True) * inv_d
        var = ex2 - mu * mu
        return (x - mu) * jax.lax.rsqrt(var + LN_EPS) * gb[0:1] + gb[1:2]

    def attention(q_in, kv_in, li, a, mstk, bm):
        Nq = q_in.shape[0]
        wo = pd_off[f"attw_{li}_{a}"]
        # [R4] separate matmuls against 8-aligned ROW blocks of the packed weight — no
        # 32/64-lane column extraction of a fused QKV result.
        wq = pd_ref[wo + 0 * D: wo + 1 * D, :]
        wk = pd_ref[wo + 1 * D: wo + 2 * D, :]
        wv = pd_ref[wo + 2 * D: wo + 3 * D, :]
        wout = pd_ref[wo + 3 * D: wo + 4 * D, :]
        b = pd_rows(f"attb_{li}_{a}", 4)                      # (4, D): [bq; bk; bv; bo]
        q = _matmul_nt(q_in, wq) + b[0:1]
        k = _matmul_nt(kv_in, wk) + b[1:2]
        v = _matmul_nt(kv_in, wv) + b[2:3]

        # [R2] replicate queries per head along 8-aligned sublanes (vreg copies, no MXU push),
        # select each head's HD lanes with the precomputed 0/1 mask [R1].
        q_stk = jnp.concatenate([q] * H, axis=0) * mstk       # (H*Nq, D)
        s = _matmul_nt(q_stk, k) * scale                      # (H*Nq, Nk)
        # [R5] no max-subtract: scores are O(1) for this model/init (documented assumption);
        # the cross-batch mask is a post-exp 0/1 multiply so exp never sees +/-1e30 and every
        # row keeps >=1 unmasked entry (no 0/0).
        p = jnp.exp(s) * bm
        p = p * pl.reciprocal(jnp.sum(p, axis=-1, keepdims=True), approx=False)
        o = jnp.dot(p, v, preferred_element_type=jnp.float32) * mstk    # (H*Nq, D)

        # [R6] tree-reduce the per-head row blocks (concat over heads == masked block sum).
        parts = [o[h * Nq:(h + 1) * Nq] for h in range(H)]
        while len(parts) > 1:
            nxt = [parts[i] + parts[i + 1] for i in range(0, len(parts) - 1, 2)]
            if len(parts) % 2:
                nxt.append(parts[-1])
            parts = nxt
        return _matmul_nt(parts[0], wout) + b[3:4]            # single out-projection

    def ffn(x, li, t):
        wo = pd_off[f"ffnw_{li}_{t}"]
        w1 = pd_ref[wo: wo + F, :]                            # (F, D)
        w2t = pd_ref[wo + F: wo + 2 * F, :]                   # (F, D) == W2^T
        b1 = pw_rows(f"f1b_{li}_{t}", 1)[:, :F]               # (1, F), lane offset 0
        b2 = pd_rows(f"f2b_{li}_{t}", 1)                      # (1, D)
        hid = jnp.maximum(_matmul_nt(x, w1) + b1, 0.0)
        return jnp.dot(hid, w2t, preferred_element_type=jnp.float32) + b2

    # ---- activations: text rows then tabular rows (8-aligned sublane slices) ----
    text = act_ref[0:NT, :]                                   # (B*S, D)
    cat = act_ref[NT:NT + NB, :]                              # (B*T, D)

    # ---- numeric-feature linear, scattered into each batch's last tabular token ----
    num_w = pw_rows("num_w", D)                               # (D, 128), zero-padded cols
    num_e = _matmul_nt(xnum_ref[...], num_w) + pd_rows("num_b", 1)       # (B, D)
    sel_num = pd_rows("sel_num", NB)[:, :B]                   # (B*T, B) precomputed [R1]
    tab = cat + jnp.dot(sel_num, num_e, preferred_element_type=jnp.float32)

    # ---- hoist all precomputed masks once, before the layer loop [R1] ----
    mstk_text = pd_rows("mstk_text", H * NT)                  # (H*B*S, D)
    mstk_tab = pd_rows("mstk_tab", H * NB)                    # (H*B*T, D)
    bm_ss = pd_rows("bm_ss", H * NT)[:, :NT]
    bm_tt = pd_rows("bm_tt", H * NB)[:, :NB]
    bm_st = pd_rows("bm_st", H * NT)[:, :NB]
    bm_ts = pd_rows("bm_ts", H * NB)[:, :NT]

    # ---- cross-decoder layers (statically unrolled; fine at L=1, switch to fori_loop if L grows) ----
    for li in range(L):
        if not ablation3:
            text = layernorm(text + attention(text, text, li, 0, mstk_text, bm_ss), li, 0)
            tab = layernorm(tab + attention(tab, tab, li, 1, mstk_tab, bm_tt), li, 1)
        text = layernorm(text + attention(text, tab, li, 2, mstk_text, bm_st), li, 2)
        tab = layernorm(tab + attention(tab, text, li, 3, mstk_tab, bm_ts), li, 3)
        text = layernorm(text + ffn(text, li, 0), li, 4)
        tab = layernorm(tab + ffn(tab, li, 1), li, 5)

    # ---- concat-mean pooling via precomputed batch row-sum selectors [R1] ----
    sel_t = pd_rows("sel_t", B)[:, :NT]
    sel_b = pd_rows("sel_b", B)[:, :NB]
    pooled = (jnp.dot(sel_t, text, preferred_element_type=jnp.float32)
              + jnp.dot(sel_b, tab, preferred_element_type=jnp.float32)) * (1.0 / (S + T))

    # lane-dense (128-wide) classifier output; valid logits are the first NUM_CLASS lanes
    cls_w = pd_rows("cls_w", CLS_PAD)                         # (128, D), rows >= NUM_CLASS are 0
    cls_b = pw_rows("cls_b", 1)                               # (1, 128)
    out_ref[...] = _matmul_nt(pooled, cls_w) + cls_b


# ============================================================================
# One-time parameter repacking into 2 packed arrays [R1, R7]  (call once, outside jit)
# ============================================================================
def pack_params(params):
    D, F, H = EMBEDDING_SIZE, DIM_FFN, NHEAD
    B, S, T = BATCH, SEQ_TEXT, TAB_LEN
    L = len(params["layers"])
    HD = D // H

    pd = np.zeros((_PD_ROWS, D), np.float32)
    pw = np.zeros((_PW_ROWS, WIDE), np.float32)

    def put_d(name, arr):
        arr = np.asarray(arr, np.float32)
        pd[_PD_OFF[name]:_PD_OFF[name] + arr.shape[0], :arr.shape[1]] = arr

    def put_w(name, arr):
        arr = np.asarray(arr, np.float32)
        pw[_PW_OFF[name]:_PW_OFF[name] + arr.shape[0], :arr.shape[1]] = arr

    # ---- precomputed shape-only masks / selectors (review item 1) ----
    def mstk(Sq):
        Nq = B * Sq
        rr = np.arange(H * Nq)[:, None]
        ll = np.arange(D)[None, :]
        return (ll // HD == rr // Nq).astype(np.float32)

    def bmask(Sq, Sk):
        Nq, Nk = B * Sq, B * Sk
        rr = np.arange(H * Nq)[:, None] % Nq
        cc = np.arange(Nk)[None, :]
        return (rr // Sq == cc // Sk).astype(np.float32)

    put_d("mstk_text", mstk(S))
    put_d("mstk_tab", mstk(T))
    put_d("bm_ss", bmask(S, S))
    put_d("bm_tt", bmask(T, T))
    put_d("bm_st", bmask(S, T))
    put_d("bm_ts", bmask(T, S))

    sel_num = np.zeros((B * T, B), np.float32)
    sel_num[np.arange(B) * T + (T - 1), np.arange(B)] = 1.0
    put_d("sel_num", sel_num)
    put_d("sel_t", (np.arange(B * S)[None, :] // S == np.arange(B)[:, None]).astype(np.float32))
    put_d("sel_b", (np.arange(B * T)[None, :] // T == np.arange(B)[:, None]).astype(np.float32))

    # ---- model parameters ----
    put_d("num_b", np.asarray(params["num_b"]).reshape(1, D))
    put_d("cls_w", np.asarray(params["cls_w"]))                      # (NUM_CLASS, D), rest zero
    put_w("cls_b", np.asarray(params["cls_b"]).reshape(1, NUM_CLASS))
    put_w("num_w", np.asarray(params["num_w"]))                      # (D, NUM_FEATS), rest zero

    for li, lp in enumerate(params["layers"]):
        aiw, aib = np.asarray(lp["aiw"]), np.asarray(lp["aib"])
        aow, aob = np.asarray(lp["aow"]), np.asarray(lp["aob"])
        f1w, f1b = np.asarray(lp["f1w"]), np.asarray(lp["f1b"])
        f2w, f2b = np.asarray(lp["f2w"]), np.asarray(lp["f2b"])
        lnw, lnb = np.asarray(lp["lnw"]), np.asarray(lp["lnb"])
        for a in range(4):
            put_d(f"attw_{li}_{a}", np.concatenate([aiw[a], aow[a]], axis=0))           # (4D, D)
            put_d(f"attb_{li}_{a}",
                  np.concatenate([aib[a].reshape(3, D), aob[a].reshape(1, D)], axis=0)) # (4, D)
        for t in range(2):
            put_d(f"ffnw_{li}_{t}", np.concatenate([f1w[t], f2w[t].T], axis=0))         # (2F, D)
            put_d(f"f2b_{li}_{t}", f2b[t].reshape(1, D))
            put_w(f"f1b_{li}_{t}", f1b[t].reshape(1, F))
        for j in range(6):
            put_d(f"ln_{li}_{j}", np.stack([lnw[j], lnb[j]], axis=0))                   # (2, D)

    return dict(
        text_emb=params["text_emb"], speaker_emb=params["speaker_emb"],
        id_emb=params["id_emb"], department_emb=params["department_emb"],
        title_emb=params["title_emb"], pe=params["pe"],
        pd=jnp.asarray(pd), pw=jnp.asarray(pw),
    )


# ============================================================================
# Full model forward: plain-JAX glue (gathers / PE) + one fused Pallas kernel
# ============================================================================
@jax.jit
def model_forward(packed, X_text, X_cat, X_num, speakers):
    D = EMBEDDING_SIZE
    B, S = X_text.shape
    assert (B, S) == (BATCH, SEQ_TEXT), "packed masks were built for (BATCH, SEQ_TEXT)"

    # TODO(synk): embedding-table gathers + positional encoding are data-dependent gathers kept
    # in plain JAX; all dropouts are eval-mode identity.
    emb = packed["text_emb"][X_text]
    if not ABLATION1:
        emb = emb + packed["speaker_emb"][speakers]
    x_text = emb * math.sqrt(D) + packed["pe"][:, :S, :]
    x_text = x_text.reshape(B * S, D).astype(jnp.float32)

    cat = jnp.stack([packed["id_emb"][X_cat[:, 0]],
                     packed["department_emb"][X_cat[:, 1]],
                     packed["title_emb"][X_cat[:, 2]],
                     jnp.zeros((B, D), jnp.float32)], axis=1)     # numeric token filled in-kernel
    cat = cat.reshape(B * TAB_LEN, D).astype(jnp.float32)

    # [R7] consolidate runtime inputs: one activation slab + zero-padded numeric features
    act = jnp.concatenate([x_text, cat], axis=0)                  # (B*S + B*T, D)
    xnum = jnp.pad(X_num.astype(jnp.float32), ((0, 0), (0, WIDE - NUM_FEATS)))  # (B, 128)

    kern = functools.partial(_fwd_kernel, B=B, S=S, T=TAB_LEN, D=D,
                             H=NHEAD, F=DIM_FFN, L=NUM_LAYERS, ablation3=ABLATION3,
                             pd_off=_PD_OFF, pw_off=_PW_OFF)
    # [R11] no vmem_limit / tiling tuning: resident footprint is ~200 KiB, far below any
    # generation's scoped VMEM default; a grid would only add per-step overhead here.
    logits = pl.pallas_call(
        kern,
        out_shape=jax.ShapeDtypeStruct((B, CLS_PAD), jnp.float32),
    )(act, xnum, packed["pd"], packed["pw"])
    return logits[:, :NUM_CLASS]


# ============================================================================
# Pure-JAX reference (same math, no Pallas) for correctness checking
# ============================================================================
def _ref_layernorm(x, g, b):
    mu = jnp.mean(x, axis=-1, keepdims=True)
    xc = x - mu
    var = jnp.mean(xc * xc, axis=-1, keepdims=True)
    return xc * jax.lax.rsqrt(var + LN_EPS) * g + b


def _ref_mha(q_in, kv_in, w_in, b_in, w_out, b_out, nhead):
    D = q_in.shape[-1]
    HD = D // nhead
    q = q_in @ w_in[:D].T + b_in[:D]
    k = kv_in @ w_in[D:2 * D].T + b_in[D:2 * D]
    v = kv_in @ w_in[2 * D:].T + b_in[2 * D:]
    B, Sq, _ = q.shape
    Sk = k.shape[1]
    q = q.reshape(B, Sq, nhead, HD).transpose(0, 2, 1, 3)
    k = k.reshape(B, Sk, nhead, HD).transpose(0, 2, 1, 3)
    v = v.reshape(B, Sk, nhead, HD).transpose(0, 2, 1, 3)
    s = jnp.einsum("bhqd,bhkd->bhqk", q, k) / math.sqrt(HD)
    s = s - jnp.max(s, axis=-1, keepdims=True)
    p = jnp.exp(s)
    p = p / jnp.sum(p, axis=-1, keepdims=True)
    o = jnp.einsum("bhqk,bhkd->bhqd", p, v)
    o = o.transpose(0, 2, 1, 3).reshape(B, Sq, D)
    return o @ w_out.T + b_out


def reference_forward(params, X_text, X_cat, X_num, speakers):
    d_model = EMBEDDING_SIZE
    if not ABLATION1:
        emb = params["text_emb"][X_text] + params["speaker_emb"][speakers]
    else:
        emb = params["text_emb"][X_text]
    text = emb * math.sqrt(d_model)
    text = text + params["pe"][:, :text.shape[1], :]

    id_e = params["id_emb"][X_cat[:, 0]]
    dep_e = params["department_emb"][X_cat[:, 1]]
    tit_e = params["title_emb"][X_cat[:, 2]]
    num_e = X_num.astype(jnp.float32) @ params["num_w"].T + params["num_b"]
    tab = jnp.stack([id_e, dep_e, tit_e, num_e], axis=1)

    for lp in params["layers"]:
        aiw, aib, aow, aob = lp["aiw"], lp["aib"], lp["aow"], lp["aob"]
        f1w, f1b, f2w, f2b = lp["f1w"], lp["f1b"], lp["f2w"], lp["f2b"]
        lnw, lnb = lp["lnw"], lp["lnb"]
        if not ABLATION3:
            text = _ref_layernorm(text + _ref_mha(text, text, aiw[0], aib[0], aow[0], aob[0], NHEAD),
                                  lnw[0], lnb[0])
            tab = _ref_layernorm(tab + _ref_mha(tab, tab, aiw[1], aib[1], aow[1], aob[1], NHEAD),
                                 lnw[1], lnb[1])
        text = _ref_layernorm(text + _ref_mha(text, tab, aiw[2], aib[2], aow[2], aob[2], NHEAD),
                              lnw[2], lnb[2])
        tab = _ref_layernorm(tab + _ref_mha(tab, text, aiw[3], aib[3], aow[3], aob[3], NHEAD),
                             lnw[3], lnb[3])
        t1 = jnp.maximum(text @ f1w[0].T + f1b[0], 0.0)
        text = _ref_layernorm(text + t1 @ f2w[0].T + f2b[0], lnw[4], lnb[4])
        t2 = jnp.maximum(tab @ f1w[1].T + f1b[1], 0.0)
        tab = _ref_layernorm(tab + t2 @ f2w[1].T + f2b[1], lnw[5], lnb[5])

    X = jnp.concatenate((text, tab), axis=1).mean(axis=1)
    return X @ params["cls_w"].T + params["cls_b"]


# ============================================================================
# Deterministic parameter initialisation (PyTorch-convention layout)
# ============================================================================
def init_params(key):
    D = EMBEDDING_SIZE
    keys = iter(jax.random.split(key, 64))

    def nrm(shape, scale=0.02):
        return jax.random.normal(next(keys), shape, dtype=jnp.float32) * scale

    def emb(n):
        e = nrm((n, D), 0.05)
        return e.at[0].set(0.0)          # padding_idx=0

    # sinusoidal positional encoding (matches PositionalEncoding buffer)
    position = jnp.arange(VOCAB_SIZE, dtype=jnp.float32)[:, None]
    div_term = jnp.exp(jnp.arange(0, D, 2, dtype=jnp.float32) * (-math.log(10000.0) / D))
    pe = jnp.zeros((VOCAB_SIZE, D), dtype=jnp.float32)
    pe = pe.at[:, 0::2].set(jnp.sin(position * div_term))
    pe = pe.at[:, 1::2].set(jnp.cos(position * div_term))
    pe = pe[None]

    layers = []
    for _ in range(NUM_LAYERS):
        layers.append(dict(
            aiw=nrm((4, 3 * D, D)), aib=nrm((4, 3 * D)),
            aow=nrm((4, D, D)), aob=nrm((4, D)),
            f1w=nrm((2, DIM_FFN, D)), f1b=nrm((2, DIM_FFN)),
            f2w=nrm((2, D, DIM_FFN)), f2b=nrm((2, D)),
            lnw=jnp.ones((6, D), jnp.float32),
            lnb=jnp.zeros((6, D), jnp.float32),
        ))

    return dict(
        text_emb=emb(VOCAB_SIZE),
        speaker_emb=emb(3),
        id_emb=emb(6212),
        department_emb=emb(59),
        title_emb=emb(7),
        num_w=nrm((D, NUM_FEATS)), num_b=nrm((D,)),
        pe=pe,
        layers=layers,
        cls_w=nrm((NUM_CLASS, D)), cls_b=nrm((NUM_CLASS,)),
    )


if __name__ == "__main__":
    key = jax.random.PRNGKey(0)
    pkey, dkey = jax.random.split(key)
    params = init_params(pkey)
    packed = pack_params(params)          # one-time repack into the kernel layout

    k1, k2, k3, k4, k5, k6 = jax.random.split(dkey, 6)
    X_text = jax.random.randint(k1, (BATCH, SEQ_TEXT), 0, VOCAB_SIZE)
    speakers = jax.random.randint(k2, (BATCH, SEQ_TEXT), 0, 3)
    X_cat = jnp.stack([jax.random.randint(k3, (BATCH,), 0, 6212),
                       jax.random.randint(k4, (BATCH,), 0, 59),
                       jax.random.randint(k5, (BATCH,), 0, 7)], axis=1)
    X_num = jax.random.normal(k6, (BATCH, NUM_FEATS), dtype=jnp.float32)

    out = model_forward(packed, X_text, X_cat, X_num, speakers)
    out = jax.block_until_ready(out)

    ref = reference_forward(params, X_text, X_cat, X_num, speakers)
    assert out.shape == (BATCH, NUM_CLASS), out.shape
    assert bool(jnp.all(jnp.isfinite(out)))
    assert bool(jnp.allclose(out, ref, atol=2e-3, rtol=2e-3)), (out, ref)

    print("KERNEL_OK")
</pallas_src>

<mosaic_0001>
module attributes {stable_mosaic.version = 11 : i64} {
  func.func @_fwd_kernel(%arg0: memref<24x32xf32, #tpu.memory_space<vmem>>, %arg1: memref<2x128xf32, #tpu.memory_space<vmem>>, %arg2: memref<1312x32xf32, #tpu.memory_space<vmem>>, %arg3: memref<56x128xf32, #tpu.memory_space<vmem>>, %arg4: memref<2x128xf32, #tpu.memory_space<vmem>>) attributes {dimension_semantics = [], scalar_prefetch = 0 : i64, scratch_operands = 0 : i64, tpu.core_type = #tpu.core_type<tc>} {
    %c0 = arith.constant 0 : index
    %c0_0 = arith.constant 0 : index
    %0 = vector.load %arg0[%c0, %c0_0] : memref<24x32xf32, #tpu.memory_space<vmem>>, vector<16x32xf32>
    %c16 = arith.constant 16 : index
    %c0_1 = arith.constant 0 : index
    %1 = vector.load %arg0[%c16, %c0_1] : memref<24x32xf32, #tpu.memory_space<vmem>>, vector<8x32xf32>
    %c8 = arith.constant 8 : index
    %c0_2 = arith.constant 0 : index
    %2 = vector.load %arg3[%c8, %c0_2] : memref<56x128xf32, #tpu.memory_space<vmem>>, vector<32x128xf32>
    %c0_3 = arith.constant 0 : index
    %c0_4 = arith.constant 0 : index
    %3 = vector.load %arg1[%c0_3, %c0_4] : memref<2x128xf32, #tpu.memory_space<vmem>>, vector<2x128xf32>
    %cst = arith.constant dense<0.000000e+00> : vector<2x32xf32>
    %4 = tpu.matmul %3, %2, %cst {dimension_numbers = #tpu.dot_dimension_numbers<[1], [1], [0], [0], [0, 0, 1, 0], [], []>} : vector<2x128xf32>, vector<32x128xf32>, vector<2x32xf32> -> vector<2x32xf32>
    %c0_5 = arith.constant 0 : index
    %c0_6 = arith.constant 0 : index
    %5 = vector.load %arg2[%c0_5, %c0_6] : memref<1312x32xf32, #tpu.memory_space<vmem>>, vector<1x32xf32>
    %6 = vector.broadcast %5 : vector<1x32xf32> to vector<2x32xf32>
    %7 = arith.addf %4, %6 : vector<2x32xf32>
    %c424 = arith.constant 424 : index
    %c0_7 = arith.constant 0 : index
    %8 = vector.load %arg2[%c424, %c0_7] : memref<1312x32xf32, #tpu.memory_space<vmem>>, vector<8x32xf32>
    %9 = vector.extract_strided_slice %8 {offsets = [0, 0], sizes = [8, 2], strides = [1, 1]} : vector<8x32xf32> to vector<8x2xf32>
    %cst_8 = arith.constant dense<0.000000e+00> : vector<8x32xf32>
    %10 = tpu.matmul %9, %7, %cst_8 {dimension_numbers = #tpu.dot_dimension_numbers<[1], [0], [0], [1], [0, 0, 1, 1], [], []>} : vector<8x2xf32>, vector<2x32xf32>, vector<8x32xf32> -> vector<8x32xf32>
    %11 = arith.addf %1, %10 : vector<8x32xf32>
    %c136 = arith.constant 136 : index
    %c0_9 = arith.constant 0 : index
    %12 = vector.load %arg2[%c136, %c0_9] : memref<1312x32xf32, #tpu.memory_space<vmem>>, vector<64x32xf32>
    %c200 = arith.constant 200 : index
    %c0_10 = arith.constant 0 : index
    %13 = vector.load %arg2[%c200, %c0_10] : memref<1312x32xf32, #tpu.memory_space<vmem>>, vector<32x32xf32>
    %c232 = arith.constant 232 : index
    %c0_11 = arith.constant 0 : index
    %14 = vector.load %arg2[%c232, %c0_11] : memref<1312x32xf32, #tpu.memory_space<vmem>>, vector<64x32xf32>
    %15 = vector.extract_strided_slice %14 {offsets = [0, 0], sizes = [64, 16], strides = [1, 1]} : vector<64x32xf32> to vector<64x16xf32>
    %c296 = arith.constant 296 : index
    %c0_12 = arith.constant 0 : index
    %16 = vector.load %arg2[%c296, %c0_12] : memref<1312x32xf32, #tpu.memory_space<vmem>>, vector<32x32xf32>
    %17 = vector.extract_strided_slice %16 {offsets = [0, 0], sizes = [32, 8], strides = [1, 1]} : vector<32x32xf32> to vector<32x8xf32>
    %c328 = arith.constant 328 : index
    %c0_13 = arith.constant 0 : index
    %18 = vector.load %arg2[%c328, %c0_13] : memref<1312x32xf32, #tpu.memory_space<vmem>>, vector<64x32xf32>
    %19 = vector.extract_strided_slice %18 {offsets = [0, 0], sizes = [64, 8], strides = [1, 1]} : vector<64x32xf32> to vector<64x8xf32>
    %c392 = arith.constant 392 : index
    %c0_14 = arith.constant 0 : index
    %20 = vector.load %arg2[%c392, %c0_14] : memref<1312x32xf32, #tpu.memory_space<vmem>>, vector<32x32xf32>
    %21 = vector.extract_strided_slice %20 {offsets = [0, 0], sizes = [32, 16], strides = [1, 1]} : vector<32x32xf32> to vector<32x16xf32>
    %c448 = arith.constant 448 : index
    %c0_15 = arith.constant 0 : index
    %22 = vector.load %arg2[%c448, %c0_15] : memref<1312x32xf32, #tpu.memory_space<vmem>>, vector<32x32xf32>
    %c480 = arith.constant 480 : index
    %c0_16 = arith.constant 0 : index
    %23 = vector.load %arg2[%c480, %c0_16] : memref<1312x32xf32, #tpu.memory_space<vmem>>, vector<32x32xf32>
    %c512 = arith.constant 512 : index
    %c0_17 = arith.constant 0 : index
    %24 = vector.load %arg2[%c512, %c0_17] : memref<1312x32xf32, #tpu.memory_space<vmem>>, vector<32x32xf32>
    %c544 = arith.constant 544 : index
    %c0_18 = arith.constant 0 : index
    %25 = vector.load %arg2[%c544, %c0_18] : memref<1312x32xf32, #tpu.memory_space<vmem>>, vector<32x32xf32>
    %c576 = arith.constant 576 : index
    %c0_19 = arith.constant 0 : index
    %26 = vector.load %arg2[%c576, %c0_19] : memref<1312x32xf32, #tpu.memory_space<vmem>>, vector<4x32xf32>
    %cst_20 = arith.constant dense<0.000000e+00> : vector<16x32xf32>
    %27 = tpu.matmul %0, %22, %cst_20 {dimension_numbers = #tpu.dot_dimension_numbers<[1], [1], [0], [0], [0, 0, 1, 0], [], []>} : vector<16x32xf32>, vector<32x32xf32>, vector<16x32xf32> -> vector<16x32xf32>
    %28 = vector.extract_strided_slice %26 {offsets = [0, 0], sizes = [1, 32], strides = [1, 1]} : vector<4x32xf32> to vector<1x32xf32>
    %29 = vector.broadcast %28 : vector<1x32xf32> to vector<16x32xf32>
    %30 = arith.addf %27, %29 : vector<16x32xf32>
    %cst_21 = arith.constant dense<0.000000e+00> : vector<16x32xf32>
    %31 = tpu.matmul %0, %23, %cst_21 {dimension_numbers = #tpu.dot_dimension_numbers<[1], [1], [0], [0], [0, 0, 1, 0], [], []>} : vector<16x32xf32>, vector<32x32xf32>, vector<16x32xf32> -> vector<16x32xf32>
    %32 = vector.extract_strided_slice %26 {offsets = [1, 0], sizes = [1, 32], strides = [1, 1]} : vector<4x32xf32> to vector<1x32xf32>
    %33 = vector.broadcast %32 : vector<1x32xf32> to vector<16x32xf32>
    %34 = arith.addf %31, %33 : vector<16x32xf32>
    %cst_22 = arith.constant dense<0.000000e+00> : vector<16x32xf32>
    %35 = tpu.matmul %0, %24, %cst_22 {dimension_numbers = #tpu.dot_dimension_numbers<[1], [1], [0], [0], [0, 0, 1, 0], [], []>} : vector<16x32xf32>, vector<32x32xf32>, vector<16x32xf32> -> vector<16x32xf32>
    %36 = vector.extract_strided_slice %26 {offsets = [2, 0], sizes = [1, 32], strides = [1, 1]} : vector<4x32xf32> to vector<1x32xf32>
    %37 = vector.broadcast %36 : vector<1x32xf32> to vector<16x32xf32>
    %38 = arith.addf %35, %37 : vector<16x32xf32>
    %39 = tpu.concatenate %30, %30, %30, %30 in 0 : vector<16x32xf32>, vector<16x32xf32>, vector<16x32xf32>, vector<16x32xf32> -> vector<64x32xf32>
    %40 = arith.mulf %39, %12 : vector<64x32xf32>
    %cst_23 = arith.constant dense<0.000000e+00> : vector<64x16xf32>
    %41 = tpu.matmul %40, %34, %cst_23 {dimension_numbers = #tpu.dot_dimension_numbers<[1], [1], [0], [0], [0, 0, 1, 0], [], []>} : vector<64x32xf32>, vector<16x32xf32>, vector<64x16xf32> -> vector<64x16xf32>
    %cst_24 = arith.constant 0.353553385 : f32
    %42 = vector.broadcast %cst_24 : f32 to vector<64x16xf32>
    %43 = arith.mulf %41, %42 : vector<64x16xf32>
    %44 = math.exp %43 : vector<64x16xf32>
    %45 = arith.mulf %44, %15 : vector<64x16xf32>
    %cst_25 = arith.constant dense<0.000000e+00> : vector<64xf32>
    %46 = vector.multi_reduction <add>, %45, %cst_25 [1] : vector<64x16xf32> to vector<64xf32>
    %47 = vector.shape_cast %46 : vector<64xf32> to vector<64x1xf32>
    %48 = tpu.reciprocal %47 : vector<64x1xf32> -> vector<64x1xf32>
    %49 = vector.broadcast %48 : vector<64x1xf32> to vector<64x16xf32>
    %50 = arith.mulf %45, %49 : vector<64x16xf32>
    %cst_26 = arith.constant dense<0.000000e+00> : vector<64x32xf32>
    %51 = tpu.matmul %50, %38, %cst_26 {dimension_numbers = #tpu.dot_dimension_numbers<[1], [0], [0], [1], [0, 0, 1, 1], [], []>} : vector<64x16xf32>, vector<16x32xf32>, vector<64x32xf32> -> vector<64x32xf32>
    %52 = arith.mulf %51, %12 : vector<64x32xf32>
    %53 = vector.extract_strided_slice %52 {offsets = [0, 0], sizes = [16, 32], strides = [1, 1]} : vector<64x32xf32> to vector<16x32xf32>
    %54 = vector.extract_strided_slice %52 {offsets = [16, 0], sizes = [16, 32], strides = [1, 1]} : vector<64x32xf32> to vector<16x32xf32>
    %55 = vector.extract_strided_slice %52 {offsets = [32, 0], sizes = [16, 32], strides = [1, 1]} : vector<64x32xf32> to vector<16x32xf32>
    %56 = vector.extract_strided_slice %52 {offsets = [48, 0], sizes = [16, 32], strides = [1, 1]} : vector<64x32xf32> to vector<16x32xf32>
    %57 = arith.addf %53, %54 : vector<16x32xf32>
    %58 = arith.addf %55, %56 : vector<16x32xf32>
    %59 = arith.addf %57, %58 : vector<16x32xf32>
    %cst_27 = arith.constant dense<0.000000e+00> : vector<16x32xf32>
    %60 = tpu.matmul %59, %25, %cst_27 {dimension_numbers = #tpu.dot_dimension_numbers<[1], [1], [0], [0], [0, 0, 1, 0], [], []>} : vector<16x32xf32>, vector<32x32xf32>, vector<16x32xf32> -> vector<16x32xf32>
    %61 = vector.extract_strided_slice %26 {offsets = [3, 0], sizes = [1, 32], strides = [1, 1]} : vector<4x32xf32> to vector<1x32xf32>
    %62 = vector.broadcast %61 : vector<1x32xf32> to vector<16x32xf32>
    %63 = arith.addf %60, %62 : vector<16x32xf32>
    %64 = arith.addf %0, %63 : vector<16x32xf32>
    %c1264 = arith.constant 1264 : index
    %c0_28 = arith.constant 0 : index
    %65 = vector.load %arg2[%c1264, %c0_28] : memref<1312x32xf32, #tpu.memory_space<vmem>>, vector<2x32xf32>
    %cst_29 = arith.constant dense<0.000000e+00> : vector<16xf32>
    %66 = vector.multi_reduction <add>, %64, %cst_29 [1] : vector<16x32xf32> to vector<16xf32>
    %67 = vector.shape_cast %66 : vector<16xf32> to vector<16x1xf32>
    %cst_30 = arith.constant 3.125000e-02 : f32
    %68 = vector.broadcast %cst_30 : f32 to vector<16x1xf32>
    %69 = arith.mulf %67, %68 : vector<16x1xf32>
    %70 = arith.mulf %64, %64 : vector<16x32xf32>
    %cst_31 = arith.constant dense<0.000000e+00> : vector<16xf32>
    %71 = vector.multi_reduction <add>, %70, %cst_31 [1] : vector<16x32xf32> to vector<16xf32>
    %72 = vector.shape_cast %71 : vector<16xf32> to vector<16x1xf32>
    %cst_32 = arith.constant 3.125000e-02 : f32
    %73 = vector.broadcast %cst_32 : f32 to vector<16x1xf32>
    %74 = arith.mulf %72, %73 : vector<16x1xf32>
    %75 = arith.mulf %69, %69 : vector<16x1xf32>
    %76 = arith.subf %74, %75 : vector<16x1xf32>
    %77 = vector.broadcast %69 : vector<16x1xf32> to vector<16x32xf32>
    %78 = arith.subf %64, %77 : vector<16x32xf32>
    %cst_33 = arith.constant 9.99999974E-6 : f32
    %79 = vector.broadcast %cst_33 : f32 to vector<16x1xf32>
    %80 = arith.addf %76, %79 : vector<16x1xf32>
    %81 = math.rsqrt %80 : vector<16x1xf32>
    %82 = vector.broadcast %81 : vector<16x1xf32> to vector<16x32xf32>
    %83 = arith.mulf %78, %82 : vector<16x32xf32>
    %84 = vector.extract_strided_slice %65 {offsets = [0, 0], sizes = [1, 32], strides = [1, 1]} : vector<2x32xf32> to vector<1x32xf32>
    %85 = vector.broadcast %84 : vector<1x32xf32> to vector<16x32xf32>
    %86 = arith.mulf %83, %85 : vector<16x32xf32>
    %87 = vector.extract_strided_slice %65 {offsets = [1, 0], sizes = [1, 32], strides = [1, 1]} : vector<2x32xf32> to vector<1x32xf32>
    %88 = vector.broadcast %87 : vector<1x32xf32> to vector<16x32xf32>
    %89 = arith.addf %86, %88 : vector<16x32xf32>
    %c584 = arith.constant 584 : index
    %c0_34 = arith.constant 0 : index
    %90 = vector.load %arg2[%c584, %c0_34] : memref<1312x32xf32, #tpu.memory_space<vmem>>, vector<32x32xf32>
    %c616 = arith.constant 616 : index
    %c0_35 = arith.constant 0 : index
    %91 = vector.load %arg2[%c616, %c0_35] : memref<1312x32xf32, #tpu.memory_space<vmem>>, vector<32x32xf32>
    %c648 = arith.constant 648 : index
    %c0_36 = arith.constant 0 : index
    %92 = vector.load %arg2[%c648, %c0_36] : memref<1312x32xf32, #tpu.memory_space<vmem>>, vector<32x32xf32>
    %c680 = arith.constant 680 : index
    %c0_37 = arith.constant 0 : index
    %93 = vector.load %arg2[%c680, %c0_37] : memref<1312x32xf32, #tpu.memory_space<vmem>>, vector<32x32xf32>
    %c712 = arith.constant 712 : index
    %c0_38 = arith.constant 0 : index
    %94 = vector.load %arg2[%c712, %c0_38] : memref<1312x32xf32, #tpu.memory_space<vmem>>, vector<4x32xf32>
    %cst_39 = arith.constant dense<0.000000e+00> : vector<8x32xf32>
    %95 = tpu.matmul %11, %90, %cst_39 {dimension_numbers = #tpu.dot_dimension_numbers<[1], [1], [0], [0], [0, 0, 1, 0], [], []>} : vector<8x32xf32>, vector<32x32xf32>, vector<8x32xf32> -> vector<8x32xf32>
    %96 = vector.extract_strided_slice %94 {offsets = [0, 0], sizes = [1, 32], strides = [1, 1]} : vector<4x32xf32> to vector<1x32xf32>
    %97 = vector.broadcast %96 : vector<1x32xf32> to vector<8x32xf32>
    %98 = arith.addf %95, %97 : vector<8x32xf32>
    %cst_40 = arith.constant dense<0.000000e+00> : vector<8x32xf32>
    %99 = tpu.matmul %11, %91, %cst_40 {dimension_numbers = #tpu.dot_dimension_numbers<[1], [1], [0], [0], [0, 0, 1, 0], [], []>} : vector<8x32xf32>, vector<32x32xf32>, vector<8x32xf32> -> vector<8x32xf32>
    %100 = vector.extract_strided_slice %94 {offsets = [1, 0], sizes = [1, 32], strides = [1, 1]} : vector<4x32xf32> to vector<1x32xf32>
    %101 = vector.broadcast %100 : vector<1x32xf32> to vector<8x32xf32>
    %102 = arith.addf %99, %101 : vector<8x32xf32>
    %cst_41 = arith.constant dense<0.000000e+00> : vector<8x32xf32>
    %103 = tpu.matmul %11, %92, %cst_41 {dimension_numbers = #tpu.dot_dimension_numbers<[1], [1], [0], [0], [0, 0, 1, 0], [], []>} : vector<8x32xf32>, vector<32x32xf32>, vector<8x32xf32> -> vector<8x32xf32>
    %104 = vector.extract_strided_slice %94 {offsets = [2, 0], sizes = [1, 32], strides = [1, 1]} : vector<4x32xf32> to vector<1x32xf32>
    %105 = vector.broadcast %104 : vector<1x32xf32> to vector<8x32xf32>
    %106 = arith.addf %103, %105 : vector<8x32xf32>
    %107 = tpu.concatenate %98, %98, %98, %98 in 0 : vector<8x32xf32>, vector<8x32xf32>, vector<8x32xf32>, vector<8x32xf32> -> vector<32x32xf32>
    %108 = arith.mulf %107, %13 : vector<32x32xf32>
    %cst_42 = arith.constant dense<0.000000e+00> : vector<32x8xf32>
    %109 = tpu.matmul %108, %102, %cst_42 {dimension_numbers = #tpu.dot_dimension_numbers<[1], [1], [0], [0], [0, 0, 1, 0], [], []>} : vector<32x32xf32>, vector<8x32xf32>, vector<32x8xf32> -> vector<32x8xf32>
    %cst_43 = arith.constant 0.353553385 : f32
    %110 = vector.broadcast %cst_43 : f32 to vector<32x8xf32>
    %111 = arith.mulf %109, %110 : vector<32x8xf32>
    %112 = math.exp %111 : vector<32x8xf32>
    %113 = arith.mulf %112, %17 : vector<32x8xf32>
    %cst_44 = arith.constant dense<0.000000e+00> : vector<32xf32>
    %114 = vector.multi_reduction <add>, %113, %cst_44 [1] : vector<32x8xf32> to vector<32xf32>
    %115 = vector.shape_cast %114 : vector<32xf32> to vector<32x1xf32>
    %116 = tpu.reciprocal %115 : vector<32x1xf32> -> vector<32x1xf32>
    %117 = vector.broadcast %116 : vector<32x1xf32> to vector<32x8xf32>
    %118 = arith.mulf %113, %117 : vector<32x8xf32>
    %cst_45 = arith.constant dense<0.000000e+00> : vector<32x32xf32>
    %119 = tpu.matmul %118, %106, %cst_45 {dimension_numbers = #tpu.dot_dimension_numbers<[1], [0], [0], [1], [0, 0, 1, 1], [], []>} : vector<32x8xf32>, vector<8x32xf32>, vector<32x32xf32> -> vector<32x32xf32>
    %120 = arith.mulf %119, %13 : vector<32x32xf32>
    %121 = vector.extract_strided_slice %120 {offsets = [0, 0], sizes = [8, 32], strides = [1, 1]} : vector<32x32xf32> to vector<8x32xf32>
    %122 = vector.extract_strided_slice %120 {offsets = [8, 0], sizes = [8, 32], strides = [1, 1]} : vector<32x32xf32> to vector<8x32xf32>
    %123 = vector.extract_strided_slice %120 {offsets = [16, 0], sizes = [8, 32], strides = [1, 1]} : vector<32x32xf32> to vector<8x32xf32>
    %124 = vector.extract_strided_slice %120 {offsets = [24, 0], sizes = [8, 32], strides = [1, 1]} : vector<32x32xf32> to vector<8x32xf32>
    %125 = arith.addf %121, %122 : vector<8x32xf32>
    %126 = arith.addf %123, %124 : vector<8x32xf32>
    %127 = arith.addf %125, %126 : vector<8x32xf32>
    %cst_46 = arith.constant dense<0.000000e+00> : vector<8x32xf32>
    %128 = tpu.matmul %127, %93, %cst_46 {dimension_numbers = #tpu.dot_dimension_numbers<[1], [1], [0], [0], [0, 0, 1, 0], [], []>} : vector<8x32xf32>, vector<32x32xf32>, vector<8x32xf32> -> vector<8x32xf32>
    %129 = vector.extract_strided_slice %94 {offsets = [3, 0], sizes = [1, 32], strides = [1, 1]} : vector<4x32xf32> to vector<1x32xf32>
    %130 = vector.broadcast %129 : vector<1x32xf32> to vector<8x32xf32>
    %131 = arith.addf %128, %130 : vector<8x32xf32>
    %132 = arith.addf %11, %131 : vector<8x32xf32>
    %c1272 = arith.constant 1272 : index
    %c0_47 = arith.constant 0 : index
    %133 = vector.load %arg2[%c1272, %c0_47] : memref<1312x32xf32, #tpu.memory_space<vmem>>, vector<2x32xf32>
    %cst_48 = arith.constant dense<0.000000e+00> : vector<8xf32>
    %134 = vector.multi_reduction <add>, %132, %cst_48 [1] : vector<8x32xf32> to vector<8xf32>
    %135 = vector.shape_cast %134 : vector<8xf32> to vector<8x1xf32>
    %cst_49 = arith.constant 3.125000e-02 : f32
    %136 = vector.broadcast %cst_49 : f32 to vector<8x1xf32>
    %137 = arith.mulf %135, %136 : vector<8x1xf32>
    %138 = arith.mulf %132, %132 : vector<8x32xf32>
    %cst_50 = arith.constant dense<0.000000e+00> : vector<8xf32>
    %139 = vector.multi_reduction <add>, %138, %cst_50 [1] : vector<8x32xf32> to vector<8xf32>
    %140 = vector.shape_cast %139 : vector<8xf32> to vector<8x1xf32>
    %cst_51 = arith.constant 3.125000e-02 : f32
    %141 = vector.broadcast %cst_51 : f32 to vector<8x1xf32>
    %142 = arith.mulf %140, %141 : vector<8x1xf32>
    %143 = arith.mulf %137, %137 : vector<8x1xf32>
    %144 = arith.subf %142, %143 : vector<8x1xf32>
    %145 = vector.broadcast %137 : vector<8x1xf32> to vector<8x32xf32>
    %146 = arith.subf %132, %145 : vector<8x32xf32>
    %cst_52 = arith.constant 9.99999974E-6 : f32
    %147 = vector.broadcast %cst_52 : f32 to vector<8x1xf32>
    %148 = arith.addf %144, %147 : vector<8x1xf32>
    %149 = math.rsqrt %148 : vector<8x1xf32>
    %150 = vector.broadcast %149 : vector<8x1xf32> to vector<8x32xf32>
    %151 = arith.mulf %146, %150 : vector<8x32xf32>
    %152 = vector.extract_strided_slice %133 {offsets = [0, 0], sizes = [1, 32], strides = [1, 1]} : vector<2x32xf32> to vector<1x32xf32>
    %153 = vector.broadcast %152 : vector<1x32xf32> to vector<8x32xf32>
    %154 = arith.mulf %151, %153 : vector<8x32xf32>
    %155 = vector.extract_strided_slice %133 {offsets = [1, 0], sizes = [1, 32], strides = [1, 1]} : vector<2x32xf32> to vector<1x32xf32>
    %156 = vector.broadcast %155 : vector<1x32xf32> to vector<8x32xf32>
    %157 = arith.addf %154, %156 : vector<8x32xf32>
    %c720 = arith.constant 720 : index
    %c0_53 = arith.constant 0 : index
    %158 = vector.load %arg2[%c720, %c0_53] : memref<1312x32xf32, #tpu.memory_space<vmem>>, vector<32x32xf32>
    %c752 = arith.constant 752 : index
    %c0_54 = arith.constant 0 : index
    %159 = vector.load %arg2[%c752, %c0_54] : memref<1312x32xf32, #tpu.memory_space<vmem>>, vector<32x32xf32>
    %c784 = arith.constant 784 : index
    %c0_55 = arith.constant 0 : index
    %160 = vector.load %arg2[%c784, %c0_55] : memref<1312x32xf32, #tpu.memory_space<vmem>>, vector<32x32xf32>
    %c816 = arith.constant 816 : index
    %c0_56 = arith.constant 0 : index
    %161 = vector.load %arg2[%c816, %c0_56] : memref<1312x32xf32, #tpu.memory_space<vmem>>, vector<32x32xf32>
    %c848 = arith.constant 848 : index
    %c0_57 = arith.constant 0 : index
    %162 = vector.load %arg2[%c848, %c0_57] : memref<1312x32xf32, #tpu.memory_space<vmem>>, vector<4x32xf32>
    %cst_58 = arith.constant dense<0.000000e+00> : vector<16x32xf32>
    %163 = tpu.matmul %89, %158, %cst_58 {dimension_numbers = #tpu.dot_dimension_numbers<[1], [1], [0], [0], [0, 0, 1, 0], [], []>} : vector<16x32xf32>, vector<32x32xf32>, vector<16x32xf32> -> vector<16x32xf32>
    %164 = vector.extract_strided_slice %162 {offsets = [0, 0], sizes = [1, 32], strides = [1, 1]} : vector<4x32xf32> to vector<1x32xf32>
    %165 = vector.broadcast %164 : vector<1x32xf32> to vector<16x32xf32>
    %166 = arith.addf %163, %165 : vector<16x32xf32>
    %cst_59 = arith.constant dense<0.000000e+00> : vector<8x32xf32>
    %167 = tpu.matmul %157, %159, %cst_59 {dimension_numbers = #tpu.dot_dimension_numbers<[1], [1], [0], [0], [0, 0, 1, 0], [], []>} : vector<8x32xf32>, vector<32x32xf32>, vector<8x32xf32> -> vector<8x32xf32>
    %168 = vector.extract_strided_slice %162 {offsets = [1, 0], sizes = [1, 32], strides = [1, 1]} : vector<4x32xf32> to vector<1x32xf32>
    %169 = vector.broadcast %168 : vector<1x32xf32> to vector<8x32xf32>
    %170 = arith.addf %167, %169 : vector<8x32xf32>
    %cst_60 = arith.constant dense<0.000000e+00> : vector<8x32xf32>
    %171 = tpu.matmul %157, %160, %cst_60 {dimension_numbers = #tpu.dot_dimension_numbers<[1], [1], [0], [0], [0, 0, 1, 0], [], []>} : vector<8x32xf32>, vector<32x32xf32>, vector<8x32xf32> -> vector<8x32xf32>
    %172 = vector.extract_strided_slice %162 {offsets = [2, 0], sizes = [1, 32], strides = [1, 1]} : vector<4x32xf32> to vector<1x32xf32>
    %173 = vector.broadcast %172 : vector<1x32xf32> to vector<8x32xf32>
    %174 = arith.addf %171, %173 : vector<8x32xf32>
    %175 = tpu.concatenate %166, %166, %166, %166 in 0 : vector<16x32xf32>, vector<16x32xf32>, vector<16x32xf32>, vector<16x32xf32> -> vector<64x32xf32>
    %176 = arith.mulf %175, %12 : vector<64x32xf32>
    %cst_61 = arith.constant dense<0.000000e+00> : vector<64x8xf32>
    %177 = tpu.matmul %176, %170, %cst_61 {dimension_numbers = #tpu.dot_dimension_numbers<[1], [1], [0], [0], [0, 0, 1, 0], [], []>} : vector<64x32xf32>, vector<8x32xf32>, vector<64x8xf32> -> vector<64x8xf32>
    %cst_62 = arith.constant 0.353553385 : f32
    %178 = vector.broadcast %cst_62 : f32 to vector<64x8xf32>
    %179 = arith.mulf %177, %178 : vector<64x8xf32>
    %180 = math.exp %179 : vector<64x8xf32>
    %181 = arith.mulf %180, %19 : vector<64x8xf32>
    %cst_63 = arith.constant dense<0.000000e+00> : vector<64xf32>
    %182 = vector.multi_reduction <add>, %181, %cst_63 [1] : vector<64x8xf32> to vector<64xf32>
    %183 = vector.shape_cast %182 : vector<64xf32> to vector<64x1xf32>
    %184 = tpu.reciprocal %183 : vector<64x1xf32> -> vector<64x1xf32>
    %185 = vector.broadcast %184 : vector<64x1xf32> to vector<64x8xf32>
    %186 = arith.mulf %181, %185 : vector<64x8xf32>
    %cst_64 = arith.constant dense<0.000000e+00> : vector<64x32xf32>
    %187 = tpu.matmul %186, %174, %cst_64 {dimension_numbers = #tpu.dot_dimension_numbers<[1], [0], [0], [1], [0, 0, 1, 1], [], []>} : vector<64x8xf32>, vector<8x32xf32>, vector<64x32xf32> -> vector<64x32xf32>
    %188 = arith.mulf %187, %12 : vector<64x32xf32>
    %189 = vector.extract_strided_slice %188 {offsets = [0, 0], sizes = [16, 32], strides = [1, 1]} : vector<64x32xf32> to vector<16x32xf32>
    %190 = vector.extract_strided_slice %188 {offsets = [16, 0], sizes = [16, 32], strides = [1, 1]} : vector<64x32xf32> to vector<16x32xf32>
    %191 = vector.extract_strided_slice %188 {offsets = [32, 0], sizes = [16, 32], strides = [1, 1]} : vector<64x32xf32> to vector<16x32xf32>
    %192 = vector.extract_strided_slice %188 {offsets = [48, 0], sizes = [16, 32], strides = [1, 1]} : vector<64x32xf32> to vector<16x32xf32>
    %193 = arith.addf %189, %190 : vector<16x32xf32>
    %194 = arith.addf %191, %192 : vector<16x32xf32>
    %195 = arith.addf %193, %194 : vector<16x32xf32>
    %cst_65 = arith.constant dense<0.000000e+00> : vector<16x32xf32>
    %196 = tpu.matmul %195, %161, %cst_65 {dimension_numbers = #tpu.dot_dimension_numbers<[1], [1], [0], [0], [0, 0, 1, 0], [], []>} : vector<16x32xf32>, vector<32x32xf32>, vector<16x32xf32> -> vector<16x32xf32>
    %197 = vector.extract_strided_slice %162 {offsets = [3, 0], sizes = [1, 32], strides = [1, 1]} : vector<4x32xf32> to vector<1x32xf32>
    %198 = vector.broadcast %197 : vector<1x32xf32> to vector<16x32xf32>
    %199 = arith.addf %196, %198 : vector<16x32xf32>
    %200 = arith.addf %89, %199 : vector<16x32xf32>
    %c1280 = arith.constant 1280 : index
    %c0_66 = arith.constant 0 : index
    %201 = vector.load %arg2[%c1280, %c0_66] : memref<1312x32xf32, #tpu.memory_space<vmem>>, vector<2x32xf32>
    %cst_67 = arith.constant dense<0.000000e+00> : vector<16xf32>
    %202 = vector.multi_reduction <add>, %200, %cst_67 [1] : vector<16x32xf32> to vector<16xf32>
    %203 = vector.shape_cast %202 : vector<16xf32> to vector<16x1xf32>
    %cst_68 = arith.constant 3.125000e-02 : f32
    %204 = vector.broadcast %cst_68 : f32 to vector<16x1xf32>
    %205 = arith.mulf %203, %204 : vector<16x1xf32>
    %206 = arith.mulf %200, %200 : vector<16x32xf32>
    %cst_69 = arith.constant dense<0.000000e+00> : vector<16xf32>
    %207 = vector.multi_reduction <add>, %206, %cst_69 [1] : vector<16x32xf32> to vector<16xf32>
    %208 = vector.shape_cast %207 : vector<16xf32> to vector<16x1xf32>
    %cst_70 = arith.constant 3.125000e-02 : f32
    %209 = vector.broadcast %cst_70 : f32 to vector<16x1xf32>
    %210 = arith.mulf %208, %209 : vector<16x1xf32>
    %211 = arith.mulf %205, %205 : vector<16x1xf32>
    %212 = arith.subf %210, %211 : vector<16x1xf32>
    %213 = vector.broadcast %205 : vector<16x1xf32> to vector<16x32xf32>
    %214 = arith.subf %200, %213 : vector<16x32xf32>
    %cst_71 = arith.constant 9.99999974E-6 : f32
    %215 = vector.broadcast %cst_71 : f32 to vector<16x1xf32>
    %216 = arith.addf %212, %215 : vector<16x1xf32>
    %217 = math.rsqrt %216 : vector<16x1xf32>
    %218 = vector.broadcast %217 : vector<16x1xf32> to vector<16x32xf32>
    %219 = arith.mulf %214, %218 : vector<16x32xf32>
    %220 = vector.extract_strided_slice %201 {offsets = [0, 0], sizes = [1, 32], strides = [1, 1]} : vector<2x32xf32> to vector<1x32xf32>
    %221 = vector.broadcast %220 : vector<1x32xf32> to vector<16x32xf32>
    %222 = arith.mulf %219, %221 : vector<16x32xf32>
    %223 = vector.extract_strided_slice %201 {offsets = [1, 0], sizes = [1, 32], strides = [1, 1]} : vector<2x32xf32> to vector<1x32xf32>
    %224 = vector.broadcast %223 : vector<1x32xf32> to vector<16x32xf32>
    %225 = arith.addf %222, %224 : vector<16x32xf32>
    %c856 = arith.constant 856 : index
    %c0_72 = arith.constant 0 : index
    %226 = vector.load %arg2[%c856, %c0_72] : memref<1312x32xf32, #tpu.memory_space<vmem>>, vector<32x32xf32>
    %c888 = arith.constant 888 : index
    %c0_73 = arith.constant 0 : index
    %227 = vector.load %arg2[%c888, %c0_73] : memref<1312x32xf32, #tpu.memory_space<vmem>>, vector<32x32xf32>
    %c920 = arith.constant 920 : index
    %c0_74 = arith.constant 0 : index
    %228 = vector.load %arg2[%c920, %c0_74] : memref<1312x32xf32, #tpu.memory_space<vmem>>, vector<32x32xf32>
    %c952 = arith.constant 952 : index
    %c0_75 = arith.constant 0 : index
    %229 = vector.load %arg2[%c952, %c0_75] : memref<1312x32xf32, #tpu.memory_space<vmem>>, vector<32x32xf32>
    %c984 = arith.constant 984 : index
    %c0_76 = arith.constant 0 : index
    %230 = vector.load %arg2[%c984, %c0_76] : memref<1312x32xf32, #tpu.memory_space<vmem>>, vector<4x32xf32>
    %cst_77 = arith.constant dense<0.000000e+00> : vector<8x32xf32>
    %231 = tpu.matmul %157, %226, %cst_77 {dimension_numbers = #tpu.dot_dimension_numbers<[1], [1], [0], [0], [0, 0, 1, 0], [], []>} : vector<8x32xf32>, vector<32x32xf32>, vector<8x32xf32> -> vector<8x32xf32>
    %232 = vector.extract_strided_slice %230 {offsets = [0, 0], sizes = [1, 32], strides = [1, 1]} : vector<4x32xf32> to vector<1x32xf32>
    %233 = vector.broadcast %232 : vector<1x32xf32> to vector<8x32xf32>
    %234 = arith.addf %231, %233 : vector<8x32xf32>
    %cst_78 = arith.constant dense<0.000000e+00> : vector<16x32xf32>
    %235 = tpu.matmul %225, %227, %cst_78 {dimension_numbers = #tpu.dot_dimension_numbers<[1], [1], [0], [0], [0, 0, 1, 0], [], []>} : vector<16x32xf32>, vector<32x32xf32>, vector<16x32xf32> -> vector<16x32xf32>
    %236 = vector.extract_strided_slice %230 {offsets = [1, 0], sizes = [1, 32], strides = [1, 1]} : vector<4x32xf32> to vector<1x32xf32>
    %237 = vector.broadcast %236 : vector<1x32xf32> to vector<16x32xf32>
    %238 = arith.addf %235, %237 : vector<16x32xf32>
    %cst_79 = arith.constant dense<0.000000e+00> : vector<16x32xf32>
    %239 = tpu.matmul %225, %228, %cst_79 {dimension_numbers = #tpu.dot_dimension_numbers<[1], [1], [0], [0], [0, 0, 1, 0], [], []>} : vector<16x32xf32>, vector<32x32xf32>, vector<16x32xf32> -> vector<16x32xf32>
    %240 = vector.extract_strided_slice %230 {offsets = [2, 0], sizes = [1, 32], strides = [1, 1]} : vector<4x32xf32> to vector<1x32xf32>
    %241 = vector.broadcast %240 : vector<1x32xf32> to vector<16x32xf32>
    %242 = arith.addf %239, %241 : vector<16x32xf32>
    %243 = tpu.concatenate %234, %234, %234, %234 in 0 : vector<8x32xf32>, vector<8x32xf32>, vector<8x32xf32>, vector<8x32xf32> -> vector<32x32xf32>
    %244 = arith.mulf %243, %13 : vector<32x32xf32>
    %cst_80 = arith.constant dense<0.000000e+00> : vector<32x16xf32>
    %245 = tpu.matmul %244, %238, %cst_80 {dimension_numbers = #tpu.dot_dimension_numbers<[1], [1], [0], [0], [0, 0, 1, 0], [], []>} : vector<32x32xf32>, vector<16x32xf32>, vector<32x16xf32> -> vector<32x16xf32>
    %cst_81 = arith.constant 0.353553385 : f32
    %246 = vector.broadcast %cst_81 : f32 to vector<32x16xf32>
    %247 = arith.mulf %245, %246 : vector<32x16xf32>
    %248 = math.exp %247 : vector<32x16xf32>
    %249 = arith.mulf %248, %21 : vector<32x16xf32>
    %cst_82 = arith.constant dense<0.000000e+00> : vector<32xf32>
    %250 = vector.multi_reduction <add>, %249, %cst_82 [1] : vector<32x16xf32> to vector<32xf32>
    %251 = vector.shape_cast %250 : vector<32xf32> to vector<32x1xf32>
    %252 = tpu.reciprocal %251 : vector<32x1xf32> -> vector<32x1xf32>
    %253 = vector.broadcast %252 : vector<32x1xf32> to vector<32x16xf32>
    %254 = arith.mulf %249, %253 : vector<32x16xf32>
    %cst_83 = arith.constant dense<0.000000e+00> : vector<32x32xf32>
    %255 = tpu.matmul %254, %242, %cst_83 {dimension_numbers = #tpu.dot_dimension_numbers<[1], [0], [0], [1], [0, 0, 1, 1], [], []>} : vector<32x16xf32>, vector<16x32xf32>, vector<32x32xf32> -> vector<32x32xf32>
    %256 = arith.mulf %255, %13 : vector<32x32xf32>
    %257 = vector.extract_strided_slice %256 {offsets = [0, 0], sizes = [8, 32], strides = [1, 1]} : vector<32x32xf32> to vector<8x32xf32>
    %258 = vector.extract_strided_slice %256 {offsets = [8, 0], sizes = [8, 32], strides = [1, 1]} : vector<32x32xf32> to vector<8x32xf32>
    %259 = vector.extract_strided_slice %256 {offsets = [16, 0], sizes = [8, 32], strides = [1, 1]} : vector<32x32xf32> to vector<8x32xf32>
    %260 = vector.extract_strided_slice %256 {offsets = [24, 0], sizes = [8, 32], strides = [1, 1]} : vector<32x32xf32> to vector<8x32xf32>
    %261 = arith.addf %257, %258 : vector<8x32xf32>
    %262 = arith.addf %259, %260 : vector<8x32xf32>
    %263 = arith.addf %261, %262 : vector<8x32xf32>
    %cst_84 = arith.constant dense<0.000000e+00> : vector<8x32xf32>
    %264 = tpu.matmul %263, %229, %cst_84 {dimension_numbers = #tpu.dot_dimension_numbers<[1], [1], [0], [0], [0, 0, 1, 0], [], []>} : vector<8x32xf32>, vector<32x32xf32>, vector<8x32xf32> -> vector<8x32xf32>
    %265 = vector.extract_strided_slice %230 {offsets = [3, 0], sizes = [1, 32], strides = [1, 1]} : vector<4x32xf32> to vector<1x32xf32>
    %266 = vector.broadcast %265 : vector<1x32xf32> to vector<8x32xf32>
    %267 = arith.addf %264, %266 : vector<8x32xf32>
    %268 = arith.addf %157, %267 : vector<8x32xf32>
    %c1288 = arith.constant 1288 : index
    %c0_85 = arith.constant 0 : index
    %269 = vector.load %arg2[%c1288, %c0_85] : memref<1312x32xf32, #tpu.memory_space<vmem>>, vector<2x32xf32>
    %cst_86 = arith.constant dense<0.000000e+00> : vector<8xf32>
    %270 = vector.multi_reduction <add>, %268, %cst_86 [1] : vector<8x32xf32> to vector<8xf32>
    %271 = vector.shape_cast %270 : vector<8xf32> to vector<8x1xf32>
    %cst_87 = arith.constant 3.125000e-02 : f32
    %272 = vector.broadcast %cst_87 : f32 to vector<8x1xf32>
    %273 = arith.mulf %271, %272 : vector<8x1xf32>
    %274 = arith.mulf %268, %268 : vector<8x32xf32>
    %cst_88 = arith.constant dense<0.000000e+00> : vector<8xf32>
    %275 = vector.multi_reduction <add>, %274, %cst_88 [1] : vector<8x32xf32> to vector<8xf32>
    %276 = vector.shape_cast %275 : vector<8xf32> to vector<8x1xf32>
    %cst_89 = arith.constant 3.125000e-02 : f32
    %277 = vector.broadcast %cst_89 : f32 to vector<8x1xf32>
    %278 = arith.mulf %276, %277 : vector<8x1xf32>
    %279 = arith.mulf %273, %273 : vector<8x1xf32>
    %280 = arith.subf %278, %279 : vector<8x1xf32>
    %281 = vector.broadcast %273 : vector<8x1xf32> to vector<8x32xf32>
    %282 = arith.subf %268, %281 : vector<8x32xf32>
    %cst_90 = arith.constant 9.99999974E-6 : f32
    %283 = vector.broadcast %cst_90 : f32 to vector<8x1xf32>
    %284 = arith.addf %280, %283 : vector<8x1xf32>
    %285 = math.rsqrt %284 : vector<8x1xf32>
    %286 = vector.broadcast %285 : vector<8x1xf32> to vector<8x32xf32>
    %287 = arith.mulf %282, %286 : vector<8x32xf32>
    %288 = vector.extract_strided_slice %269 {offsets = [0, 0], sizes = [1, 32], strides = [1, 1]} : vector<2x32xf32> to vector<1x32xf32>
    %289 = vector.broadcast %288 : vector<1x32xf32> to vector<8x32xf32>
    %290 = arith.mulf %287, %289 : vector<8x32xf32>
    %291 = vector.extract_strided_slice %269 {offsets = [1, 0], sizes = [1, 32], strides = [1, 1]} : vector<2x32xf32> to vector<1x32xf32>
    %292 = vector.broadcast %291 : vector<1x32xf32> to vector<8x32xf32>
    %293 = arith.addf %290, %292 : vector<8x32xf32>
    %c992 = arith.constant 992 : index
    %c0_91 = arith.constant 0 : index
    %294 = vector.load %arg2[%c992, %c0_91] : memref<1312x32xf32, #tpu.memory_space<vmem>>, vector<64x32xf32>
    %c1056 = arith.constant 1056 : index
    %c0_92 = arith.constant 0 : index
    %295 = vector.load %arg2[%c1056, %c0_92] : memref<1312x32xf32, #tpu.memory_space<vmem>>, vector<64x32xf32>
    %c40 = arith.constant 40 : index
    %c0_93 = arith.constant 0 : index
    %296 = vector.load %arg3[%c40, %c0_93] : memref<56x128xf32, #tpu.memory_space<vmem>>, vector<1x128xf32>
    %297 = vector.extract_strided_slice %296 {offsets = [0, 0], sizes = [1, 64], strides = [1, 1]} : vector<1x128xf32> to vector<1x64xf32>
    %c1120 = arith.constant 1120 : index
    %c0_94 = arith.constant 0 : index
    %298 = vector.load %arg2[%c1120, %c0_94] : memref<1312x32xf32, #tpu.memory_space<vmem>>, vector<1x32xf32>
    %cst_95 = arith.constant dense<0.000000e+00> : vector<16x64xf32>
    %299 = tpu.matmul %225, %294, %cst_95 {dimension_numbers = #tpu.dot_dimension_numbers<[1], [1], [0], [0], [0, 0, 1, 0], [], []>} : vector<16x32xf32>, vector<64x32xf32>, vector<16x64xf32> -> vector<16x64xf32>
    %300 = vector.broadcast %297 : vector<1x64xf32> to vector<16x64xf32>
    %301 = arith.addf %299, %300 : vector<16x64xf32>
    %cst_96 = arith.constant 0.000000e+00 : f32
    %302 = vector.broadcast %cst_96 : f32 to vector<16x64xf32>
    %303 = arith.maximumf %301, %302 : vector<16x64xf32>
    %cst_97 = arith.constant dense<0.000000e+00> : vector<16x32xf32>
    %304 = tpu.matmul %303, %295, %cst_97 {dimension_numbers = #tpu.dot_dimension_numbers<[1], [0], [0], [1], [0, 0, 1, 1], [], []>} : vector<16x64xf32>, vector<64x32xf32>, vector<16x32xf32> -> vector<16x32xf32>
    %305 = vector.broadcast %298 : vector<1x32xf32> to vector<16x32xf32>
    %306 = arith.addf %304, %305 : vector<16x32xf32>
    %307 = arith.addf %225, %306 : vector<16x32xf32>
    %c1296 = arith.constant 1296 : index
    %c0_98 = arith.constant 0 : index
    %308 = vector.load %arg2[%c1296, %c0_98] : memref<1312x32xf32, #tpu.memory_space<vmem>>, vector<2x32xf32>
    %cst_99 = arith.constant dense<0.000000e+00> : vector<16xf32>
    %309 = vector.multi_reduction <add>, %307, %cst_99 [1] : vector<16x32xf32> to vector<16xf32>
    %310 = vector.shape_cast %309 : vector<16xf32> to vector<16x1xf32>
    %cst_100 = arith.constant 3.125000e-02 : f32
    %311 = vector.broadcast %cst_100 : f32 to vector<16x1xf32>
    %312 = arith.mulf %310, %311 : vector<16x1xf32>
    %313 = arith.mulf %307, %307 : vector<16x32xf32>
    %cst_101 = arith.constant dense<0.000000e+00> : vector<16xf32>
    %314 = vector.multi_reduction <add>, %313, %cst_101 [1] : vector<16x32xf32> to vector<16xf32>
    %315 = vector.shape_cast %314 : vector<16xf32> to vector<16x1xf32>
    %cst_102 = arith.constant 3.125000e-02 : f32
    %316 = vector.broadcast %cst_102 : f32 to vector<16x1xf32>
    %317 = arith.mulf %315, %316 : vector<16x1xf32>
    %318 = arith.mulf %312, %312 : vector<16x1xf32>
    %319 = arith.subf %317, %318 : vector<16x1xf32>
    %320 = vector.broadcast %312 : vector<16x1xf32> to vector<16x32xf32>
    %321 = arith.subf %307, %320 : vector<16x32xf32>
    %cst_103 = arith.constant 9.99999974E-6 : f32
    %322 = vector.broadcast %cst_103 : f32 to vector<16x1xf32>
    %323 = arith.addf %319, %322 : vector<16x1xf32>
    %324 = math.rsqrt %323 : vector<16x1xf32>
    %325 = vector.broadcast %324 : vector<16x1xf32> to vector<16x32xf32>
    %326 = arith.mulf %321, %325 : vector<16x32xf32>
    %327 = vector.extract_strided_slice %308 {offsets = [0, 0], sizes = [1, 32], strides = [1, 1]} : vector<2x32xf32> to vector<1x32xf32>
    %328 = vector.broadcast %327 : vector<1x32xf32> to vector<16x32xf32>
    %329 = arith.mulf %326, %328 : vector<16x32xf32>
    %330 = vector.extract_strided_slice %308 {offsets = [1, 0], sizes = [1, 32], strides = [1, 1]} : vector<2x32xf32> to vector<1x32xf32>
    %331 = vector.broadcast %330 : vector<1x32xf32> to vector<16x32xf32>
    %332 = arith.addf %329, %331 : vector<16x32xf32>
    %c1128 = arith.constant 1128 : index
    %c0_104 = arith.constant 0 : index
    %333 = vector.load %arg2[%c1128, %c0_104] : memref<1312x32xf32, #tpu.memory_space<vmem>>, vector<64x32xf32>
    %c1192 = arith.constant 1192 : index
    %c0_105 = arith.constant 0 : index
    %334 = vector.load %arg2[%c1192, %c0_105] : memref<1312x32xf32, #tpu.memory_space<vmem>>, vector<64x32xf32>
    %c48 = arith.constant 48 : index
    %c0_106 = arith.constant 0 : index
    %335 = vector.load %arg3[%c48, %c0_106] : memref<56x128xf32, #tpu.memory_space<vmem>>, vector<1x128xf32>
    %336 = vector.extract_strided_slice %335 {offsets = [0, 0], sizes = [1, 64], strides = [1, 1]} : vector<1x128xf32> to vector<1x64xf32>
    %c1256 = arith.constant 1256 : index
    %c0_107 = arith.constant 0 : index
    %337 = vector.load %arg2[%c1256, %c0_107] : memref<1312x32xf32, #tpu.memory_space<vmem>>, vector<1x32xf32>
    %cst_108 = arith.constant dense<0.000000e+00> : vector<8x64xf32>
    %338 = tpu.matmul %293, %333, %cst_108 {dimension_numbers = #tpu.dot_dimension_numbers<[1], [1], [0], [0], [0, 0, 1, 0], [], []>} : vector<8x32xf32>, vector<64x32xf32>, vector<8x64xf32> -> vector<8x64xf32>
    %339 = vector.broadcast %336 : vector<1x64xf32> to vector<8x64xf32>
    %340 = arith.addf %338, %339 : vector<8x64xf32>
    %cst_109 = arith.constant 0.000000e+00 : f32
    %341 = vector.broadcast %cst_109 : f32 to vector<8x64xf32>
    %342 = arith.maximumf %340, %341 : vector<8x64xf32>
    %cst_110 = arith.constant dense<0.000000e+00> : vector<8x32xf32>
    %343 = tpu.matmul %342, %334, %cst_110 {dimension_numbers = #tpu.dot_dimension_numbers<[1], [0], [0], [1], [0, 0, 1, 1], [], []>} : vector<8x64xf32>, vector<64x32xf32>, vector<8x32xf32> -> vector<8x32xf32>
    %344 = vector.broadcast %337 : vector<1x32xf32> to vector<8x32xf32>
    %345 = arith.addf %343, %344 : vector<8x32xf32>
    %346 = arith.addf %293, %345 : vector<8x32xf32>
    %c1304 = arith.constant 1304 : index
    %c0_111 = arith.constant 0 : index
    %347 = vector.load %arg2[%c1304, %c0_111] : memref<1312x32xf32, #tpu.memory_space<vmem>>, vector<2x32xf32>
    %cst_112 = arith.constant dense<0.000000e+00> : vector<8xf32>
    %348 = vector.multi_reduction <add>, %346, %cst_112 [1] : vector<8x32xf32> to vector<8xf32>
    %349 = vector.shape_cast %348 : vector<8xf32> to vector<8x1xf32>
    %cst_113 = arith.constant 3.125000e-02 : f32
    %350 = vector.broadcast %cst_113 : f32 to vector<8x1xf32>
    %351 = arith.mulf %349, %350 : vector<8x1xf32>
    %352 = arith.mulf %346, %346 : vector<8x32xf32>
    %cst_114 = arith.constant dense<0.000000e+00> : vector<8xf32>
    %353 = vector.multi_reduction <add>, %352, %cst_114 [1] : vector<8x32xf32> to vector<8xf32>
    %354 = vector.shape_cast %353 : vector<8xf32> to vector<8x1xf32>
    %cst_115 = arith.constant 3.125000e-02 : f32
    %355 = vector.broadcast %cst_115 : f32 to vector<8x1xf32>
    %356 = arith.mulf %354, %355 : vector<8x1xf32>
    %357 = arith.mulf %351, %351 : vector<8x1xf32>
    %358 = arith.subf %356, %357 : vector<8x1xf32>
    %359 = vector.broadcast %351 : vector<8x1xf32> to vector<8x32xf32>
    %360 = arith.subf %346, %359 : vector<8x32xf32>
    %cst_116 = arith.constant 9.99999974E-6 : f32
    %361 = vector.broadcast %cst_116 : f32 to vector<8x1xf32>
    %362 = arith.addf %358, %361 : vector<8x1xf32>
    %363 = math.rsqrt %362 : vector<8x1xf32>
    %364 = vector.broadcast %363 : vector<8x1xf32> to vector<8x32xf32>
    %365 = arith.mulf %360, %364 : vector<8x32xf32>
    %366 = vector.extract_strided_slice %347 {offsets = [0, 0], sizes = [1, 32], strides = [1, 1]} : vector<2x32xf32> to vector<1x32xf32>
    %367 = vector.broadcast %366 : vector<1x32xf32> to vector<8x32xf32>
    %368 = arith.mulf %365, %367 : vector<8x32xf32>
    %369 = vector.extract_strided_slice %347 {offsets = [1, 0], sizes = [1, 32], strides = [1, 1]} : vector<2x32xf32> to vector<1x32xf32>
    %370 = vector.broadcast %369 : vector<1x32xf32> to vector<8x32xf32>
    %371 = arith.addf %368, %370 : vector<8x32xf32>
    %c432 = arith.constant 432 : index
    %c0_117 = arith.constant 0 : index
    %372 = vector.load %arg2[%c432, %c0_117] : memref<1312x32xf32, #tpu.memory_space<vmem>>, vector<2x32xf32>
    %373 = vector.extract_strided_slice %372 {offsets = [0, 0], sizes = [2, 16], strides = [1, 1]} : vector<2x32xf32> to vector<2x16xf32>
    %c440 = arith.constant 440 : index
    %c0_118 = arith.constant 0 : index
    %374 = vector.load %arg2[%c440, %c0_118] : memref<1312x32xf32, #tpu.memory_space<vmem>>, vector<2x32xf32>
    %375 = vector.extract_strided_slice %374 {offsets = [0, 0], sizes = [2, 8], strides = [1, 1]} : vector<2x32xf32> to vector<2x8xf32>
    %cst_119 = arith.constant dense<0.000000e+00> : vector<2x32xf32>
    %376 = tpu.matmul %373, %332, %cst_119 {dimension_numbers = #tpu.dot_dimension_numbers<[1], [0], [0], [1], [0, 0, 1, 1], [], []>} : vector<2x16xf32>, vector<16x32xf32>, vector<2x32xf32> -> vector<2x32xf32>
    %cst_120 = arith.constant dense<0.000000e+00> : vector<2x32xf32>
    %377 = tpu.matmul %375, %371, %cst_120 {dimension_numbers = #tpu.dot_dimension_numbers<[1], [0], [0], [1], [0, 0, 1, 1], [], []>} : vector<2x8xf32>, vector<8x32xf32>, vector<2x32xf32> -> vector<2x32xf32>
    %378 = arith.addf %376, %377 : vector<2x32xf32>
    %cst_121 = arith.constant 0.0833333358 : f32
    %379 = vector.broadcast %cst_121 : f32 to vector<2x32xf32>
    %380 = arith.mulf %378, %379 : vector<2x32xf32>
    %c8_122 = arith.constant 8 : index
    %c0_123 = arith.constant 0 : index
    %381 = vector.load %arg2[%c8_122, %c0_123] : memref<1312x32xf32, #tpu.memory_space<vmem>>, vector<128x32xf32>
    %c0_124 = arith.constant 0 : index
    %c0_125 = arith.constant 0 : index
    %382 = vector.load %arg3[%c0_124, %c0_125] : memref<56x128xf32, #tpu.memory_space<vmem>>, vector<1x128xf32>
    %cst_126 = arith.constant dense<0.000000e+00> : vector<2x128xf32>
    %383 = tpu.matmul %380, %381, %cst_126 {dimension_numbers = #tpu.dot_dimension_numbers<[1], [1], [0], [0], [0, 0, 1, 0], [], []>} : vector<2x32xf32>, vector<128x32xf32>, vector<2x128xf32> -> vector<2x128xf32>
    %384 = vector.broadcast %382 : vector<1x128xf32> to vector<2x128xf32>
    %385 = arith.addf %383, %384 : vector<2x128xf32>
    %c0_127 = arith.constant 0 : index
    %c0_128 = arith.constant 0 : index
    %386 = vector.load %arg4[%c0_127, %c0_128] : memref<2x128xf32, #tpu.memory_space<vmem>>, vector<2x128xf32>
    tpu.vector_store %arg4[%c0_127, %c0_128], %385 {strides = array<i32>} : memref<2x128xf32, #tpu.memory_space<vmem>>, vector<2x128xf32>,
    return
  }
}

</mosaic_0001>

<bundles_post_ra>
// kernel: model_forward.1
= control target key start
LH: loop header
LB: loop body
LE: loop exit
PB: predicated region body
PF: predicated region fallthrough
CT: control target
= control target key end

     0   :  { %v4846_v1 = vmov 0.0   ;;  %vm4847_vm0 = vmmov 0   ;;  %s6039_s0 = inlined_call_operand.vmem [shape: f32[24,32], index: 0, kind: input, shape index: {}]   ;;  %s6040_s1 = inlined_call_operand.vmem [shape: f32[2,128], index: 1, kind: input, shape index: {}]   ;;  %s6041_s2 = inlined_call_operand.vmem [shape: f32[1312,32], index: 2, kind: input, shape index: {}]   ;;  %s6042_s3 = inlined_call_operand.vmem [shape: f32[56,128], index: 3, kind: input, shape index: {}]   ;;  %s6043_s4 = inlined_call_operand.hbm [shape: f32[2,128], index: 4, kind: output, shape index: {}]  }
   0x1   :  { %v24_v0 = vld [vmem:[%s6042_s3 + $0x20] sm:$0xff]  ;;  %4284 = vmatprep.subr.mxu0 %v4846_v1  ;;  %4292 = vmatprep.mubr.msk.f32.mxu0 %vm4847_vm0, %v4846_v1 }
   0x2   :  { %4285 = vmatpush3.xpose.msra.mxu0 %v24_v0  ;;  %4295 = vmatprep.subr.mxu1 %v4846_v1 }
   0x3   :  { %9 = vsyncpa [#allocation3], 0  ;;  %4286 = vmatprep.subr.mxu0 %v4846_v1  ;;  %v23_v2 = vld [vmem:[%s6042_s3 + $0x18] sm:$0xff]  ;;  %4297 = vmatprep.mubr.msk.f32.mxu1 %vm4847_vm0, %v4846_v1  ;;  %v22_v3 = vld [vmem:[%s6042_s3 + $0x10] sm:$0xff]  ;;  %vm238_vm1 = vcmask 261120   ;;  %vm106_vm2 = vcmask 1041408   ;;  %v234_v21 = vlaneseq }
   0x4   :  { %v21_v4 = vld [vmem:[%s6042_s3 + $0x8] sm:$0xff]  ;;  %v224_v5 = vld [vmem:[%s6041_s2 + $0x1f8] sm:$0xff]  ;;  %v25_v6 = vld [vmem:[%s6040_s1] sm:$0x3]  ;;  %vm102_vm3 = vcmask 15360   ;;  %vm689_vm4 = vcmask 130048  }
   0x5   :  { %v223_v7 = vld [vmem:[%s6041_s2 + $0x1f0] sm:$0xff]  ;;  %v222_v8 = vld [vmem:[%s6041_s2 + $0x1e8] sm:$0xff]  ;;  %v221_v9 = vld [vmem:[%s6041_s2 + $0x1e0] sm:$0xff]  ;;  %v4964_v22 = vshrl.u32 %v234_v21, 7  ;;  %vm1413_vm5 = vcmask 64512   ;;  %vm3221_vm6 = vcmask 523264  }
   0x6   :  { %4287 = vmatpush3.xpose.msra.mxu0 %v23_v2  ;;  %v4921_v10 = vld [vmem:[%s6039_s0] sm:$0xff]  ;;  %v4928_v11 = vld [vmem:[%s6039_s0 + $0x8] sm:$0xff]  ;;  %v220_v16 = vld [vmem:[%s6041_s2 + $0x1d8] sm:$0xff]  ;;  %s4848_s27 = smov [#allocation2]  }
   0x7   :  { %4288 = vmatprep.subr.mxu0 %v4846_v1  ;;  %v3878_v12 = vld [vmem:[%s6041_s2] ss:$0 sm:$0xff]  ;;  %v101_v15 = vld [vmem:[%s6041_s2 + $0x1a8] sm:$0xff]  ;;  %v219_v18 = vld [vmem:[%s6041_s2 + $0x1d0] sm:$0xff]  ;;  %v4972_v24 = vsub.s32 1, %v4964_v22  ;;  %v5004_v36 = vsub.s32 0, %v4964_v22 }
   0x8   :  { %v218_v19 = vld [vmem:[%s6041_s2 + $0x1c8] sm:$0xff]  ;;  %v217_v20 = vld [vmem:[%s6041_s2 + $0x1c0] sm:$0xff]  ;;  %v228_v30 = vld [vmem:[%s6041_s2 + $0x218] sm:$0xff]  ;;  %s3870_s28 = sshll.u32 %s4848_s27, 4  ;;  %s3871_s28 = int_to_ptr.vmem [resolvable:$true] %s3870_s28 }
   0x9   :  { %v4969_v23 = vld [vmem:[%s6041_s2 + $0x240] sm:$0xf]  ;;  %v227_v31 = vld [vmem:[%s6041_s2 + $0x210] sm:$0xff]  ;;  %v226_v32 = vld [vmem:[%s6041_s2 + $0x208] sm:$0xff]  ;;  %p4829_p1 = scmp.lt.s32.totalorder %s3871_s28, %s3871_s28 }
   0xa   :  { %4289 = vmatpush3.xpose.msra.mxu0 %v22_v3  ;;  %v335_v25 = vrot.slane %v4969_v23, %v4972_v24  ;;  %v225_v33 = vld [vmem:[%s6041_s2 + $0x200] sm:$0xff]  ;;  %v237_v37 = vrot.slane %v4969_v23, %v5004_v36  ;;  %v5011_v41 = vld [vmem:[%s6041_s2 + $0x88] sm:$0xff]  ;;  %v5016_v42 = vld [vmem:[%s6041_s2 + $0x90] sm:$0xff] }
   0xb   :  { %4290 = vmatprep.subr.mxu0 %v4846_v1  ;;  %v5021_v44 = vld [vmem:[%s6041_s2 + $0x98] sm:$0xff]  ;;  %v1018_v47 = vld [vmem:[%s6041_s2 + $0x260] sm:$0xff]  ;;  %v5039_v50 = vld [vmem:[%s6041_s2 + $0xa8] sm:$0xff] }
   0xc   :  { %v5033_v49 = vld [vmem:[%s6041_s2 + $0xa0] sm:$0xff]  ;;  %v1017_v52 = vld [vmem:[%s6041_s2 + $0x258] sm:$0xff]  ;;  %v5052_v54 = vld [vmem:[%s6041_s2 + $0xb0] sm:$0xff] }
   0xd   :  { %v5058_v55 = vld [vmem:[%s6041_s2 + $0xb8] sm:$0xff]  ;;  %v1016_v57 = vld [vmem:[%s6041_s2 + $0x250] sm:$0xff]  ;;  %v5071_v59 = vld [vmem:[%s6041_s2 + $0xc0] sm:$0xff] }
   0xe   :  { %4291 = vmatpush3.xpose.msra.mxu0 %v21_v4  ;;  %v1015_v61 = vld [vmem:[%s6041_s2 + $0x248] sm:$0xff]  ;;  %v20_v62 = vld [vmem:[%s6039_s0 + $0x10] sm:$0xff]  ;;  %v1026_v0 = vld [vmem:[%s6041_s2 + $0x2a0] sm:$0xff] }
   0xf   :  { %4311 = vmatprep.subr.msk.mxu0 %vm238_vm1, %v224_v5  ;;  %v1025_v2 = vld [vmem:[%s6041_s2 + $0x298] sm:$0xff]  ;;  %v1024_v3 = vld [vmem:[%s6041_s2 + $0x290] sm:$0xff]  ;;  %v1023_v4 = vld [vmem:[%s6041_s2 + $0x288] sm:$0xff] }
  0x11   :  { %4293 = vmatmul.mubr.f32.vlgmr.msra.gmra.mxu0 %v25_v6 }
  0x12   :  { %4312 = vmatpush3.xpose.msk.msra.mxu0 %vm238_vm1, %v224_v5  ;;  %4319 = vmatprep.mubr.msk.f32.mxu0 %vm238_vm1, %v4921_v10 }
  0x13   :  { %4313 = vmatprep.subr.msk.mxu0 %vm238_vm1, %v223_v7 }
  0x16   :  { %4314 = vmatpush3.xpose.msk.msra.mxu0 %vm238_vm1, %v223_v7 }
  0x17   :  { %4315 = vmatprep.subr.msk.mxu0 %vm238_vm1, %v222_v8 }
  0x1a   :  { %4316 = vmatpush3.xpose.msk.msra.mxu0 %vm238_vm1, %v222_v8 }
  0x1b   :  { %4317 = vmatprep.subr.msk.mxu0 %vm238_vm1, %v221_v9 }
  0x1e   :  { %4318 = vmatpush3.xpose.msk.msra.mxu0 %vm238_vm1, %v221_v9 }
  0x21   :  { %4320 = vmatmul.mubr.msk.f32.vlgmr.msra.gmra.mxu0 %vm238_vm1, %v4928_v11 }
  0xd1   :  { %v97_v13 = vpop.f32.mrf.mxu0 }
  0xd2   :  { %v98_v14 = vadd.f32 %v3878_v12, %v97_v13 }
  0xd3   :  { %v4294_v17 = vpop.f32.mrf.mxu0 }
  0xd4   :  { %4296 = vmatpush3.msk.msra.mxu1 %vm106_vm2, %v98_v14 }
  0xd5   :  { %4298 = vmatmul.mubr.msk.f32.vlgmr.msra.gmra.mxu1 %vm102_vm3, %v101_v15  ;;  %4300 = vmatprep.subr.msk.mxu1 %vm238_vm1, %v220_v16 }
  0xd6   :  { %4301 = vmatpush3.xpose.msk.msra.mxu1 %vm238_vm1, %v220_v16  ;;  %4308 = vmatprep.mubr.msk.f32.mxu1 %vm238_vm1, %v4921_v10 }
  0xd7   :  { %4302 = vmatprep.subr.msk.mxu1 %vm238_vm1, %v219_v18 }
  0xda   :  { %4303 = vmatpush3.xpose.msk.msra.mxu1 %vm238_vm1, %v219_v18 }
  0xdb   :  { %4304 = vmatprep.subr.msk.mxu1 %vm238_vm1, %v218_v19 }
  0xde   :  { %4305 = vmatpush3.xpose.msk.msra.mxu1 %vm238_vm1, %v218_v19 }
  0xdf   :  { %4306 = vmatprep.subr.msk.mxu1 %vm238_vm1, %v217_v20 }
  0xe1   :  { %v4321_v26 = vpop.f32.mrf.mxu0 }
  0xe2   :  { %4307 = vmatpush3.xpose.msk.msra.mxu1 %vm238_vm1, %v217_v20  ;;  %v420_v27 = vadd.f32 %v4321_v26, %v335_v25 }
  0xe3   :  { %v414_v28 = vpop.f32.mrf.mxu0  ;;  %4322 = vmatprep.subr.msk.mxu1 %vm238_vm1, %v228_v30 }
  0xe4   :  { %4333 = vmatprep.subr.msk.mxu0 %vm238_vm1, %v420_v27  ;;  %v415_v29 = vadd.f32 %v414_v28, %v335_v25 }
  0xe5   :  { %4309 = vmatmul.mubr.msk.f32.vlgmr.msra.gmra.mxu1 %vm238_vm1, %v4928_v11  ;;  %4334 = vmatpush3.xpose.msk.msra.mxu0 %vm238_vm1, %v420_v27 }
  0xe6   :  { %4330 = vmatprep.mubr.msk.f32.mxu1 %vm238_vm1, %v4921_v10  ;;  %4335 = vmatprep.subr.msk.mxu0 %vm238_vm1, %v415_v29 }
  0xe7   :  { %4323 = vmatpush3.xpose.msk.msra.mxu1 %vm238_vm1, %v228_v30 }
  0xe8   :  { %4324 = vmatprep.subr.msk.mxu1 %vm238_vm1, %v227_v31 }
  0xe9   :  { %4336 = vmatpush3.xpose.msk.msra.mxu0 %vm238_vm1, %v415_v29 }
  0xea   :  { %4376 = vmatprep.subr.mxu0 %v4846_v1 }
  0xeb   :  { %4325 = vmatpush3.xpose.msk.msra.mxu1 %vm238_vm1, %v227_v31 }
  0xec   :  { %4326 = vmatprep.subr.msk.mxu1 %vm238_vm1, %v226_v32 }
  0xef   :  { %4327 = vmatpush3.xpose.msk.msra.mxu1 %vm238_vm1, %v226_v32 }
  0xf0   :  { %4328 = vmatprep.subr.msk.mxu1 %vm238_vm1, %v225_v33 }
  0xf3   :  { %4329 = vmatpush3.xpose.msk.msra.mxu1 %vm238_vm1, %v225_v33 }
  0xf6   :  { %4331 = vmatmul.mubr.msk.f32.vlgmr.msra.gmra.mxu1 %vm238_vm1, %v4928_v11 }
 0x195   :  { %v176_v34 = vpop.f32.mrf.mxu1 }
 0x196   :  { %v5088_v63 = vadd.f32 %v176_v34, %v20_v62 }
 0x197   :  { %v4299_v35 = vpop.f32.mrf.mxu1 }
 0x1a5   :  { %v4310_v38 = vpop.f32.mrf.mxu1 }
 0x1a6   :  { %v329_v39 = vadd.f32 %v4310_v38, %v237_v37 }
 0x1a7   :  { %v323_v40 = vpop.f32.mrf.mxu1 }
 0x1a8   :  { %v324_v43 = vadd.f32 %v323_v40, %v237_v37  ;;  %v515_v46 = vmul.f32 %v329_v39, %v5016_v42  ;;  %v517_v51 = vmul.f32 %v329_v39, %v5033_v49  ;;  %v519_v56 = vmul.f32 %v329_v39, %v5052_v54  ;;  %v193_v37 = vld [vmem:[%s6041_s2 + $0xe8] sm:$0xff]  ;;  %v194_v40 = vld [vmem:[%s6041_s2 + $0xf0] sm:$0xff] }
 0x1a9   :  { %v521_v60 = vmul.f32 %v329_v39, %v5071_v59 }
 0x1aa   :  { %v514_v45 = vmul.f32 %v324_v43, %v5011_v41  ;;  %v516_v48 = vmul.f32 %v324_v43, %v5021_v44  ;;  %v518_v53 = vmul.f32 %v324_v43, %v5039_v50  ;;  %v520_v58 = vmul.f32 %v324_v43, %v5058_v55 }
 0x1ac   :  { %4337 = vmatprep.mubr.msk.f32.mxu0 %vm238_vm1, %v514_v45  ;;  %v195_v45 = vld [vmem:[%s6041_s2 + $0xf8] sm:$0xff] }
 0x1ad   :  { %4338 = vmatmul.mubr.msk.f32.vlgmr.msra.gmra.mxu0 %vm238_vm1, %v515_v46 }
 0x1ae   :  { %4377 = vmatpush3.xpose.msk.msra.mxu0 %vm238_vm1, %v1018_v47  ;;  %4340 = vmatprep.mubr.msk.f32.mxu0 %vm238_vm1, %v516_v48 }
 0x1af   :  { %4378 = vmatprep.subr.mxu0 %v4846_v1 }
 0x1b1   :  { %4341 = vmatmul.mubr.msk.f32.gmra.mxu0 %vm238_vm1, %v517_v51 }
 0x1b2   :  { %4379 = vmatpush3.xpose.msk.msra.mxu0 %vm238_vm1, %v1017_v52  ;;  %4343 = vmatprep.mubr.msk.f32.mxu0 %vm238_vm1, %v518_v53  ;;  %v196_v52 = vld [vmem:[%s6041_s2 + $0x100] sm:$0xff] }
 0x1b3   :  { %4380 = vmatprep.subr.mxu0 %v4846_v1 }
 0x1b5   :  { %4344 = vmatmul.mubr.msk.f32.gmra.mxu0 %vm238_vm1, %v519_v56  ;;  %v5139_v56 = vsub.s32 2, %v4964_v22 }
 0x1b6   :  { %4381 = vmatpush3.xpose.msk.msra.mxu0 %vm238_vm1, %v1016_v57  ;;  %4346 = vmatprep.mubr.msk.f32.mxu0 %vm238_vm1, %v520_v58  ;;  %v197_v57 = vld [vmem:[%s6041_s2 + $0x108] sm:$0xff] }
 0x1b7   :  { %4382 = vmatprep.subr.mxu0 %v4846_v1 }
 0x1b9   :  { %4347 = vmatmul.mubr.msk.f32.gmra.mxu0 %vm238_vm1, %v521_v60 }
 0x1ba   :  { %4383 = vmatpush3.xpose.msk.msra.mxu0 %vm238_vm1, %v1015_v61  ;;  %4384 = vmatprep.mubr.msk.f32.mxu0 %vm4847_vm0, %v4846_v1 }
 0x1bb   :  { %4398 = vmatprep.subr.mxu0 %v4846_v1 }
 0x1bd   :  { %4385 = vmatmul.mubr.msk.f32.vlgmr.msra.gmra.mxu0 %vm238_vm1, %v5088_v63 }
 0x1be   :  { %4399 = vmatpush3.xpose.msk.msra.mxu0 %vm238_vm1, %v1026_v0  ;;  %4406 = vmatprep.mubr.msk.f32.mxu0 %vm4847_vm0, %v4846_v1 }
 0x1bf   :  { %4400 = vmatprep.subr.mxu0 %v4846_v1 }
 0x1c2   :  { %4401 = vmatpush3.xpose.msk.msra.mxu0 %vm238_vm1, %v1025_v2  ;;  %v5153_v2 = vld [vmem:[%s6041_s2 + $0x2c8] sm:$0xf] }
 0x1c3   :  { %4402 = vmatprep.subr.mxu0 %v4846_v1 }
 0x1c6   :  { %4403 = vmatpush3.xpose.msk.msra.mxu0 %vm238_vm1, %v1024_v3  ;;  %v198_v3 = vld [vmem:[%s6041_s2 + $0x110] sm:$0xff] }
 0x1c7   :  { %4404 = vmatprep.subr.mxu0 %v4846_v1 }
 0x1ca   :  { %4405 = vmatpush3.xpose.msk.msra.mxu0 %vm238_vm1, %v1023_v4  ;;  %v1210_v4 = vrot.slane %v5153_v2, %v5139_v56 }
 0x1cd   :  { %4407 = vmatmul.mubr.msk.f32.vlgmr.msra.gmra.mxu0 %vm238_vm1, %v5088_v63 }
 0x26d   :  { %v4339_v5 = vpop.f32.mrf.mxu0 }
 0x26e   :  { %v658_v6 = vmul.f32 0.35355338, %v4339_v5 }
 0x26f   :  { %v618_v7 = vpop.f32.mrf.mxu0 }
 0x270   :  { %v667_v8 = vmul.f32 1.442695, %v658_v6  ;;  %v657_v9 = vmul.f32 0.35355338, %v618_v7  ;;  %v199_v6 = vld [vmem:[%s6041_s2 + $0x118] sm:$0xff] }
 0x271   :  { %v4342_v12 = vpop.f32.mrf.mxu0 }
 0x272   :  { %v665_v13 = vmul.f32 1.442695, %v657_v9  ;;  %v660_v14 = vmul.f32 0.35355338, %v4342_v12  ;;  %4698 = vpow2.f32 %v667_v8 }
 0x273   :  { %v628_v15 = vpop.f32.mrf.mxu0 }
 0x274   :  { %4700 = vpow2.f32 %v665_v13  ;;  %v671_v16 = vmul.f32 1.442695, %v660_v14  ;;  %v659_v17 = vmul.f32 0.35355338, %v628_v15  ;;  %v200_v15 = vld [vmem:[%s6041_s2 + $0x120] sm:$0xff] }
 0x275   :  { %v4345_v18 = vpop.f32.mrf.mxu0 }
 0x276   :  { %v669_v19 = vmul.f32 1.442695, %v659_v17  ;;  %v662_v20 = vmul.f32 0.35355338, %v4345_v18  ;;  %4702 = vpow2.f32 %v671_v16 }
 0x277   :  { %v638_v21 = vpop.f32.mrf.mxu0 }
 0x278   :  { %4704 = vpow2.f32 %v669_v19  ;;  %v675_v25 = vmul.f32 1.442695, %v662_v20  ;;  %v661_v26 = vmul.f32 0.35355338, %v638_v21 }
 0x279   :  { %v4348_v27 = vpop.f32.mrf.mxu0 }
 0x27a   :  { %v673_v28 = vmul.f32 1.442695, %v661_v26  ;;  %v664_v29 = vmul.f32 0.35355338, %v4348_v27  ;;  %4706 = vpow2.f32 %v675_v25  ;;  %v426_v26 = vrot.slane %v4969_v23, %v5139_v56  ;;  %v4332_v27 = vpop.f32.mrf.mxu1 }
 0x27b   :  { %v648_v30 = vpop.f32.mrf.mxu0 }
 0x27c   :  { %4708 = vpow2.f32 %v673_v28  ;;  %v679_v31 = vmul.f32 1.442695, %v664_v29  ;;  %v663_v32 = vmul.f32 0.35355338, %v648_v30  ;;  %v511_v28 = vadd.f32 %v4332_v27, %v426_v26  ;;  %v505_v29 = vpop.f32.mrf.mxu1 }
 0x27d   :  { %v5116_v33 = vpop.f32.mrf.mxu0  ;;  %v506_v30 = vadd.f32 %v505_v29, %v426_v26 }
 0x27e   :  { %v677_v34 = vmul.f32 1.442695, %v663_v32  ;;  %4710 = vpow2.f32 %v679_v31  ;;  %4349 = vmatprep.subr.mxu1 %v511_v28 }
 0x27f   :  { %v4386_v35 = vpop.f32.mrf.mxu0  ;;  %v4699_v38 = vpop.eup %4698  ;;  %4350 = vmatpush3.msra.mxu1 %v511_v28 }
 0x280   :  { %4712 = vpow2.f32 %v677_v34  ;;  %v5131_v48 = vmul.f32 %v4699_v38, %v194_v40  ;;  %4351 = vmatprep.subr.mxu1 %v506_v30 }
 0x281   :  { %v4701_v39 = vpop.eup %4700  ;;  %4352 = vmatpush3.msra.mxu1 %v506_v30 }
 0x282   :  { %v5124_v43 = vmul.f32 %v4701_v39, %v193_v37  ;;  %v693_v60 = vsel %vm689_vm4, %v5131_v48, 0.0 }
 0x283   :  { %v4703_v46 = vpop.eup %4702 }
 0x284   :  { %v690_v47 = vsel %vm689_vm4, %v5124_v43, 0.0  ;;  %v5148_v62 = vmul.f32 %v4703_v46, %v196_v52 }
 0x285   :  { %v4705_v51 = vpop.eup %4704  ;;  %691 = vadd.xlane.f32.xlu0 %v690_v47 }
 0x286   :  { %v5136_v53 = vmul.f32 %v4705_v51, %v195_v45  ;;  %v699_v8 = vsel %vm689_vm4, %v5148_v62, 0.0 }
 0x287   :  { %v4707_v58 = vpop.eup %4706 }
 0x288   :  { %v696_v61 = vsel %vm689_vm4, %v5136_v53, 0.0  ;;  %v686_v12 = vmul.f32 %v4707_v58, %v198_v3 }
 0x289   :  { %v4709_v0 = vpop.eup %4708  ;;  %694 = vadd.xlane.f32.xlu0 %v693_v60  ;;  %697 = vadd.xlane.f32.xlu1 %v696_v61 }
 0x28a   :  { %v685_v5 = vmul.f32 %v4709_v0, %v197_v57  ;;  %v705_v19 = vsel %vm689_vm4, %v686_v12, 0.0 }
 0x28b   :  { %v4711_v7 = vpop.eup %4710 }
 0x28c   :  { %v702_v9 = vsel %vm689_vm4, %v685_v5, 0.0  ;;  %v688_v21 = vmul.f32 %v4711_v7, %v200_v15  ;;  %v230_v7 = vld [vmem:[%s6041_s2 + $0x228] sm:$0xff] }
 0x28d   :  { %v4713_v13 = vpop.eup %4712  ;;  %v1289_v14 = vpop.f32.mrf.mxu0  ;;  %700 = vadd.xlane.f32.xlu1 %v699_v8  ;;  %703 = vadd.xlane.f32.xlu0 %v702_v9  ;;  %v229_v8 = vld [vmem:[%s6041_s2 + $0x220] sm:$0xff] }
 0x28e   :  { %v1290_v16 = vadd.f32 %v1289_v14, %v1210_v4  ;;  %v687_v17 = vmul.f32 %v4713_v13, %v199_v6  ;;  %v711_v25 = vsel %vm689_vm4, %v688_v21, 0.0 }
 0x28f   :  { %v4408_v18 = vpop.f32.mrf.mxu0 }
 0x290   :  { %4417 = vmatprep.subr.mxu0 %v1290_v16  ;;  %v708_v20 = vsel %vm689_vm4, %v687_v17, 0.0 }
 0x291   :  { %4418 = vmatpush3.msra.mxu0 %v1290_v16  ;;  %706 = vadd.xlane.f32.xlu1 %v705_v19 }
 0x292   :  { %709 = vadd.xlane.f32.xlu0 %v708_v20 }
 0x295   :  { %712 = vadd.xlane.f32.xlu1 %v711_v25 }
 0x30e   :  { %v692_v31 = vpop.xlane.xlu0 %691 }
 0x30f   :  { %4714 = vrcp.f32 %v692_v31 }
 0x312   :  { %v695_v32 = vpop.xlane.xlu0 %694  ;;  %v698_v34 = vpop.xlane.xlu1 %697 }
 0x313   :  { %4716 = vrcp.f32 %v695_v32 }
 0x314   :  { %4718 = vrcp.f32 %v698_v34 }
 0x316   :  { %v701_v35 = vpop.xlane.xlu1 %700  ;;  %v704_v37 = vpop.xlane.xlu0 %703 }
 0x317   :  { %4720 = vrcp.f32 %v701_v35 }
 0x318   :  { %4722 = vrcp.f32 %v704_v37 }
 0x31a   :  { %v707_v38 = vpop.xlane.xlu1 %706 }
 0x31b   :  { %4724 = vrcp.f32 %v707_v38  ;;  %v710_v39 = vpop.xlane.xlu0 %709  ;;  %v1022_v38 = vld [vmem:[%s6041_s2 + $0x280] sm:$0xff] }
 0x31c   :  { %v4715_v40 = vpop.eup %4714  ;;  %4726 = vrcp.f32 %v710_v39  ;;  %v1021_v39 = vld [vmem:[%s6041_s2 + $0x278] sm:$0xff] }
 0x31d   :  { %v722_v45 = vmul.f32 %v4715_v40, %v5124_v43  ;;  %v1020_v40 = vld [vmem:[%s6041_s2 + $0x270] sm:$0xff] }
 0x31e   :  { %v713_v46 = vpop.xlane.xlu1 %712 }
 0x31f   :  { %4728 = vrcp.f32 %v713_v46  ;;  %4353 = vmatprep.mubr.msk.f32.mxu1 %vm689_vm4, %v722_v45  ;;  %v1035_v45 = vrot.slane %v5153_v2, %v5004_v36  ;;  %v1019_v46 = vld [vmem:[%s6041_s2 + $0x268] sm:$0xff] }
 0x320   :  { %v4717_v47 = vpop.eup %4716 }
 0x321   :  { %v4719_v51 = vpop.eup %4718  ;;  %v723_v52 = vmul.f32 %v4717_v47, %v5131_v48  ;;  %v1118_v47 = vadd.f32 %v5116_v33, %v1035_v45 }
 0x322   :  { %v724_v57 = vmul.f32 %v4719_v51, %v5136_v53  ;;  %v5243_v51 = vld [vmem:[%s6041_s2 + $0xc8] sm:$0xff] }
 0x323   :  { %4354 = vmatmul.mubr.msk.f32.vlgmr.msra.gmra.mxu1 %vm689_vm4, %v723_v52  ;;  %v1293_v52 = vmul.f32 %v1118_v47, %v5243_v51 }
 0x324   :  { %v4721_v58 = vpop.eup %4720  ;;  %4356 = vmatprep.mubr.msk.f32.mxu1 %vm689_vm4, %v724_v57 }
 0x325   :  { %v4723_v60 = vpop.eup %4722  ;;  %v725_v61 = vmul.f32 %v4721_v58, %v5148_v62  ;;  %v232_v62 = vld [vmem:[%s6041_s2 + $0x238] sm:$0xff]  ;;  %v1124_v58 = vrot.slane %v5153_v2, %v4972_v24 }
 0x326   :  { %v726_v0 = vmul.f32 %v4723_v60, %v685_v5  ;;  %4365 = vmatprep.subr.msk.mxu1 %vm238_vm1, %v232_v62  ;;  %v231_v5 = vld [vmem:[%s6041_s2 + $0x230] sm:$0xff] }
 0x327   :  { %4357 = vmatmul.mubr.msk.f32.gmra.mxu1 %vm689_vm4, %v725_v61 }
 0x328   :  { %v4725_v43 = vpop.eup %4724  ;;  %4359 = vmatprep.mubr.msk.f32.mxu1 %vm689_vm4, %v726_v0  ;;  %4366 = vmatpush3.xpose.msk.msra.mxu1 %vm238_vm1, %v232_v62  ;;  %v5255_v0 = vld [vmem:[%s6041_s2 + $0xd0] sm:$0xff] }
 0x329   :  { %v4727_v3 = vpop.eup %4726  ;;  %v727_v4 = vmul.f32 %v4725_v43, %v686_v12  ;;  %4367 = vmatprep.subr.msk.mxu1 %vm238_vm1, %v231_v5 }
 0x32a   :  { %v728_v6 = vmul.f32 %v4727_v3, %v687_v17  ;;  %v5261_v3 = vld [vmem:[%s6041_s2 + $0xd8] sm:$0xff] }
 0x32b   :  { %4360 = vmatmul.mubr.msk.f32.gmra.mxu1 %vm689_vm4, %v727_v4  ;;  %v1294_v4 = vmul.f32 %v1118_v47, %v5255_v0 }
 0x32c   :  { %v4729_v48 = vpop.eup %4728  ;;  %4362 = vmatprep.mubr.msk.f32.mxu1 %vm689_vm4, %v728_v6  ;;  %4368 = vmatpush3.xpose.msk.msra.mxu1 %vm238_vm1, %v231_v5  ;;  %v1295_v6 = vmul.f32 %v1118_v47, %v5261_v3 }
 0x32d   :  { %v729_v53 = vmul.f32 %v4729_v48, %v688_v21  ;;  %4369 = vmatprep.subr.msk.mxu1 %vm238_vm1, %v230_v7  ;;  %v5270_v48 = vld [vmem:[%s6041_s2 + $0xe0] sm:$0xff] }
 0x32f   :  { %4363 = vmatmul.mubr.msk.f32.gmra.mxu1 %vm689_vm4, %v729_v53  ;;  %v1296_v53 = vmul.f32 %v1118_v47, %v5270_v48 }
 0x330   :  { %4370 = vmatpush3.xpose.msk.msra.mxu1 %vm238_vm1, %v230_v7 }
 0x331   :  { %4371 = vmatprep.subr.msk.mxu1 %vm238_vm1, %v229_v8 }
 0x334   :  { %4372 = vmatpush3.xpose.msk.msra.mxu1 %vm238_vm1, %v229_v8 }
 0x335   :  { %4387 = vmatprep.subr.mxu1 %v4846_v1 }
 0x3e3   :  { %v4355_v9 = vpop.f32.mrf.mxu1 }
 0x3e4   :  { %v860_v29 = vmul.f32 %v4355_v9, %v5016_v42 }
 0x3e5   :  { %v820_v12 = vpop.f32.mrf.mxu1 }
 0x3e6   :  { %v859_v26 = vmul.f32 %v820_v12, %v5011_v41 }
 0x3e7   :  { %v4358_v13 = vpop.f32.mrf.mxu1 }
 0x3e8   :  { %v862_v20 = vmul.f32 %v4358_v13, %v5033_v49 }
 0x3e9   :  { %v830_v14 = vpop.f32.mrf.mxu1 }
 0x3ea   :  { %v861_v18 = vmul.f32 %v830_v14, %v5021_v44  ;;  %v868_v34 = vadd.f32 %v862_v20, %v860_v29  ;;  %v202_v20 = vld [vmem:[%s6041_s2 + $0x130] sm:$0xff] }
 0x3eb   :  { %v4361_v15 = vpop.f32.mrf.mxu1 }
 0x3ec   :  { %v864_v21 = vmul.f32 %v4361_v15, %v5052_v54  ;;  %v867_v31 = vadd.f32 %v861_v18, %v859_v26  ;;  %v201_v26 = vld [vmem:[%s6041_s2 + $0x128] sm:$0xff] }
 0x3ed   :  { %v840_v16 = vpop.f32.mrf.mxu1 }
 0x3ee   :  { %v863_v27 = vmul.f32 %v840_v16, %v5039_v50 }
 0x3ef   :  { %v4364_v17 = vpop.f32.mrf.mxu1 }
 0x3f0   :  { %v866_v19 = vmul.f32 %v4364_v17, %v5071_v59 }
 0x3f1   :  { %v850_v25 = vpop.f32.mrf.mxu1 }
 0x3f2   :  { %v865_v28 = vmul.f32 %v850_v25, %v5058_v55  ;;  %v870_v30 = vadd.f32 %v866_v19, %v864_v21  ;;  %v5279_v19 = vsub.s32 3, %v4964_v22  ;;  %v204_v22 = vld [vmem:[%s6041_s2 + $0x140] sm:$0xff] }
 0x3f4   :  { %v869_v32 = vadd.f32 %v865_v28, %v863_v27  ;;  %v872_v37 = vadd.f32 %v870_v30, %v868_v34  ;;  %v876_v21 = vrot.slane %v4969_v23, %v5279_v19  ;;  %v203_v23 = vld [vmem:[%s6041_s2 + $0x138] sm:$0xff] }
 0x3f6   :  { %v871_v35 = vadd.f32 %v869_v32, %v867_v31 }
 0x3f8   :  { %4373 = vmatprep.mubr.msk.f32.mxu1 %vm238_vm1, %v871_v35 }
 0x3f9   :  { %4374 = vmatmul.mubr.msk.f32.vlgmr.msra.gmra.mxu1 %vm238_vm1, %v872_v37 }
 0x3fa   :  { %4388 = vmatpush3.xpose.msk.msra.mxu1 %vm238_vm1, %v1022_v38  ;;  %4395 = vmatprep.mubr.msk.f32.mxu1 %vm4847_vm0, %v4846_v1 }
 0x3fb   :  { %4389 = vmatprep.subr.mxu1 %v4846_v1 }
 0x3fe   :  { %4390 = vmatpush3.xpose.msk.msra.mxu1 %vm238_vm1, %v1021_v39 }
 0x3ff   :  { %4391 = vmatprep.subr.mxu1 %v4846_v1 }
 0x402   :  { %4392 = vmatpush3.xpose.msk.msra.mxu1 %vm238_vm1, %v1020_v40 }
 0x403   :  { %4393 = vmatprep.subr.mxu1 %v4846_v1 }
 0x406   :  { %4394 = vmatpush3.xpose.msk.msra.mxu1 %vm238_vm1, %v1019_v46 }
 0x409   :  { %4396 = vmatmul.mubr.msk.f32.vlgmr.msra.gmra.mxu1 %vm238_vm1, %v5088_v63 }
 0x40a   :  { %4411 = vmatprep.mubr.msk.f32.mxu1 %vm238_vm1, %v1293_v52 }
 0x4b9   :  { %v4375_v57 = vpop.f32.mrf.mxu1 }
 0x4ba   :  { %v967_v29 = vadd.f32 %v4375_v57, %v876_v21 }
 0x4bb   :  { %v961_v60 = vpop.f32.mrf.mxu1 }
 0x4bc   :  { %v962_v34 = vadd.f32 %v961_v60, %v876_v21  ;;  %v5298_v39 = vadd.f32 %v967_v29, %v4928_v11 }
 0x4be   :  { %v5302_v46 = vadd.f32 %v962_v34, %v4921_v10  ;;  %v976_v52 = vsel %vm238_vm1, %v5298_v39, 0.0  ;;  %v982_v10 = vmul.f32 %v5298_v39, %v5298_v39  ;;  %v1654_v34 = vld [vmem:[%s6041_s2 + $0x2d0] sm:$0xff] }
 0x4c0   :  { %v973_v57 = vsel %vm238_vm1, %v5302_v46, 0.0  ;;  %v981_v11 = vmul.f32 %v5302_v46, %v5302_v46  ;;  %v986_v60 = vsel %vm238_vm1, %v982_v10, 0.0 }
 0x4c9   :  { %v1203_v33 = vpop.f32.mrf.mxu1 }
 0x4ca   :  { %v1204_v61 = vadd.f32 %v1203_v33, %v1124_v58  ;;  %v983_v58 = vsel %vm238_vm1, %v981_v11, 0.0  ;;  %v1657_v33 = vld [vmem:[%s6041_s2 + $0x2e8] sm:$0xff] }
 0x4cb   :  { %v4397_v43 = vpop.f32.mrf.mxu1  ;;  %4436 = vmatprep.subr.msk.mxu0 %vm238_vm1, %v1657_v33 }
 0x4cc   :  { %4409 = vmatprep.subr.msk.mxu1 %vm238_vm1, %v1204_v61 }
 0x4cd   :  { %4410 = vmatpush3.xpose.msk.msra.mxu1 %vm238_vm1, %v1204_v61  ;;  %v1030_v61 = vld [vmem:[%s6041_s2 + $0x2c0] sm:$0xff] }
 0x4ce   :  { %4425 = vmatprep.subr.mxu1 %v4846_v1 }
 0x4d0   :  { %4412 = vmatmul.mubr.msk.f32.vlgmr.msra.gmra.mxu1 %vm238_vm1, %v1294_v4 }
 0x4d1   :  { %4414 = vmatprep.mubr.msk.f32.mxu1 %vm238_vm1, %v1295_v6  ;;  %4426 = vmatpush3.xpose.msk.msra.mxu1 %vm238_vm1, %v1030_v61  ;;  %v1027_v61 = vld [vmem:[%s6041_s2 + $0x2a8] sm:$0xff] }
 0x4d2   :  { %4427 = vmatprep.subr.mxu1 %v4846_v1 }
 0x4d4   :  { %4415 = vmatmul.mubr.msk.f32.gmra.mxu1 %vm238_vm1, %v1296_v53 }
 0x4d5   :  { %4433 = vmatprep.mubr.msk.f32.mxu1 %vm4847_vm0, %v4846_v1 }
 0x590   :  { %v4413_v62 = vpop.f32.mrf.mxu1 }
 0x591   :  { %v1398_v5 = vmul.f32 0.35355338, %v4413_v62 }
 0x592   :  { %v1378_v7 = vpop.f32.mrf.mxu1 }
 0x593   :  { %v1403_v8 = vmul.f32 1.442695, %v1398_v5  ;;  %v1397_v9 = vmul.f32 0.35355338, %v1378_v7 }
 0x594   :  { %v4416_v12 = vpop.f32.mrf.mxu1 }
 0x595   :  { %4730 = vpow2.f32 %v1403_v8  ;;  %v1401_v13 = vmul.f32 1.442695, %v1397_v9  ;;  %v1400_v14 = vmul.f32 0.35355338, %v4416_v12 }
 0x596   :  { %v1388_v15 = vpop.f32.mrf.mxu1 }
 0x597   :  { %4732 = vpow2.f32 %v1401_v13  ;;  %v1407_v16 = vmul.f32 1.442695, %v1400_v14  ;;  %v1399_v17 = vmul.f32 0.35355338, %v1388_v15 }
 0x599   :  { %4734 = vpow2.f32 %v1407_v16  ;;  %v1405_v18 = vmul.f32 1.442695, %v1399_v17 }
 0x59b   :  { %4736 = vpow2.f32 %v1405_v18 }
 0x5a2   :  { %v4731_v25 = vpop.eup %4730 }
 0x5a3   :  { %v1410_v27 = vmul.f32 %v4731_v25, %v202_v20 }
 0x5a4   :  { %v4733_v28 = vpop.eup %4732 }
 0x5a5   :  { %v1417_v30 = vsel %vm1413_vm5, %v1410_v27, 0.0  ;;  %v1409_v31 = vmul.f32 %v4733_v28, %v201_v26 }
 0x5a6   :  { %v4735_v32 = vpop.eup %4734  ;;  %1418 = vadd.xlane.f32.xlu1 %v1417_v30 }
 0x5a7   :  { %v1414_v35 = vsel %vm1413_vm5, %v1409_v31, 0.0  ;;  %v1412_v37 = vmul.f32 %v4735_v32, %v204_v22  ;;  %v1656_v22 = vld [vmem:[%s6041_s2 + $0x2e0] sm:$0xff] }
 0x5a8   :  { %v4737_v38 = vpop.eup %4736  ;;  %1415 = vadd.xlane.f32.xlu0 %v1414_v35  ;;  %v972_v35 = vld [vmem:[%s6041_s2 + $0x4f0] sm:$0x3] }
 0x5a9   :  { %v1423_v40 = vsel %vm1413_vm5, %v1412_v37, 0.0  ;;  %v1411_v45 = vmul.f32 %v4737_v38, %v203_v23  ;;  %v1655_v23 = vld [vmem:[%s6041_s2 + $0x2d8] sm:$0xff]  ;;  %v1006_v38 = vrot.slane %v972_v35, %v5004_v36 }
 0x5aa   :  { %1424 = vadd.xlane.f32.xlu1 %v1423_v40 }
 0x5ab   :  { %v1420_v47 = vsel %vm1413_vm5, %v1411_v45, 0.0 }
 0x5ac   :  { %1421 = vadd.xlane.f32.xlu0 %v1420_v47  ;;  %v1012_v47 = vrot.slane %v972_v35, %v4972_v24 }
 0x5ae   :  { %977 = vadd.xlane.f32.xlu1 %v976_v52 }
 0x5b0   :  { %974 = vadd.xlane.f32.xlu0 %v973_v57 }
 0x5b4   :  { %984 = vadd.xlane.f32.xlu0 %v983_v58 }
 0x5b8   :  { %987 = vadd.xlane.f32.xlu0 %v986_v60 }
 0x62f   :  { %v1419_v43 = vpop.xlane.xlu1 %1418 }
 0x630   :  { %4738 = vrcp.f32 %v1419_v43 }
 0x631   :  { %v1416_v4 = vpop.xlane.xlu0 %1415 }
 0x632   :  { %4740 = vrcp.f32 %v1416_v4 }
 0x633   :  { %v1425_v6 = vpop.xlane.xlu1 %1424 }
 0x634   :  { %4742 = vrcp.f32 %v1425_v6 }
 0x635   :  { %v1422_v53 = vpop.xlane.xlu0 %1421 }
 0x636   :  { %4744 = vrcp.f32 %v1422_v53 }
 0x637   :  { %v978_v7 = vpop.xlane.xlu1 %977 }
 0x638   :  { %v980_v12 = vmul.f32 0.03125, %v978_v7 }
 0x639   :  { %v975_v62 = vpop.xlane.xlu0 %974 }
 0x63a   :  { %v979_v5 = vmul.f32 0.03125, %v975_v62  ;;  %v992_v25 = vmul.f32 %v980_v12, %v980_v12  ;;  %v996_v52 = vsub.f32 %v5298_v39, %v980_v12  ;;  %v1029_v39 = vld [vmem:[%s6041_s2 + $0x2b8] sm:$0xff] }
 0x63b   :  { %4428 = vmatpush3.xpose.msk.msra.mxu1 %vm238_vm1, %v1029_v39 }
 0x63c   :  { %v991_v13 = vmul.f32 %v979_v5, %v979_v5  ;;  %4429 = vmatprep.subr.mxu1 %v4846_v1 }
 0x63d   :  { %v985_v8 = vpop.xlane.xlu0 %984  ;;  %v4739_v9 = vpop.eup %4738 }
 0x63e   :  { %v989_v14 = vmul.f32 0.03125, %v985_v8  ;;  %v1431_v20 = vmul.f32 %v4739_v9, %v1410_v27 }
 0x63f   :  { %v4741_v15 = vpop.eup %4740 }
 0x640   :  { %v993_v16 = vsub.f32 %v989_v14, %v991_v13  ;;  %v1430_v17 = vmul.f32 %v4741_v15, %v1409_v31  ;;  %v5387_v14 = vld [vmem:[%s6041_s2 + $0x350] sm:$0xf] }
 0x641   :  { %v988_v18 = vpop.xlane.xlu0 %987  ;;  %v4743_v21 = vpop.eup %4742  ;;  %v1674_v15 = vrot.slane %v5387_v14, %v5004_v36 }
 0x642   :  { %v997_v26 = vadd.f32 1e-05, %v993_v16  ;;  %v990_v28 = vmul.f32 0.03125, %v988_v18  ;;  %4419 = vmatprep.mubr.msk.f32.mxu0 %vm1413_vm5, %v1430_v17  ;;  %v1433_v31 = vmul.f32 %v4743_v21, %v1412_v37  ;;  %v995_v37 = vsub.f32 %v5302_v46, %v979_v5 }
 0x643   :  { %v4745_v29 = vpop.eup %4744  ;;  %4420 = vmatmul.mubr.msk.f32.vlgmr.msra.gmra.mxu0 %vm1413_vm5, %v1431_v20  ;;  %v1541_v18 = vrot.slane %v5153_v2, %v5279_v19  ;;  %v1665_v2 = vld [vmem:[%s6041_s2 + $0x328] sm:$0xff] }
 0x644   :  { %4746 = vrsqrt.f32 %v997_v26  ;;  %v994_v30 = vsub.f32 %v990_v28, %v992_v25  ;;  %v1432_v32 = vmul.f32 %v4745_v29, %v1411_v45  ;;  %4437 = vmatpush3.xpose.msk.msra.mxu0 %vm238_vm1, %v1657_v33  ;;  %v1028_v33 = vld [vmem:[%s6041_s2 + $0x2b0] sm:$0xff] }
 0x645   :  { %4438 = vmatprep.subr.msk.mxu0 %vm238_vm1, %v1656_v22  ;;  %4430 = vmatpush3.xpose.msk.msra.mxu1 %vm238_vm1, %v1028_v33 }
 0x646   :  { %v998_v27 = vadd.f32 1e-05, %v994_v30  ;;  %4422 = vmatprep.mubr.msk.f32.mxu0 %vm1413_vm5, %v1432_v32  ;;  %4431 = vmatprep.subr.mxu1 %v4846_v1  ;;  %v1661_v30 = vld [vmem:[%s6041_s2 + $0x308] sm:$0xff]  ;;  %v1664_v32 = vld [vmem:[%s6041_s2 + $0x320] sm:$0xff] }
 0x647   :  { %4423 = vmatmul.mubr.msk.f32.gmra.mxu0 %vm1413_vm5, %v1433_v31  ;;  %v1659_v31 = vld [vmem:[%s6041_s2 + $0x2f8] sm:$0xff] }
 0x648   :  { %4748 = vrsqrt.f32 %v998_v27  ;;  %4439 = vmatpush3.xpose.msk.msra.mxu0 %vm238_vm1, %v1656_v22  ;;  %v1663_v27 = vld [vmem:[%s6041_s2 + $0x318] sm:$0xff] }
 0x649   :  { %4440 = vmatprep.subr.msk.mxu0 %vm238_vm1, %v1655_v23  ;;  %4432 = vmatpush3.xpose.msk.msra.mxu1 %vm238_vm1, %v1027_v61 }
 0x64a   :  { %4447 = vmatprep.subr.mxu1 %v4846_v1 }
 0x64c   :  { %4441 = vmatpush3.xpose.msk.msra.mxu0 %vm238_vm1, %v1655_v23  ;;  %v1658_v23 = vld [vmem:[%s6041_s2 + $0x2f0] sm:$0xff] }
 0x64d   :  { %4442 = vmatprep.subr.msk.mxu0 %vm238_vm1, %v1654_v34 }
 0x650   :  { %4443 = vmatpush3.xpose.msk.msra.mxu0 %vm238_vm1, %v1654_v34  ;;  %v1662_v34 = vld [vmem:[%s6041_s2 + $0x310] sm:$0xff] }
 0x651   :  { %v4747_v40 = vpop.eup %4746  ;;  %4458 = vmatprep.subr.mxu0 %v4846_v1 }
 0x652   :  { %v1001_v45 = vmul.f32 %v4747_v40, %v995_v37 }
 0x654   :  { %v1007_v57 = vmul.f32 %v1006_v38, %v1001_v45 }
 0x655   :  { %v4749_v11 = vpop.eup %4748 }
 0x656   :  { %v1002_v58 = vmul.f32 %v4749_v11, %v996_v52  ;;  %v5352_v10 = vadd.f32 %v1012_v47, %v1007_v57  ;;  %v1628_v57 = vld [vmem:[%s6041_s2 + $0x4f8] sm:$0x3] }
 0x657   :  { %v1652_v61 = vrot.slane %v1628_v57, %v4972_v24 }
 0x658   :  { %v1008_v60 = vmul.f32 %v1006_v38, %v1002_v58  ;;  %4444 = vmatprep.mubr.msk.f32.mxu0 %vm238_vm1, %v5352_v10 }
 0x65a   :  { %v5356_v46 = vadd.f32 %v1012_v47, %v1008_v60  ;;  %v1647_v60 = vrot.slane %v1628_v57, %v5004_v36  ;;  %v205_v57 = vld [vmem:[%s6041_s2 + $0x148] sm:$0xff] }
 0x65c   :  { %4445 = vmatmul.mubr.msk.f32.vlgmr.msra.gmra.mxu0 %vm238_vm1, %v5356_v46 }
 0x65d   :  { %4466 = vmatprep.mubr.msk.f32.mxu0 %vm4847_vm0, %v4846_v1  ;;  %4459 = vmatpush3.xpose.msk.msra.mxu0 %vm238_vm1, %v1665_v2 }
 0x65e   :  { %4460 = vmatprep.subr.mxu0 %v4846_v1 }
 0x661   :  { %4461 = vmatpush3.xpose.msk.msra.mxu0 %vm238_vm1, %v1664_v32 }
 0x662   :  { %4462 = vmatprep.subr.mxu0 %v4846_v1 }
 0x665   :  { %4463 = vmatpush3.xpose.msk.msra.mxu0 %vm238_vm1, %v1663_v27 }
 0x666   :  { %4464 = vmatprep.subr.mxu0 %v4846_v1 }
 0x669   :  { %4465 = vmatpush3.xpose.msk.msra.mxu0 %vm238_vm1, %v1662_v34 }
 0x703   :  { %v4421_v43 = vpop.f32.mrf.mxu0 }
 0x704   :  { %v1532_v5 = vmul.f32 %v4421_v43, %v5255_v0 }
 0x705   :  { %v1512_v4 = vpop.f32.mrf.mxu0 }
 0x706   :  { %v1531_v53 = vmul.f32 %v1512_v4, %v5243_v51 }
 0x707   :  { %v4424_v6 = vpop.f32.mrf.mxu0 }
 0x708   :  { %v1534_v7 = vmul.f32 %v4424_v6, %v5270_v48  ;;  %v1535_v9 = vadd.f32 %v1532_v5, %v1531_v53  ;;  %v1860_v5 = vrot.slane %v5387_v14, %v5139_v56 }
 0x709   :  { %v1522_v62 = vpop.f32.mrf.mxu0 }
 0x70a   :  { %v1533_v8 = vmul.f32 %v1522_v62, %v5261_v3  ;;  %v1771_v62 = vrot.slane %v5387_v14, %v4972_v24 }
 0x70c   :  { %v1536_v12 = vadd.f32 %v1534_v7, %v1533_v8 }
 0x70e   :  { %v1537_v13 = vadd.f32 %v1536_v12, %v1535_v9 }
 0x710   :  { %4434 = vmatmul.mubr.msk.f32.vlgmr.msra.gmra.mxu1 %vm238_vm1, %v1537_v13 }
 0x711   :  { %4455 = vmatprep.mubr.msk.f32.mxu1 %vm4847_vm0, %v4846_v1  ;;  %4448 = vmatpush3.xpose.msk.msra.mxu1 %vm238_vm1, %v1661_v30 }
 0x712   :  { %4449 = vmatprep.subr.mxu1 %v4846_v1 }
 0x71c   :  { %v4446_v16 = vpop.f32.mrf.mxu0 }
 0x71d   :  { %v5391_v17 = vadd.f32 %v4446_v16, %v1674_v15 }
 0x71e   :  { %v1759_v11 = vpop.f32.mrf.mxu0 }
 0x71f   :  { %v1760_v43 = vadd.f32 %v1759_v11, %v1674_v15  ;;  %v1944_v15 = vmul.f32 %v5391_v17, %v5016_v42  ;;  %v1948_v42 = vmul.f32 %v5391_v17, %v5052_v54 }
 0x721   :  { %v1943_v53 = vmul.f32 %v1760_v43, %v5011_v41  ;;  %v1945_v16 = vmul.f32 %v1760_v43, %v5021_v44  ;;  %v1950_v44 = vmul.f32 %v5391_v17, %v5071_v59 }
 0x7d0   :  { %v1623_v20 = vpop.f32.mrf.mxu1 }
 0x7d1   :  { %v1624_v21 = vadd.f32 %v1623_v20, %v1541_v18  ;;  %v1946_v18 = vmul.f32 %v5391_v17, %v5033_v49  ;;  %v1947_v20 = vmul.f32 %v1760_v43, %v5039_v50 }
 0x7d2   :  { %v4435_v25 = vpop.f32.mrf.mxu1 }
 0x7d3   :  { %v1627_v26 = vadd.f32 %v1624_v21, %v5088_v63  ;;  %v1660_v63 = vld [vmem:[%s6041_s2 + $0x300] sm:$0xff]  ;;  %v1949_v21 = vmul.f32 %v1760_v43, %v5058_v55  ;;  %v207_v43 = vld [vmem:[%s6041_s2 + $0x158] sm:$0xff] }
 0x7d4   :  { %4450 = vmatpush3.xpose.msk.msra.mxu1 %vm238_vm1, %v1660_v63 }
 0x7d5   :  { %v1629_v28 = vsel %vm238_vm1, %v1627_v26, 0.0  ;;  %v1633_v22 = vmul.f32 %v1627_v26, %v1627_v26  ;;  %4451 = vmatprep.subr.mxu1 %v4846_v1 }
 0x7d6   :  { %1630 = vadd.xlane.f32.xlu1 %v1629_v28 }
 0x7d7   :  { %v1634_v29 = vsel %vm238_vm1, %v1633_v22, 0.0 }
 0x7d8   :  { %4452 = vmatpush3.xpose.msk.msra.mxu1 %vm238_vm1, %v1659_v31 }
 0x7d9   :  { %4453 = vmatprep.subr.mxu1 %v4846_v1 }
 0x7da   :  { %1635 = vadd.xlane.f32.xlu1 %v1634_v29 }
 0x7dc   :  { %4454 = vmatpush3.xpose.msk.msra.mxu1 %vm238_vm1, %v1658_v23 }
 0x85f   :  { %v1631_v35 = vpop.xlane.xlu1 %1630 }
 0x860   :  { %v1632_v37 = vmul.f32 0.03125, %v1631_v35 }
 0x862   :  { %v1638_v40 = vmul.f32 %v1632_v37, %v1632_v37  ;;  %v1640_v58 = vsub.f32 %v1627_v26, %v1632_v37 }
 0x863   :  { %v1636_v38 = vpop.xlane.xlu1 %1635 }
 0x864   :  { %v1637_v45 = vmul.f32 0.03125, %v1636_v38 }
 0x866   :  { %v1639_v47 = vsub.f32 %v1637_v45, %v1638_v40  ;;  %v206_v45 = vld [vmem:[%s6041_s2 + $0x150] sm:$0xff] }
 0x868   :  { %v1641_v52 = vadd.f32 1e-05, %v1639_v47 }
 0x86a   :  { %4750 = vrsqrt.f32 %v1641_v52 }
 0x877   :  { %v4751_v39 = vpop.eup %4750 }
 0x878   :  { %v1643_v33 = vmul.f32 %v4751_v39, %v1640_v58 }
 0x87a   :  { %v1648_v4 = vmul.f32 %v1647_v60, %v1643_v33  ;;  %v208_v60 = vld [vmem:[%s6041_s2 + $0x160] sm:$0xff] }
 0x87c   :  { %v5441_v6 = vadd.f32 %v1652_v61, %v1648_v4 }
 0x87e   :  { %4456 = vmatmul.mubr.msk.f32.vlgmr.msra.gmra.mxu1 %vm238_vm1, %v5441_v6  ;;  %4467 = vmatmul.mubr.msk.f32.vlgmr.msra.gmra.mxu0 %vm238_vm1, %v5441_v6 }
 0x87f   :  { %4471 = vmatprep.mubr.msk.f32.mxu1 %vm238_vm1, %v1943_v53 }
 0x93e   :  { %v1853_v7 = vpop.f32.mrf.mxu1  ;;  %v1939_v8 = vpop.f32.mrf.mxu0 }
 0x93f   :  { %v1854_v9 = vadd.f32 %v1853_v7, %v1771_v62  ;;  %v1940_v12 = vadd.f32 %v1939_v8, %v1860_v5  ;;  %v210_v5 = vld [vmem:[%s6041_s2 + $0x170] sm:$0xff] }
 0x940   :  { %v4457_v13 = vpop.f32.mrf.mxu1  ;;  %v4468_v41 = vpop.f32.mrf.mxu0 }
 0x941   :  { %4469 = vmatprep.subr.msk.mxu1 %vm238_vm1, %v1854_v9  ;;  %4483 = vmatprep.subr.mxu0 %v1940_v12 }
 0x942   :  { %4470 = vmatpush3.xpose.msk.msra.mxu1 %vm238_vm1, %v1854_v9  ;;  %4484 = vmatpush3.msra.mxu0 %v1940_v12  ;;  %v209_v12 = vld [vmem:[%s6041_s2 + $0x168] sm:$0xff] }
 0x943   :  { %4508 = vmatprep.subr.mxu0 %v4846_v1 }
 0x945   :  { %4472 = vmatmul.mubr.msk.f32.vlgmr.msra.gmra.mxu1 %vm238_vm1, %v1944_v15 }
 0x946   :  { %4474 = vmatprep.mubr.msk.f32.mxu1 %vm238_vm1, %v1945_v16  ;;  %v212_v16 = vld [vmem:[%s6041_s2 + $0x180] sm:$0xff] }
 0x949   :  { %4475 = vmatmul.mubr.msk.f32.gmra.mxu1 %vm238_vm1, %v1946_v18 }
 0x94a   :  { %4477 = vmatprep.mubr.msk.f32.mxu1 %vm238_vm1, %v1947_v20 }
 0x94d   :  { %4478 = vmatmul.mubr.msk.f32.gmra.mxu1 %vm238_vm1, %v1948_v42 }
 0x94e   :  { %4480 = vmatprep.mubr.msk.f32.mxu1 %vm238_vm1, %v1949_v21  ;;  %v211_v21 = vld [vmem:[%s6041_s2 + $0x178] sm:$0xff] }
 0x951   :  { %4481 = vmatmul.mubr.msk.f32.gmra.mxu1 %vm238_vm1, %v1950_v44 }
 0xa05   :  { %v4473_v49 = vpop.f32.mrf.mxu1 }
 0xa06   :  { %v2084_v50 = vmul.f32 0.35355338, %v4473_v49 }
 0xa07   :  { %v2044_v25 = vpop.f32.mrf.mxu1 }
 0xa08   :  { %v2093_v26 = vmul.f32 1.442695, %v2084_v50  ;;  %v2083_v28 = vmul.f32 0.35355338, %v2044_v25 }
 0xa09   :  { %v4476_v22 = vpop.f32.mrf.mxu1 }
 0xa0a   :  { %4752 = vpow2.f32 %v2093_v26  ;;  %v2091_v29 = vmul.f32 1.442695, %v2083_v28  ;;  %v2086_v54 = vmul.f32 0.35355338, %v4476_v22 }
 0xa0b   :  { %v2054_v30 = vpop.f32.mrf.mxu1 }
 0xa0c   :  { %4754 = vpow2.f32 %v2091_v29  ;;  %v2097_v55 = vmul.f32 1.442695, %v2086_v54  ;;  %v2085_v2 = vmul.f32 0.35355338, %v2054_v30 }
 0xa0d   :  { %v4479_v63 = vpop.f32.mrf.mxu1 }
 0xa0e   :  { %4756 = vpow2.f32 %v2097_v55  ;;  %v2095_v32 = vmul.f32 1.442695, %v2085_v2  ;;  %v2088_v31 = vmul.f32 0.35355338, %v4479_v63 }
 0xa0f   :  { %v2064_v59 = vpop.f32.mrf.mxu1 }
 0xa10   :  { %4758 = vpow2.f32 %v2095_v32  ;;  %v2101_v17 = vmul.f32 1.442695, %v2088_v31  ;;  %v2087_v27 = vmul.f32 0.35355338, %v2064_v59 }
 0xa11   :  { %v4482_v23 = vpop.f32.mrf.mxu1 }
 0xa12   :  { %4760 = vpow2.f32 %v2101_v17  ;;  %v2099_v34 = vmul.f32 1.442695, %v2087_v27  ;;  %v2090_v35 = vmul.f32 0.35355338, %v4482_v23  ;;  %v2443_v23 = vld [vmem:[%s6041_s2 + $0x370] sm:$0xff] }
 0xa13   :  { %v2074_v37 = vpop.f32.mrf.mxu1 }
 0xa14   :  { %4762 = vpow2.f32 %v2099_v34  ;;  %v2105_v38 = vmul.f32 1.442695, %v2090_v35  ;;  %v2089_v40 = vmul.f32 0.35355338, %v2074_v37 }
 0xa16   :  { %4764 = vpow2.f32 %v2105_v38  ;;  %v2103_v47 = vmul.f32 1.442695, %v2089_v40  ;;  %v2442_v40 = vld [vmem:[%s6041_s2 + $0x368] sm:$0xff] }
 0xa17   :  { %v4753_v52 = vpop.eup %4752 }
 0xa18   :  { %4766 = vpow2.f32 %v2103_v47  ;;  %v2108_v11 = vmul.f32 %v4753_v52, %v206_v45 }
 0xa19   :  { %v4755_v58 = vpop.eup %4754 }
 0xa1a   :  { %v2118_v39 = vsel %vm1413_vm5, %v2108_v11, 0.0  ;;  %v2107_v33 = vmul.f32 %v4755_v58, %v205_v57 }
 0xa1b   :  { %v4757_v61 = vpop.eup %4756  ;;  %2119 = vadd.xlane.f32.xlu1 %v2118_v39 }
 0xa1c   :  { %v2115_v4 = vsel %vm1413_vm5, %v2107_v33, 0.0  ;;  %v2110_v53 = vmul.f32 %v4757_v61, %v208_v60  ;;  %v2440_v61 = vld [vmem:[%s6041_s2 + $0x358] sm:$0xff] }
 0xa1d   :  { %v4759_v62 = vpop.eup %4758  ;;  %2116 = vadd.xlane.f32.xlu0 %v2115_v4  ;;  %v1668_v4 = vld [vmem:[%s6041_s2 + $0x340] sm:$0xff] }
 0xa1e   :  { %v2124_v7 = vsel %vm1413_vm5, %v2110_v53, 0.0  ;;  %v2109_v8 = vmul.f32 %v4759_v62, %v207_v43  ;;  %v1669_v43 = vld [vmem:[%s6041_s2 + $0x348] sm:$0xff]  ;;  %v1666_v62 = vld [vmem:[%s6041_s2 + $0x330] sm:$0xff] }
 0xa1f   :  { %v4761_v9 = vpop.eup %4760  ;;  %2125 = vadd.xlane.f32.xlu1 %v2124_v7  ;;  %4497 = vmatprep.subr.msk.mxu1 %vm238_vm1, %v1669_v43 }
 0xa20   :  { %v2121_v13 = vsel %vm1413_vm5, %v2109_v8, 0.0  ;;  %v2112_v41 = vmul.f32 %v4761_v9, %v210_v5  ;;  %4498 = vmatpush3.xpose.msk.msra.mxu1 %vm238_vm1, %v1669_v43  ;;  %v2449_v43 = vld [vmem:[%s6041_s2 + $0x3a0] sm:$0xff] }
 0xa21   :  { %v4763_v15 = vpop.eup %4762  ;;  %2122 = vadd.xlane.f32.xlu0 %v2121_v13  ;;  %4499 = vmatprep.subr.msk.mxu1 %vm238_vm1, %v1668_v4 }
 0xa22   :  { %v2130_v18 = vsel %vm1413_vm5, %v2112_v41, 0.0  ;;  %v2111_v20 = vmul.f32 %v4763_v15, %v209_v12  ;;  %v4812_v15 = vld [vmem:[%s6041_s2 + $0x98] sm:$0xff] }
 0xa23   :  { %v4765_v42 = vpop.eup %4764  ;;  %2131 = vadd.xlane.f32.xlu1 %v2130_v18  ;;  %v4813_v18 = vld [vmem:[%s6041_s2 + $0xc0] sm:$0xff] }
 0xa24   :  { %v2127_v44 = vsel %vm1413_vm5, %v2111_v20, 0.0  ;;  %v2114_v49 = vmul.f32 %v4765_v42, %v212_v16  ;;  %4500 = vmatpush3.xpose.msk.msra.mxu1 %vm238_vm1, %v1668_v4  ;;  %v4814_v42 = vld [vmem:[%s6041_s2 + $0xa0] sm:$0xff]  ;;  %v2444_v4 = vld [vmem:[%s6041_s2 + $0x378] sm:$0xff] }
 0xa25   :  { %v4767_v50 = vpop.eup %4766  ;;  %2128 = vadd.xlane.f32.xlu0 %v2127_v44  ;;  %v4815_v44 = vld [vmem:[%s6041_s2 + $0xb0] sm:$0xff] }
 0xa26   :  { %v2136_v25 = vsel %vm1413_vm5, %v2114_v49, 0.0  ;;  %v2113_v26 = vmul.f32 %v4767_v50, %v211_v21 }
 0xa27   :  { %2137 = vadd.xlane.f32.xlu1 %v2136_v25  ;;  %v4816_v25 = vld [vmem:[%s6041_s2 + $0x88] sm:$0xff] }
 0xa28   :  { %v2133_v28 = vsel %vm1413_vm5, %v2113_v26, 0.0 }
 0xa29   :  { %2134 = vadd.xlane.f32.xlu0 %v2133_v28  ;;  %v4817_v28 = vld [vmem:[%s6041_s2 + $0xa8] sm:$0xff] }
 0xaa4   :  { %v2120_v22 = vpop.xlane.xlu1 %2119 }
 0xaa5   :  { %4768 = vrcp.f32 %v2120_v22 }
 0xaa6   :  { %v2117_v29 = vpop.xlane.xlu0 %2116 }
 0xaa7   :  { %4770 = vrcp.f32 %v2117_v29  ;;  %v4818_v29 = vld [vmem:[%s6041_s2 + $0xb8] sm:$0xff] }
 0xaa8   :  { %v2126_v54 = vpop.xlane.xlu1 %2125 }
 0xaa9   :  { %4772 = vrcp.f32 %v2126_v54 }
 0xaaa   :  { %v2123_v30 = vpop.xlane.xlu0 %2122 }
 0xaab   :  { %4774 = vrcp.f32 %v2123_v30  ;;  %v4819_v30 = vld [vmem:[%s6041_s2 + $0x90] sm:$0xff] }
 0xaac   :  { %v2132_v55 = vpop.xlane.xlu1 %2131 }
 0xaad   :  { %4776 = vrcp.f32 %v2132_v55 }
 0xaae   :  { %v2129_v2 = vpop.xlane.xlu0 %2128 }
 0xaaf   :  { %4778 = vrcp.f32 %v2129_v2 }
 0xab0   :  { %v2138_v63 = vpop.xlane.xlu1 %2137 }
 0xab1   :  { %4780 = vrcp.f32 %v2138_v63 }
 0xab2   :  { %v2135_v32 = vpop.xlane.xlu0 %2134  ;;  %v4769_v31 = vpop.eup %4768 }
 0xab3   :  { %4782 = vrcp.f32 %v2135_v32  ;;  %v2148_v27 = vmul.f32 %v4769_v31, %v2108_v11  ;;  %v2441_v11 = vld [vmem:[%s6041_s2 + $0x360] sm:$0xff] }
 0xab4   :  { %v4771_v59 = vpop.eup %4770 }
 0xab5   :  { %v2147_v17 = vmul.f32 %v4771_v59, %v2107_v33 }
 0xab6   :  { %v4773_v34 = vpop.eup %4772 }
 0xab7   :  { %4485 = vmatprep.mubr.msk.f32.mxu0 %vm1413_vm5, %v2147_v17  ;;  %v2150_v38 = vmul.f32 %v4773_v34, %v2110_v53  ;;  %v1667_v53 = vld [vmem:[%s6041_s2 + $0x338] sm:$0xff]  ;;  %v2301_v34 = vrot.slane %v5387_v14, %v5279_v19 }
 0xab8   :  { %v4775_v35 = vpop.eup %4774  ;;  %4486 = vmatmul.mubr.msk.f32.vlgmr.msra.gmra.mxu0 %vm1413_vm5, %v2148_v27  ;;  %4501 = vmatprep.subr.msk.mxu1 %vm238_vm1, %v1667_v53 }
 0xab9   :  { %4509 = vmatpush3.xpose.msk.msra.mxu0 %vm238_vm1, %v2443_v23  ;;  %v2149_v37 = vmul.f32 %v4775_v35, %v2109_v8  ;;  %4502 = vmatpush3.xpose.msk.msra.mxu1 %vm238_vm1, %v1667_v53  ;;  %v2448_v53 = vld [vmem:[%s6041_s2 + $0x398] sm:$0xff] }
 0xaba   :  { %4510 = vmatprep.subr.mxu0 %v4846_v1  ;;  %v4777_v45 = vpop.eup %4776  ;;  %4503 = vmatprep.subr.msk.mxu1 %vm238_vm1, %v1666_v62 }
 0xabb   :  { %4488 = vmatprep.mubr.msk.f32.mxu0 %vm1413_vm5, %v2149_v37  ;;  %v2152_v57 = vmul.f32 %v4777_v45, %v2112_v41 }
 0xabc   :  { %v4779_v47 = vpop.eup %4778  ;;  %4489 = vmatmul.mubr.msk.f32.gmra.mxu0 %vm1413_vm5, %v2150_v38 }
 0xabd   :  { %4511 = vmatpush3.xpose.msk.msra.mxu0 %vm238_vm1, %v2442_v40  ;;  %v2151_v52 = vmul.f32 %v4779_v47, %v2111_v20  ;;  %4504 = vmatpush3.xpose.msk.msra.mxu1 %vm238_vm1, %v1666_v62 }
 0xabe   :  { %4512 = vmatprep.subr.mxu0 %v4846_v1  ;;  %v4781_v58 = vpop.eup %4780 }
 0xabf   :  { %4491 = vmatprep.mubr.msk.f32.mxu0 %vm1413_vm5, %v2151_v52  ;;  %v2154_v33 = vmul.f32 %v4781_v58, %v2114_v49 }
 0xac0   :  { %v4783_v60 = vpop.eup %4782  ;;  %4492 = vmatmul.mubr.msk.f32.gmra.mxu0 %vm1413_vm5, %v2152_v57 }
 0xac1   :  { %4513 = vmatpush3.xpose.msk.msra.mxu0 %vm238_vm1, %v2441_v11  ;;  %v2153_v39 = vmul.f32 %v4783_v60, %v2113_v26 }
 0xac2   :  { %4514 = vmatprep.subr.mxu0 %v4846_v1 }
 0xac3   :  { %4494 = vmatprep.mubr.msk.f32.mxu0 %vm1413_vm5, %v2153_v39  ;;  %v2446_v39 = vld [vmem:[%s6041_s2 + $0x388] sm:$0xff] }
 0xac4   :  { %4495 = vmatmul.mubr.msk.f32.gmra.mxu0 %vm1413_vm5, %v2154_v33  ;;  %v2450_v33 = vld [vmem:[%s6041_s2 + $0x3a8] sm:$0xff] }
 0xac5   :  { %4515 = vmatpush3.xpose.msk.msra.mxu0 %vm238_vm1, %v2440_v61  ;;  %4516 = vmatprep.mubr.msk.f32.mxu0 %vm4847_vm0, %v4846_v1  ;;  %v2445_v61 = vld [vmem:[%s6041_s2 + $0x380] sm:$0xff] }
 0xac8   :  { %4517 = vmatmul.mubr.msk.f32.vlgmr.msra.gmra.mxu0 %vm238_vm1, %v5441_v6 }
 0xb78   :  { %v4487_v5 = vpop.f32.mrf.mxu0 }
 0xb79   :  { %v2285_v55 = vmul.f32 %v4819_v30, %v4487_v5 }
 0xb7a   :  { %v2245_v7 = vpop.f32.mrf.mxu0 }
 0xb7b   :  { %v2284_v26 = vmul.f32 %v4816_v25, %v2245_v7 }
 0xb7c   :  { %v4490_v8 = vpop.f32.mrf.mxu0 }
 0xb7d   :  { %v2287_v21 = vmul.f32 %v4814_v42, %v4490_v8 }
 0xb7e   :  { %v2255_v9 = vpop.f32.mrf.mxu0 }
 0xb7f   :  { %v2286_v16 = vmul.f32 %v4812_v15, %v2255_v9  ;;  %v2293_v59 = vadd.f32 %v2287_v21, %v2285_v55 }
 0xb80   :  { %v4493_v12 = vpop.f32.mrf.mxu0 }
 0xb81   :  { %v2289_v49 = vmul.f32 %v4815_v44, %v4493_v12  ;;  %v2292_v32 = vadd.f32 %v2286_v16, %v2284_v26  ;;  %v2397_v44 = vld [vmem:[%s6041_s2 + $0x500] sm:$0x3] }
 0xb82   :  { %v2265_v13 = vpop.f32.mrf.mxu0  ;;  %v2431_v26 = vrot.slane %v2397_v44, %v5004_v36 }
 0xb83   :  { %v2288_v22 = vmul.f32 %v4817_v28, %v2265_v13 }
 0xb84   :  { %v4496_v41 = vpop.f32.mrf.mxu0 }
 0xb85   :  { %v2291_v20 = vmul.f32 %v4813_v18, %v4496_v41 }
 0xb86   :  { %v2275_v50 = vpop.f32.mrf.mxu0 }
 0xb87   :  { %v2290_v54 = vmul.f32 %v4818_v29, %v2275_v50  ;;  %v2295_v2 = vadd.f32 %v2291_v20, %v2289_v49  ;;  %v5639_v49 = vld [vmem:[%s6041_s2 + $0x3d8] sm:$0xf] }
 0xb88   :  { %v5581_v63 = vpop.f32.mrf.mxu0  ;;  %v2460_v28 = vrot.slane %v5639_v49, %v5004_v36 }
 0xb89   :  { %v2294_v31 = vadd.f32 %v2290_v54, %v2288_v22  ;;  %v2297_v23 = vadd.f32 %v2295_v2, %v2293_v59  ;;  %v2437_v2 = vrot.slane %v2397_v44, %v4972_v24 }
 0xb8a   :  { %v4518_v17 = vpop.f32.mrf.mxu0 }
 0xb8b   :  { %v2296_v27 = vadd.f32 %v2294_v31, %v2292_v32  ;;  %v2540_v32 = vadd.f32 %v5581_v63, %v2460_v28  ;;  %v2546_v63 = vrot.slane %v5639_v49, %v4972_v24 }
 0xb8d   :  { %4505 = vmatprep.mubr.msk.f32.mxu1 %vm238_vm1, %v2296_v27  ;;  %v2731_v27 = vmul.f32 %v2540_v32, %v5243_v51 }
 0xb8e   :  { %4506 = vmatmul.mubr.msk.f32.vlgmr.msra.gmra.mxu1 %vm238_vm1, %v2297_v23  ;;  %v2643_v23 = vrot.slane %v5639_v49, %v5139_v56  ;;  %v2732_v56 = vmul.f32 %v2540_v32, %v5255_v0 }
 0xc4e   :  { %v4507_v35 = vpop.f32.mrf.mxu1 }
 0xc4f   :  { %v2392_v37 = vadd.f32 %v4507_v35, %v2301_v34 }
 0xc50   :  { %v2386_v38 = vpop.f32.mrf.mxu1 }
 0xc51   :  { %v2396_v40 = vadd.f32 %v2392_v37, %v5356_v46  ;;  %v2387_v45 = vadd.f32 %v2386_v38, %v2301_v34  ;;  %v2447_v46 = vld [vmem:[%s6041_s2 + $0x390] sm:$0xff] }
 0xc52   :  { %4519 = vmatprep.subr.msk.mxu1 %vm238_vm1, %v2447_v46 }
 0xc53   :  { %v2395_v47 = vadd.f32 %v2387_v45, %v5352_v10  ;;  %v2401_v52 = vsel %vm238_vm1, %v2396_v40, 0.0  ;;  %v2407_v57 = vmul.f32 %v2396_v40, %v2396_v40  ;;  %v2451_v10 = vld [vmem:[%s6041_s2 + $0x3b0] sm:$0xff]  ;;  %4520 = vmatpush3.xpose.msk.msra.mxu1 %vm238_vm1, %v2447_v46 }
 0xc54   :  { %2402 = vadd.xlane.f32.xlu1 %v2401_v52  ;;  %4530 = vmatprep.subr.msk.mxu0 %vm238_vm1, %v2451_v10  ;;  %v2733_v52 = vmul.f32 %v2540_v32, %v5261_v3 }
 0xc55   :  { %v2398_v11 = vsel %vm238_vm1, %v2395_v47, 0.0  ;;  %v2406_v58 = vmul.f32 %v2395_v47, %v2395_v47  ;;  %v2411_v60 = vsel %vm238_vm1, %v2407_v57, 0.0  ;;  %4531 = vmatpush3.xpose.msk.msra.mxu0 %vm238_vm1, %v2451_v10  ;;  %4521 = vmatprep.subr.msk.mxu1 %vm238_vm1, %v2446_v39  ;;  %v2734_v57 = vmul.f32 %v2540_v32, %v5270_v48 }
 0xc56   :  { %2399 = vadd.xlane.f32.xlu0 %v2398_v11  ;;  %4532 = vmatprep.subr.msk.mxu0 %vm238_vm1, %v2450_v33 }
 0xc57   :  { %v2408_v14 = vsel %vm238_vm1, %v2406_v58, 0.0  ;;  %4522 = vmatpush3.xpose.msk.msra.mxu1 %vm238_vm1, %v2446_v39 }
 0xc58   :  { %2412 = vadd.xlane.f32.xlu1 %v2411_v60  ;;  %4523 = vmatprep.subr.msk.mxu1 %vm238_vm1, %v2445_v61 }
 0xc59   :  { %4533 = vmatpush3.xpose.msk.msra.mxu0 %vm238_vm1, %v2450_v33 }
 0xc5a   :  { %2409 = vadd.xlane.f32.xlu0 %v2408_v14  ;;  %4534 = vmatprep.subr.msk.mxu0 %vm238_vm1, %v2449_v43 }
 0xc5b   :  { %4524 = vmatpush3.xpose.msk.msra.mxu1 %vm238_vm1, %v2445_v61 }
 0xc5c   :  { %4525 = vmatprep.subr.msk.mxu1 %vm238_vm1, %v2444_v4 }
 0xc5d   :  { %4535 = vmatpush3.xpose.msk.msra.mxu0 %vm238_vm1, %v2449_v43  ;;  %v214_v43 = vld [vmem:[%s6041_s2 + $0x190] sm:$0xff] }
 0xc5e   :  { %4536 = vmatprep.subr.msk.mxu0 %vm238_vm1, %v2448_v53 }
 0xc5f   :  { %4526 = vmatpush3.xpose.msk.msra.mxu1 %vm238_vm1, %v2444_v4 }
 0xc61   :  { %4537 = vmatpush3.xpose.msk.msra.mxu0 %vm238_vm1, %v2448_v53  ;;  %v213_v53 = vld [vmem:[%s6041_s2 + $0x188] sm:$0xff] }
 0xcdd   :  { %v2403_v62 = vpop.xlane.xlu1 %2402 }
 0xcde   :  { %v2405_v5 = vmul.f32 0.03125, %v2403_v62 }
 0xcdf   :  { %v2400_v7 = vpop.xlane.xlu0 %2399 }
 0xce0   :  { %v2404_v8 = vmul.f32 0.03125, %v2400_v7  ;;  %v2417_v12 = vmul.f32 %v2405_v5, %v2405_v5  ;;  %v2421_v50 = vsub.f32 %v2396_v40, %v2405_v5  ;;  %v216_v7 = vld [vmem:[%s6041_s2 + $0x1a0] sm:$0xff] }
 0xce1   :  { %v2413_v9 = vpop.xlane.xlu1 %2412 }
 0xce2   :  { %v2415_v13 = vmul.f32 0.03125, %v2413_v9  ;;  %v2416_v15 = vmul.f32 %v2404_v8, %v2404_v8  ;;  %v2420_v22 = vsub.f32 %v2395_v47, %v2404_v8 }
 0xce3   :  { %v2410_v41 = vpop.xlane.xlu0 %2409 }
 0xce4   :  { %v2419_v16 = vsub.f32 %v2415_v13, %v2417_v12  ;;  %v2414_v18 = vmul.f32 0.03125, %v2410_v41  ;;  %v215_v13 = vld [vmem:[%s6041_s2 + $0x198] sm:$0xff] }
 0xce6   :  { %v2423_v20 = vadd.f32 1e-05, %v2419_v16  ;;  %v2418_v42 = vsub.f32 %v2414_v18, %v2416_v15 }
 0xce8   :  { %4784 = vrsqrt.f32 %v2423_v20  ;;  %v2422_v21 = vadd.f32 1e-05, %v2418_v42 }
 0xcea   :  { %4786 = vrsqrt.f32 %v2422_v21 }
 0xcf5   :  { %v4785_v25 = vpop.eup %4784 }
 0xcf6   :  { %v2427_v29 = vmul.f32 %v4785_v25, %v2421_v50 }
 0xcf7   :  { %v4787_v54 = vpop.eup %4786 }
 0xcf8   :  { %v2426_v30 = vmul.f32 %v4787_v54, %v2420_v22  ;;  %v2433_v55 = vmul.f32 %v2431_v26, %v2427_v29  ;;  %v2455_v54 = vld [vmem:[%s6041_s2 + $0x3d0] sm:$0xff] }
 0xcfa   :  { %v2432_v31 = vmul.f32 %v2431_v26, %v2426_v30  ;;  %v5648_v17 = vadd.f32 %v2437_v2, %v2433_v55 }
 0xcfc   :  { %v5646_v59 = vadd.f32 %v2437_v2, %v2432_v31  ;;  %v2454_v31 = vld [vmem:[%s6041_s2 + $0x3c8] sm:$0xff] }
 0xcfe   :  { %4527 = vmatprep.mubr.msk.f32.mxu1 %vm238_vm1, %v5646_v59  ;;  %4538 = vmatprep.mubr.msk.f32.mxu0 %vm238_vm1, %v5646_v59 }
 0xcff   :  { %4528 = vmatmul.mubr.msk.f32.vlgmr.msra.gmra.mxu1 %vm238_vm1, %v5648_v17  ;;  %4539 = vmatmul.mubr.msk.f32.vlgmr.msra.gmra.mxu0 %vm238_vm1, %v5648_v17 }
 0xd00   :  { %4545 = vmatprep.mubr.msk.f32.mxu1 %vm238_vm1, %v2731_v27  ;;  %v2453_v27 = vld [vmem:[%s6041_s2 + $0x3c0] sm:$0xff] }
 0xdbf   :  { %v4529_v34 = vpop.f32.mrf.mxu1  ;;  %v4540_v35 = vpop.f32.mrf.mxu0 }
 0xdc0   :  { %v2637_v37 = vadd.f32 %v4529_v34, %v2546_v63  ;;  %v2728_v38 = vadd.f32 %v4540_v35, %v2643_v23 }
 0xdc1   :  { %v2631_v40 = vpop.f32.mrf.mxu1  ;;  %v2722_v51 = vpop.f32.mrf.mxu0 }
 0xdc2   :  { %v2632_v45 = vadd.f32 %v2631_v40, %v2546_v63  ;;  %v2723_v47 = vadd.f32 %v2722_v51, %v2643_v23  ;;  %4541 = vmatprep.subr.msk.mxu1 %vm238_vm1, %v2637_v37  ;;  %4551 = vmatprep.subr.mxu0 %v2728_v38  ;;  %v2452_v63 = vld [vmem:[%s6041_s2 + $0x3b8] sm:$0xff] }
 0xdc3   :  { %4542 = vmatpush3.xpose.msk.msra.mxu1 %vm238_vm1, %v2637_v37  ;;  %4552 = vmatpush3.msra.mxu0 %v2728_v38  ;;  %v3101_v23 = vld [vmem:[%s6041_s2 + $0x418] sm:$0xff]  ;;  %v4820_v38 = vld [vmem:[%s6041_s2 + $0xc8] sm:$0xff] }
 0xdc4   :  { %4543 = vmatprep.subr.msk.mxu1 %vm238_vm1, %v2632_v45  ;;  %4553 = vmatprep.subr.mxu0 %v2723_v47 }
 0xdc5   :  { %4554 = vmatpush3.msra.mxu0 %v2723_v47 }
 0xdc6   :  { %4561 = vmatprep.subr.mxu0 %v4846_v1 }
 0xdc7   :  { %4544 = vmatpush3.xpose.msk.msra.mxu1 %vm238_vm1, %v2632_v45  ;;  %v4821_v45 = vld [vmem:[%s6041_s2 + $0xd0] sm:$0xff] }
 0xdc8   :  { %4629 = vmatprep.subr.mxu1 %v4846_v1 }
 0xdca   :  { %4546 = vmatmul.mubr.msk.f32.vlgmr.msra.gmra.mxu1 %vm238_vm1, %v2732_v56  ;;  %v4822_v56 = vld [vmem:[%s6041_s2 + $0xe0] sm:$0xff] }
 0xdcb   :  { %4548 = vmatprep.mubr.msk.f32.mxu1 %vm238_vm1, %v2733_v52 }
 0xdce   :  { %4549 = vmatmul.mubr.msk.f32.gmra.mxu1 %vm238_vm1, %v2734_v57  ;;  %v4823_v57 = vld [vmem:[%s6041_s2 + $0xd8] sm:$0xff] }
 0xdcf   :  { %4645 = vmatprep.mubr.msk.f32.mxu1 %vm4847_vm0, %v4846_v1 }
 0xe8a   :  { %v4547_v11 = vpop.f32.mrf.mxu1 }
 0xe8b   :  { %v2839_v58 = vmul.f32 0.35355338, %v4547_v11 }
 0xe8c   :  { %v2819_v60 = vpop.f32.mrf.mxu1 }
 0xe8d   :  { %v2844_v14 = vmul.f32 1.442695, %v2839_v58  ;;  %v2838_v0 = vmul.f32 0.35355338, %v2819_v60 }
 0xe8e   :  { %v4550_v46 = vpop.f32.mrf.mxu1 }
 0xe8f   :  { %4788 = vpow2.f32 %v2844_v14  ;;  %v2842_v10 = vmul.f32 1.442695, %v2838_v0  ;;  %v2841_v3 = vmul.f32 0.35355338, %v4550_v46  ;;  %v3100_v0 = vld [vmem:[%s6041_s2 + $0x410] sm:$0xff]  ;;  %v3099_v46 = vld [vmem:[%s6041_s2 + $0x408] sm:$0xff] }
 0xe90   :  { %v2829_v39 = vpop.f32.mrf.mxu1 }
 0xe91   :  { %4790 = vpow2.f32 %v2842_v10  ;;  %v2848_v33 = vmul.f32 1.442695, %v2841_v3  ;;  %v2840_v61 = vmul.f32 0.35355338, %v2829_v39  ;;  %v3098_v10 = vld [vmem:[%s6041_s2 + $0x400] sm:$0xff]  ;;  %v3097_v3 = vld [vmem:[%s6041_s2 + $0x3f8] sm:$0xff] }
 0xe92   :  { %v3096_v39 = vld [vmem:[%s6041_s2 + $0x3f0] sm:$0xff] }
 0xe93   :  { %4792 = vpow2.f32 %v2848_v33  ;;  %v2846_v48 = vmul.f32 1.442695, %v2840_v61  ;;  %v3095_v33 = vld [vmem:[%s6041_s2 + $0x3e8] sm:$0xff]  ;;  %v3094_v61 = vld [vmem:[%s6041_s2 + $0x3e0] sm:$0xff] }
 0xe95   :  { %4794 = vpow2.f32 %v2846_v48  ;;  %v3109_v48 = vld [vmem:[%s6041_s2 + $0x458] sm:$0xff] }
 0xe9c   :  { %v4789_v4 = vpop.eup %4788 }
 0xe9d   :  { %v2851_v62 = vmul.f32 %v4789_v4, %v214_v43  ;;  %v3108_v43 = vld [vmem:[%s6041_s2 + $0x450] sm:$0xff]  ;;  %v3107_v4 = vld [vmem:[%s6041_s2 + $0x448] sm:$0xff] }
 0xe9e   :  { %v4791_v5 = vpop.eup %4790 }
 0xe9f   :  { %v2857_v8 = vsel %vm689_vm4, %v2851_v62, 0.0  ;;  %v2850_v9 = vmul.f32 %v4791_v5, %v213_v53  ;;  %v3106_v53 = vld [vmem:[%s6041_s2 + $0x440] sm:$0xff]  ;;  %v3104_v5 = vld [vmem:[%s6041_s2 + $0x430] sm:$0xff] }
 0xea0   :  { %v4793_v12 = vpop.eup %4792  ;;  %2858 = vadd.xlane.f32.xlu1 %v2857_v8  ;;  %v3102_v8 = vld [vmem:[%s6041_s2 + $0x420] sm:$0xff] }
 0xea1   :  { %v2854_v41 = vsel %vm689_vm4, %v2850_v9, 0.0  ;;  %v2853_v15 = vmul.f32 %v4793_v12, %v216_v7  ;;  %v3103_v7 = vld [vmem:[%s6041_s2 + $0x428] sm:$0xff] }
 0xea2   :  { %v4795_v16 = vpop.eup %4794  ;;  %2855 = vadd.xlane.f32.xlu0 %v2854_v41 }
 0xea3   :  { %v2863_v18 = vsel %vm689_vm4, %v2853_v15, 0.0  ;;  %v2852_v20 = vmul.f32 %v4795_v16, %v215_v13 }
 0xea4   :  { %2864 = vadd.xlane.f32.xlu1 %v2863_v18 }
 0xea5   :  { %v2860_v42 = vsel %vm689_vm4, %v2852_v20, 0.0 }
 0xea6   :  { %2861 = vadd.xlane.f32.xlu0 %v2860_v42 }
 0xf29   :  { %v2859_v21 = vpop.xlane.xlu1 %2858 }
 0xf2a   :  { %4796 = vrcp.f32 %v2859_v21 }
 0xf2b   :  { %v2856_v44 = vpop.xlane.xlu0 %2855 }
 0xf2c   :  { %4798 = vrcp.f32 %v2856_v44 }
 0xf2d   :  { %v2865_v50 = vpop.xlane.xlu1 %2864 }
 0xf2e   :  { %4800 = vrcp.f32 %v2865_v50 }
 0xf2f   :  { %v2862_v25 = vpop.xlane.xlu0 %2861 }
 0xf30   :  { %4802 = vrcp.f32 %v2862_v25  ;;  %v3355_v25 = vld [vmem:[%s6041_s2 + $0x4a0] sm:$0xff] }
 0xf37   :  { %v4797_v26 = vpop.eup %4796 }
 0xf38   :  { %v2871_v29 = vmul.f32 %v4797_v26, %v2851_v62  ;;  %v3105_v62 = vld [vmem:[%s6041_s2 + $0x438] sm:$0xff] }
 0xf39   :  { %v4799_v28 = vpop.eup %4798  ;;  %v3354_v26 = vld [vmem:[%s6041_s2 + $0x498] sm:$0xff] }
 0xf3a   :  { %v2870_v22 = vmul.f32 %v4799_v28, %v2850_v9  ;;  %v2981_v9 = vrot.slane %v5639_v49, %v5279_v19  ;;  %v4023_v19 = vld [vmem:[%s6042_s3 + $0x28] ss:$0 sm:$0xff]  ;;  %v3353_v28 = vld [vmem:[%s6041_s2 + $0x490] sm:$0xff] }
 0xf3b   :  { %v4801_v30 = vpop.eup %4800 }
 0xf3c   :  { %4555 = vmatprep.mubr.msk.f32.mxu0 %vm689_vm4, %v2870_v22  ;;  %v2873_v32 = vmul.f32 %v4801_v30, %v2853_v15  ;;  %v3352_v22 = vld [vmem:[%s6041_s2 + $0x488] sm:$0xff]  ;;  %v3349_v30 = vld [vmem:[%s6041_s2 + $0x470] sm:$0xff] }
 0xf3d   :  { %v4803_v55 = vpop.eup %4802  ;;  %4556 = vmatmul.mubr.msk.f32.vlgmr.msra.gmra.mxu0 %vm689_vm4, %v2871_v29  ;;  %v3351_v29 = vld [vmem:[%s6041_s2 + $0x480] sm:$0xff] }
 0xf3e   :  { %v2872_v2 = vmul.f32 %v4803_v55, %v2852_v20  ;;  %4562 = vmatpush3.xpose.msk.msra.mxu0 %vm238_vm1, %v2455_v54  ;;  %v3350_v54 = vld [vmem:[%s6041_s2 + $0x478] sm:$0xff]  ;;  %v3348_v55 = vld [vmem:[%s6041_s2 + $0x468] sm:$0xff] }
 0xf3f   :  { %4563 = vmatprep.subr.mxu0 %v4846_v1 }
 0xf40   :  { %4558 = vmatprep.mubr.msk.f32.mxu0 %vm689_vm4, %v2872_v2  ;;  %v3363_v2 = vld [vmem:[%s6041_s2 + $0x4e0] sm:$0xff] }
 0xf41   :  { %4559 = vmatmul.mubr.msk.f32.gmra.mxu0 %vm689_vm4, %v2873_v32  ;;  %v3362_v32 = vld [vmem:[%s6041_s2 + $0x4d8] sm:$0xff]  ;;  %4630 = vmatpush3.msra.mxu1 %v3363_v2 }
 0xf42   :  { %4569 = vmatprep.mubr.msk.f32.mxu0 %vm4847_vm0, %v4846_v1  ;;  %4564 = vmatpush3.xpose.msk.msra.mxu0 %vm238_vm1, %v2454_v31  ;;  %v3361_v31 = vld [vmem:[%s6041_s2 + $0x4d0] sm:$0xff] }
 0xf43   :  { %4565 = vmatprep.subr.mxu0 %v4846_v1  ;;  %4631 = vmatprep.subr.mxu1 %v4846_v1 }
 0xf44   :  { %4632 = vmatpush3.msra.mxu1 %v3362_v32 }
 0xf45   :  { %4633 = vmatprep.subr.mxu1 %v4846_v1 }
 0xf46   :  { %4566 = vmatpush3.xpose.msk.msra.mxu0 %vm238_vm1, %v2453_v27  ;;  %v3360_v27 = vld [vmem:[%s6041_s2 + $0x4c8] sm:$0xff]  ;;  %4634 = vmatpush3.msra.mxu1 %v3361_v31 }
 0xf47   :  { %4567 = vmatprep.subr.mxu0 %v4846_v1  ;;  %4635 = vmatprep.subr.mxu1 %v4846_v1 }
 0xf48   :  { %4636 = vmatpush3.msra.mxu1 %v3360_v27 }
 0xf49   :  { %4637 = vmatprep.subr.mxu1 %v4846_v1 }
 0xf4a   :  { %4568 = vmatpush3.xpose.msk.msra.mxu0 %vm238_vm1, %v2452_v63  ;;  %v3359_v63 = vld [vmem:[%s6041_s2 + $0x4c0] sm:$0xff] }
 0xf4b   :  { %4572 = vmatprep.subr.msk.mxu0 %vm238_vm1, %v3101_v23  ;;  %4638 = vmatpush3.msra.mxu1 %v3359_v63 }
 0xf4c   :  { %4639 = vmatprep.subr.mxu1 %v4846_v1 }
 0xffd   :  { %v4557_v34 = vpop.f32.mrf.mxu0 }
 0xffe   :  { %v2972_v47 = vmul.f32 %v4821_v45, %v4557_v34  ;;  %v3068_v45 = vld [vmem:[%s6041_s2 + $0x508] sm:$0x3] }
 0xfff   :  { %v2952_v35 = vpop.f32.mrf.mxu0 }
0x1000   :  { %v2971_v40 = vmul.f32 %v4820_v38, %v2952_v35 }
0x1001   :  { %v4560_v37 = vpop.f32.mrf.mxu0 }
0x1002   :  { %v2974_v52 = vmul.f32 %v4822_v56, %v4560_v37  ;;  %v2975_v58 = vadd.f32 %v2972_v47, %v2971_v40  ;;  %v3087_v56 = vrot.slane %v3068_v45, %v5004_v36 }
0x1003   :  { %v2962_v51 = vpop.f32.mrf.mxu0 }
0x1004   :  { %v2973_v11 = vmul.f32 %v4823_v57, %v2962_v51 }
0x1006   :  { %v2976_v60 = vadd.f32 %v2974_v52, %v2973_v11  ;;  %v3092_v11 = vrot.slane %v3068_v45, %v4972_v24 }
0x1008   :  { %v2977_v14 = vadd.f32 %v2976_v60, %v2975_v58 }
0x100a   :  { %4570 = vmatmul.mubr.msk.f32.vlgmr.msra.gmra.mxu0 %vm238_vm1, %v2977_v14  ;;  %v4034_v14 = vld [vmem:[%s6041_s2 + $0x460] ss:$0 sm:$0xff] }
0x100b   :  { %4573 = vmatpush3.xpose.msk.msra.mxu0 %vm238_vm1, %v3101_v23  ;;  %4588 = vmatprep.mubr.msk.f32.mxu0 %vm238_vm1, %v5646_v59 }
0x100c   :  { %4574 = vmatprep.subr.msk.mxu0 %vm238_vm1, %v3100_v0 }
0x100f   :  { %4575 = vmatpush3.xpose.msk.msra.mxu0 %vm238_vm1, %v3100_v0 }
0x1010   :  { %4576 = vmatprep.subr.msk.mxu0 %vm238_vm1, %v3099_v46 }
0x1013   :  { %4577 = vmatpush3.xpose.msk.msra.mxu0 %vm238_vm1, %v3099_v46 }
0x1014   :  { %4578 = vmatprep.subr.msk.mxu0 %vm238_vm1, %v3098_v10 }
0x1017   :  { %4579 = vmatpush3.xpose.msk.msra.mxu0 %vm238_vm1, %v3098_v10 }
0x1018   :  { %4580 = vmatprep.subr.msk.mxu0 %vm238_vm1, %v3097_v3 }
0x101b   :  { %4581 = vmatpush3.xpose.msk.msra.mxu0 %vm238_vm1, %v3097_v3 }
0x101c   :  { %4582 = vmatprep.subr.msk.mxu0 %vm238_vm1, %v3096_v39 }
0x101f   :  { %4583 = vmatpush3.xpose.msk.msra.mxu0 %vm238_vm1, %v3096_v39 }
0x1020   :  { %4584 = vmatprep.subr.msk.mxu0 %vm238_vm1, %v3095_v33 }
0x1023   :  { %4585 = vmatpush3.xpose.msk.msra.mxu0 %vm238_vm1, %v3095_v33  ;;  %v3358_v33 = vld [vmem:[%s6041_s2 + $0x4b8] sm:$0xff] }
0x1024   :  { %4586 = vmatprep.subr.msk.mxu0 %vm238_vm1, %v3094_v61  ;;  %4640 = vmatpush3.msra.mxu1 %v3358_v33 }
0x1025   :  { %4641 = vmatprep.subr.mxu1 %v4846_v1 }
0x1027   :  { %4587 = vmatpush3.xpose.msk.msra.mxu0 %vm238_vm1, %v3094_v61 }
0x1028   :  { %4591 = vmatprep.subr.mxu0 %v3109_v48 }
0x102a   :  { %4589 = vmatmul.mubr.msk.f32.vlgmr.msra.gmra.mxu0 %vm238_vm1, %v5648_v17 }
0x102b   :  { %4592 = vmatpush3.msra.mxu0 %v3109_v48 }
0x102c   :  { %4593 = vmatprep.subr.mxu0 %v3108_v43 }
0x102d   :  { %4594 = vmatpush3.msra.mxu0 %v3108_v43  ;;  %v3356_v43 = vld [vmem:[%s6041_s2 + $0x4a8] sm:$0xff] }
0x102e   :  { %4595 = vmatprep.subr.mxu0 %v3107_v4 }
0x102f   :  { %4596 = vmatpush3.msra.mxu0 %v3107_v4 }
0x1030   :  { %4597 = vmatprep.subr.mxu0 %v3106_v53 }
0x1031   :  { %4598 = vmatpush3.msra.mxu0 %v3106_v53 }
0x1032   :  { %4599 = vmatprep.subr.mxu0 %v3105_v62 }
0x1033   :  { %4600 = vmatpush3.msra.mxu0 %v3105_v62  ;;  %v4037_v62 = vld [vmem:[%s6042_s3 + $0x30] ss:$0 sm:$0xff] }
0x1034   :  { %4601 = vmatprep.subr.mxu0 %v3104_v5 }
0x1035   :  { %4602 = vmatpush3.msra.mxu0 %v3104_v5 }
0x1036   :  { %4603 = vmatprep.subr.mxu0 %v3103_v7 }
0x1037   :  { %4604 = vmatpush3.msra.mxu0 %v3103_v7 }
0x1038   :  { %4605 = vmatprep.subr.mxu0 %v3102_v8 }
0x1039   :  { %4606 = vmatpush3.msra.mxu0 %v3102_v8 }
0x103a   :  { %4610 = vmatprep.subr.mxu0 %v4846_v1 }
0x10ca   :  { %v3063_v12 = vpop.f32.mrf.mxu0 }
0x10cb   :  { %v3064_v13 = vadd.f32 %v3063_v12, %v2981_v9  ;;  %v4047_v12 = vld [vmem:[%s6041_s2 + $0x4e8] ss:$0 sm:$0xff] }
0x10cc   :  { %v4571_v41 = vpop.f32.mrf.mxu0 }
0x10cd   :  { %v5804_v15 = vadd.f32 %v3064_v13, %v5441_v6 }
0x10cf   :  { %v3069_v16 = vsel %vm238_vm1, %v5804_v15, 0.0  ;;  %v3073_v18 = vmul.f32 %v5804_v15, %v5804_v15 }
0x10d0   :  { %3070 = vadd.xlane.f32.xlu0 %v3069_v16 }
0x10d1   :  { %v3074_v20 = vsel %vm238_vm1, %v3073_v18, 0.0 }
0x10d2   :  { %3075 = vadd.xlane.f32.xlu1 %v3074_v20 }
0x10ea   :  { %v4590_v49 = vpop.f32.mrf.mxu0 }
0x10eb   :  { %v3212_v42 = vadd.f32 %v4590_v49, %v4023_v19 }
0x10ec   :  { %v3206_v21 = vpop.f32.mrf.mxu0 }
0x10ed   :  { %v3207_v44 = vadd.f32 %v4023_v19, %v3206_v21  ;;  %v3216_v50 = vmax.f32 %v3212_v42, 0.0 }
0x10ef   :  { %v3215_v6 = vmax.f32 %v3207_v44, 0.0 }
0x10f1   :  { %4607 = vmatprep.mubr.msk.f32.mxu0 %vm3221_vm6, %v3215_v6 }
0x10f2   :  { %4608 = vmatmul.mubr.msk.f32.vlgmr.msra.gmra.mxu0 %vm3221_vm6, %v3216_v50 }
0x10f3   :  { %4611 = vmatpush3.xpose.msk.msra.mxu0 %vm238_vm1, %v3355_v25  ;;  %4626 = vmatprep.mubr.msk.f32.mxu0 %vm4847_vm0, %v4846_v1 }
0x10f4   :  { %4612 = vmatprep.subr.mxu0 %v4846_v1 }
0x10f7   :  { %4613 = vmatpush3.xpose.msk.msra.mxu0 %vm238_vm1, %v3354_v26 }
0x10f8   :  { %4614 = vmatprep.subr.mxu0 %v4846_v1 }
0x10fb   :  { %4615 = vmatpush3.xpose.msk.msra.mxu0 %vm238_vm1, %v3353_v28 }
0x10fc   :  { %4616 = vmatprep.subr.mxu0 %v4846_v1 }
0x10ff   :  { %4617 = vmatpush3.xpose.msk.msra.mxu0 %vm238_vm1, %v3352_v22 }
0x1100   :  { %4618 = vmatprep.subr.mxu0 %v4846_v1 }
0x1103   :  { %4619 = vmatpush3.xpose.msk.msra.mxu0 %vm238_vm1, %v3351_v29 }
0x1104   :  { %4620 = vmatprep.subr.mxu0 %v4846_v1 }
0x1107   :  { %4621 = vmatpush3.xpose.msk.msra.mxu0 %vm238_vm1, %v3350_v54 }
0x1108   :  { %4622 = vmatprep.subr.mxu0 %v4846_v1 }
0x110b   :  { %4623 = vmatpush3.xpose.msk.msra.mxu0 %vm238_vm1, %v3349_v30 }
0x110c   :  { %4624 = vmatprep.subr.mxu0 %v4846_v1 }
0x110f   :  { %4625 = vmatpush3.xpose.msk.msra.mxu0 %vm238_vm1, %v3348_v55 }
0x1159   :  { %v3071_v23 = vpop.xlane.xlu0 %3070 }
0x115a   :  { %v3072_v34 = vmul.f32 0.03125, %v3071_v23 }
0x115b   :  { %v3076_v35 = vpop.xlane.xlu1 %3075 }
0x115c   :  { %v3078_v37 = vmul.f32 %v3072_v34, %v3072_v34  ;;  %v3077_v38 = vmul.f32 0.03125, %v3076_v35  ;;  %v3080_v47 = vsub.f32 %v5804_v15, %v3072_v34 }
0x115e   :  { %v3079_v40 = vsub.f32 %v3077_v38, %v3078_v37  ;;  %v3546_v38 = vld [vmem:[%s6041_s2 + $0x518] sm:$0x3] }
0x115f   :  { %v3565_v45 = vrot.slane %v3546_v38, %v5004_v36 }
0x1160   :  { %v3081_v51 = vadd.f32 1e-05, %v3079_v40 }
0x1162   :  { %4804 = vrsqrt.f32 %v3081_v51 }
0x116f   :  { %v4805_v52 = vpop.eup %4804 }
0x1170   :  { %v3083_v57 = vmul.f32 %v4805_v52, %v3080_v47 }
0x1172   :  { %v3088_v58 = vmul.f32 %v3087_v56, %v3083_v57  ;;  %v3305_v56 = vld [vmem:[%s6041_s2 + $0x510] sm:$0x3] }
0x1174   :  { %v3093_v60 = vadd.f32 %v3092_v11, %v3088_v58  ;;  %v3570_v11 = vrot.slane %v3546_v38, %v4972_v24 }
0x1176   :  { %4627 = vmatmul.mubr.msk.f32.vlgmr.msra.gmra.mxu0 %vm238_vm1, %v3093_v60 }
0x11b2   :  { %v4609_v0 = vpop.f32.mrf.mxu0 }
0x11b3   :  { %v3300_v46 = vadd.f32 %v4609_v0, %v4034_v14 }
0x11b4   :  { %v3294_v10 = vpop.f32.mrf.mxu0 }
0x11b5   :  { %v5888_v3 = vadd.f32 %v3300_v46, %v5648_v17  ;;  %v3295_v39 = vadd.f32 %v4034_v14, %v3294_v10  ;;  %v3357_v17 = vld [vmem:[%s6041_s2 + $0x4b0] sm:$0xff]  ;;  %v3339_v14 = vrot.slane %v3305_v56, %v5004_v36 }
0x11b6   :  { %4642 = vmatpush3.msra.mxu1 %v3357_v17 }
0x11b7   :  { %v5894_v61 = vadd.f32 %v3295_v39, %v5646_v59  ;;  %v3309_v48 = vsel %vm238_vm1, %v5888_v3, 0.0  ;;  %4643 = vmatprep.subr.mxu1 %v4846_v1  ;;  %v3315_v49 = vmul.f32 %v5888_v3, %v5888_v3  ;;  %v3573_v39 = vld [vmem:[%s6041_s2 + $0x1b8] sm:$0x3] }
0x11b8   :  { %3310 = vadd.xlane.f32.xlu1 %v3309_v48  ;;  %4644 = vmatpush3.msra.mxu1 %v3356_v43  ;;  %v3572_v43 = vld [vmem:[%s6041_s2 + $0x1b0] sm:$0x3] }
0x11b9   :  { %v3306_v59 = vsel %vm238_vm1, %v5894_v61, 0.0  ;;  %v3314_v4 = vmul.f32 %v5894_v61, %v5894_v61  ;;  %4648 = vmatprep.subr.mxu1 %v4846_v1  ;;  %v3319_v42 = vsel %vm238_vm1, %v3315_v49, 0.0 }
0x11bb   :  { %v3316_v53 = vsel %vm238_vm1, %v3314_v4, 0.0  ;;  %v3734_v4 = vld [vmem:[%s6041_s2 + $0x70] sm:$0xff] }
0x11bc   :  { %3307 = vadd.xlane.f32.xlu1 %v3306_v59  ;;  %v3735_v59 = vld [vmem:[%s6041_s2 + $0x78] sm:$0xff] }
0x11c0   :  { %3317 = vadd.xlane.f32.xlu1 %v3316_v53  ;;  %v3733_v53 = vld [vmem:[%s6041_s2 + $0x68] sm:$0xff] }
0x1236   :  { %v3463_v5 = vpop.f32.mrf.mxu0 }
0x1237   :  { %v3464_v7 = vadd.f32 %v4037_v62, %v3463_v5  ;;  %v3732_v62 = vld [vmem:[%s6041_s2 + $0x60] sm:$0xff]  ;;  %v3731_v5 = vld [vmem:[%s6041_s2 + $0x58] sm:$0xff] }
0x1238   :  { %v4628_v8 = vpop.f32.mrf.mxu0 }
0x1239   :  { %v3467_v9 = vmax.f32 %v3464_v7, 0.0  ;;  %v3730_v7 = vld [vmem:[%s6041_s2 + $0x50] sm:$0xff]  ;;  %v3729_v8 = vld [vmem:[%s6041_s2 + $0x48] sm:$0xff] }
0x123b   :  { %4646 = vmatmul.mubr.msk.f32.vlgmr.msra.gmra.mxu1 %vm3221_vm6, %v3467_v9  ;;  %v3728_v9 = vld [vmem:[%s6041_s2 + $0x40] sm:$0xff] }
0x123c   :  { %4650 = vmatprep.mubr.msk.f32.mxu1 %vm4847_vm0, %v4846_v1 }
0x1241   :  { %v3311_v21 = vpop.xlane.xlu1 %3310 }
0x1242   :  { %v3313_v30 = vmul.f32 0.03125, %v3311_v21 }
0x1244   :  { %v3325_v63 = vmul.f32 %v3313_v30, %v3313_v30  ;;  %v3329_v58 = vsub.f32 %v5888_v3, %v3313_v30 }
0x1245   :  { %v3308_v44 = vpop.xlane.xlu1 %3307 }
0x1246   :  { %v3312_v50 = vmul.f32 0.03125, %v3308_v44 }
0x1248   :  { %v3324_v26 = vmul.f32 %v3312_v50, %v3312_v50  ;;  %v3328_v52 = vsub.f32 %v5894_v61, %v3312_v50  ;;  %v3345_v61 = vrot.slane %v3305_v56, %v4972_v24  ;;  %v3736_v24 = vld [vmem:[%s6041_s2 + $0x80] sm:$0xff] }
0x1249   :  { %v3318_v6 = vpop.xlane.xlu1 %3317  ;;  %v4051_v50 = vld [vmem:[%s6042_s3] ss:$0 sm:$0xff] }
0x124a   :  { %v3322_v25 = vmul.f32 0.03125, %v3318_v6 }
0x124c   :  { %v3326_v29 = vsub.f32 %v3322_v25, %v3324_v26 }
0x124e   :  { %v3330_v32 = vadd.f32 1e-05, %v3326_v29 }
0x1250   :  { %4806 = vrsqrt.f32 %v3330_v32 }
0x125d   :  { %v4807_v40 = vpop.eup %4806 }
0x125e   :  { %v3334_v0 = vmul.f32 %v4807_v40, %v3328_v52 }
0x1260   :  { %v3340_v17 = vmul.f32 %v3339_v14, %v3334_v0 }
0x1262   :  { %v3346_v36 = vadd.f32 %v3345_v61, %v3340_v17 }
0x12fb   :  { %v3541_v13 = vpop.f32.mrf.mxu1 }
0x12fc   :  { %v3542_v41 = vadd.f32 %v4047_v12, %v3541_v13  ;;  %v3727_v12 = vld [vmem:[%s6041_s2 + $0x38] sm:$0xff]  ;;  %v3726_v13 = vld [vmem:[%s6041_s2 + $0x30] sm:$0xff] }
0x12fd   :  { %v4647_v15 = vpop.f32.mrf.mxu1 }
0x12fe   :  { %v3545_v16 = vadd.f32 %v3542_v41, %v3093_v60  ;;  %v3725_v41 = vld [vmem:[%s6041_s2 + $0x28] sm:$0xff]  ;;  %v3724_v15 = vld [vmem:[%s6041_s2 + $0x20] sm:$0xff] }
0x1300   :  { %v3547_v18 = vsel %vm238_vm1, %v3545_v16, 0.0  ;;  %v3551_v20 = vmul.f32 %v3545_v16, %v3545_v16 }
0x1301   :  { %3548 = vadd.xlane.f32.xlu0 %v3547_v18  ;;  %v3722_v18 = vld [vmem:[%s6041_s2 + $0x10] sm:$0xff] }
0x1302   :  { %v3552_v19 = vsel %vm238_vm1, %v3551_v20, 0.0  ;;  %v3721_v20 = vld [vmem:[%s6041_s2 + $0x8] sm:$0xff] }
0x1305   :  { %3553 = vadd.xlane.f32.xlu0 %v3552_v19 }
0x1309   :  { %3320 = vadd.xlane.f32.xlu0 %v3319_v42 }
0x138a   :  { %v3549_v28 = vpop.xlane.xlu0 %3548 }
0x138b   :  { %v3550_v22 = vmul.f32 0.03125, %v3549_v28 }
0x138d   :  { %v3556_v55 = vmul.f32 %v3550_v22, %v3550_v22  ;;  %v3558_v51 = vsub.f32 %v3545_v16, %v3550_v22  ;;  %v3723_v16 = vld [vmem:[%s6041_s2 + $0x18] sm:$0xff]  ;;  %s4824_s2 = scalar_lea.vmem %s3871_s28, 32 }
0x138e   :  { %v3554_v54 = vpop.xlane.xlu0 %3553  ;;  %p4825_p0 = scmp.ne.s32.totalorder %s3871_s28, %s4824_s2  ;;  %p4830_p2 = scmp.lt.s32.totalorder %s4824_s2, %s4824_s2 }
0x138f   :  { %v3555_v2 = vmul.f32 0.03125, %v3554_v54 }
0x1390   :  { %p4831_p3 = por %p4830_p2, %p4829_p1 }
0x1391   :  { %v3557_v31 = vsub.f32 %v3555_v2, %v3556_v55 }
0x1392   :  { %v3321_v27 = vpop.xlane.xlu0 %3320  ;;  %p4832_p4 = pnand %p4831_p3, %p4825_p0 }
0x1393   :  { %v3559_v23 = vadd.f32 1e-05, %v3557_v31  ;;  %v3323_v34 = vmul.f32 0.03125, %v3321_v27 }
0x1395   :  { %4808 = vrsqrt.f32 %v3559_v23  ;;  %v3327_v35 = vsub.f32 %v3323_v34, %v3325_v63 }
0x1397   :  { %v3331_v37 = vadd.f32 1e-05, %v3327_v35 }
0x1399   :  { %4810 = vrsqrt.f32 %v3331_v37 }
0x13a2   :  { %v4809_v47 = vpop.eup %4808 }
0x13a3   :  { %v3561_v57 = vmul.f32 %v4809_v47, %v3558_v51 }
0x13a5   :  { %v3566_v60 = vmul.f32 %v3565_v45, %v3561_v57 }
0x13a6   :  { %v4811_v46 = vpop.eup %4810 }
0x13a7   :  { %v3571_v10 = vadd.f32 %v3570_v11, %v3566_v60  ;;  %v3335_v33 = vmul.f32 %v4811_v46, %v3329_v58 }
0x13a9   :  { %4649 = vmatpush3.msra.mxu1 %v3571_v10  ;;  %v3341_v48 = vmul.f32 %v3339_v14, %v3335_v33 }
0x13aa   :  { %4651 = vmatmul.mubr.msk.f32.vlgmr.msra.gmra.mxu1 %vm1413_vm5, %v3573_v39  ;;  %4653 = vmatprep.subr.mxu1 %v4846_v1 }
0x13ab   :  { %v3347_v3 = vadd.f32 %v3345_v61, %v3341_v48  ;;  %4657 = vmatprep.mubr.msk.f32.mxu1 %vm4847_vm0, %v4846_v1 }
0x13ad   :  { %4654 = vmatpush3.msra.mxu1 %v3347_v3 }
0x13ae   :  { %4655 = vmatprep.subr.mxu1 %v4846_v1 }
0x13af   :  { %4656 = vmatpush3.msra.mxu1 %v3346_v36 }
0x13b0   :  { %4658 = vmatmul.mubr.msk.f32.vlgmr.msra.gmra.mxu1 %vm689_vm4, %v3572_v43  ;;  %4660 = vmatprep.subr.mxu1 %v4846_v1 }
0x13b1   :  { %4661 = vmatpush3.xpose.msk.msra.mxu1 %vm238_vm1, %v3736_v24  ;;  %4692 = vmatprep.mubr.msk.f32.mxu1 %vm4847_vm0, %v4846_v1 }
0x13b2   :  { %4662 = vmatprep.subr.mxu1 %v4846_v1 }
0x13b5   :  { %4663 = vmatpush3.xpose.msk.msra.mxu1 %vm238_vm1, %v3735_v59 }
0x13b6   :  { %4664 = vmatprep.subr.mxu1 %v4846_v1 }
0x13b9   :  { %4665 = vmatpush3.xpose.msk.msra.mxu1 %vm238_vm1, %v3734_v4 }
0x13ba   :  { %4666 = vmatprep.subr.mxu1 %v4846_v1 }
0x13bd   :  { %4667 = vmatpush3.xpose.msk.msra.mxu1 %vm238_vm1, %v3733_v53 }
0x13be   :  { %4668 = vmatprep.subr.mxu1 %v4846_v1 }
0x13c1   :  { %4669 = vmatpush3.xpose.msk.msra.mxu1 %vm238_vm1, %v3732_v62 }
0x13c2   :  { %4670 = vmatprep.subr.mxu1 %v4846_v1 }
0x13c5   :  { %4671 = vmatpush3.xpose.msk.msra.mxu1 %vm238_vm1, %v3731_v5 }
0x13c6   :  { %4672 = vmatprep.subr.mxu1 %v4846_v1 }
0x13c9   :  { %4673 = vmatpush3.xpose.msk.msra.mxu1 %vm238_vm1, %v3730_v7 }
0x13ca   :  { %4674 = vmatprep.subr.mxu1 %v4846_v1 }
0x13cd   :  { %4675 = vmatpush3.xpose.msk.msra.mxu1 %vm238_vm1, %v3729_v8 }
0x13ce   :  { %4676 = vmatprep.subr.mxu1 %v4846_v1 }
0x13d1   :  { %4677 = vmatpush3.xpose.msk.msra.mxu1 %vm238_vm1, %v3728_v9 }
0x13d2   :  { %4678 = vmatprep.subr.mxu1 %v4846_v1 }
0x13d5   :  { %4679 = vmatpush3.xpose.msk.msra.mxu1 %vm238_vm1, %v3727_v12 }
0x13d6   :  { %4680 = vmatprep.subr.mxu1 %v4846_v1 }
0x13d9   :  { %4681 = vmatpush3.xpose.msk.msra.mxu1 %vm238_vm1, %v3726_v13 }
0x13da   :  { %4682 = vmatprep.subr.mxu1 %v4846_v1 }
0x13dd   :  { %4683 = vmatpush3.xpose.msk.msra.mxu1 %vm238_vm1, %v3725_v41 }
0x13de   :  { %4684 = vmatprep.subr.mxu1 %v4846_v1 }
0x13e1   :  { %4685 = vmatpush3.xpose.msk.msra.mxu1 %vm238_vm1, %v3724_v15 }
0x13e2   :  { %4686 = vmatprep.subr.mxu1 %v4846_v1 }
0x13e5   :  { %4687 = vmatpush3.xpose.msk.msra.mxu1 %vm238_vm1, %v3723_v16 }
0x13e6   :  { %4688 = vmatprep.subr.mxu1 %v4846_v1 }
0x13e9   :  { %4689 = vmatpush3.xpose.msk.msra.mxu1 %vm238_vm1, %v3722_v18 }
0x13ea   :  { %4690 = vmatprep.subr.mxu1 %v4846_v1 }
0x13ed   :  { %4691 = vmatpush3.xpose.msk.msra.mxu1 %vm238_vm1, %v3721_v20 }
0x146a   :  { %v3643_v19 = vpop.f32.mrf.mxu1 }
0x146c   :  { %v4652_v49 = vpop.f32.mrf.mxu1 }
0x1470   :  { %v3716_v42 = vpop.f32.mrf.mxu1 }
0x1471   :  { %v3717_v21 = vadd.f32 %v3716_v42, %v3643_v19 }
0x1472   :  { %v4659_v44 = vpop.f32.mrf.mxu1 }
0x1473   :  { %v3720_v6 = vmul.f32 0.083333336, %v3717_v21 }
0x1475   :  { %4693 = vmatmul.mubr.msk.f32.vlgmr.msra.gmra.mxu1 %vm238_vm1, %v3720_v6 }
0x1535   :  { %v3859_v1 = vpop.f32.mrf.mxu1 }
0x1536   :  { %v3860_v25 = vadd.f32 %v4051_v50, %v3859_v1 }
0x1537   :  { %v4694_v26 = vpop.f32.mrf.mxu1 }
0x1538   :  { %3863 = vst [vmem:[#allocation2] sm:$0x3] %v3860_v25 }
0x1539   :  { %4835 = shalt.err (!%p4832_p4)
}
0x153a   :  { %3873 = dma.vmem_to_hbm [thread:$0]  %s3871_s28, 32, %s6043_s4, [#allocation3]  }
0x153b   :  { %4844 = dma.done.wait [#allocation3], 32  }
0x153c   :  { %4845 = vsyncadd [#allocation3], 4294967264 }
0x153d   :  { %3877 = vsyncpa [#allocation3], 1 }

</bundles_post_ra>
